<compile_context>
chip_gen: v7x
topology: tpu7x:2x2x1
jax: 0.10.0
libtpu: 0.0.40
codegen_flags: <defaults>
</compile_context>

<pallas_src>
import jax
import jax.numpy as jnp
from jax.experimental import pallas as pl
from jax.experimental.pallas import tpu as pltpu


# Static widths of the SARL network.
F_IN = 61           # per-agent feature dim
H1A, H1B = 150, 100  # mlp1: 61 -> 150 -> 100
H2A, H2B = 100, 50   # mlp2: 100 -> 100 -> 50
HA = 100             # attention hidden width
SELF_DIM = 6
OUT_DIM = 150
OUT_PAD = 256        # lane-padded output width (sliced back to 150 in wrapper)
WF_COLS = 256        # fused [W2a | pad | Wa1h | pad]; halves at 128-aligned offsets


def sarl_kernel(x_ref, self_ref,
                w1a_ref, w1b_ref, wf_ref, w2b_ref, wa1g_ref, wa2_ref,
                w3s_ref, w3f_ref, bias_ref,
                out_ref):
    N, TB, F = x_ref.shape
    bf16, f32 = jnp.bfloat16, jnp.float32

    # ---- packed biases / small vectors: one (9, 256) f32 slab ----
    b1a = bias_ref[0:1, 0:H1A]       # (1,150)
    b1b = bias_ref[1:2, 0:H1B]
    b2a = bias_ref[2:3, 0:H2A]
    b2b = bias_ref[3:4, 0:H2B]
    ba1 = bias_ref[4:5, 0:HA]
    ba2 = bias_ref[5:6, 0:HA]
    ba3 = bias_ref[6:7, 0:1]         # (1,1)
    b3 = bias_ref[7:8, :]            # (1,256), zero past col 150
    wa3 = bias_ref[8:9, 0:HA]        # attention 100->1 weight, as a row (VPU dot)

    # ---- per-agent MLPs on the flattened (N*TB, .) batch (bf16 MXU, f32 acc) ----
    x = x_ref[...].reshape(N * TB, F).astype(bf16)

    h = jnp.maximum(
        jnp.dot(x, w1a_ref[...], preferred_element_type=f32) + b1a, 0.0)
    h1 = jnp.maximum(
        jnp.dot(h.astype(bf16), w1b_ref[...], preferred_element_type=f32) + b1b, 0.0)
    h1_bf = h1.astype(bf16)

    # Fused weight: cols [0:100] = W2a (mlp2 layer 1), cols [128:228] = Wa1[:100].
    y = jnp.dot(h1_bf, wf_ref[...], preferred_element_type=f32)        # (N*TB, 256)
    h2 = jnp.maximum(y[:, 0:H2A] + b2a, 0.0)
    feat = jnp.dot(h2.astype(bf16), w2b_ref[...],
                   preferred_element_type=f32) + b2b                   # (N*TB, 50)

    # ---- global (mean-over-agents) state and attention MLP ----
    h1_3d = h1.reshape(N, TB, H1B)
    g = jnp.mean(h1_3d, axis=0)                                        # (TB, 100)
    ga = jnp.dot(g.astype(bf16), wa1g_ref[...], preferred_element_type=f32)

    a1 = jnp.maximum(y[:, 128:128 + HA].reshape(N, TB, HA) + ga + ba1, 0.0)
    a2 = jnp.maximum(
        jnp.dot(a1.reshape(N * TB, HA).astype(bf16), wa2_ref[...],
                preferred_element_type=f32) + ba2, 0.0)                # (N*TB, 100)

    # Attention 100 -> 1 as a VPU multiply + lane reduce (no 1-lane MXU pass).
    scores = jnp.sum(a2 * wa3, axis=1, keepdims=True) + ba3            # (N*TB, 1)

    # ---- softmax over agents (lengths == N in the reference => all-ones mask) ----
    s3 = scores.reshape(N, TB, 1)
    m = jnp.max(s3, axis=0, keepdims=True)
    e = jnp.exp(s3 - m)
    denom = jnp.sum(e, axis=0, keepdims=True)
    w = e * pl.reciprocal(denom, approx=True)                          # (N, TB, 1)
    # TODO(synk): reference stashes weights[0,:,0] as numpy (self.attention_weights);
    # that host-side side effect is skipped.

    weighted = jnp.sum(w * feat.reshape(N, TB, H2B), axis=0)           # (TB, 50)

    # ---- mlp3 on concat([self_state, weighted]) realized as a split matmul ----
    v = jnp.maximum(
        jnp.dot(self_ref[...].astype(bf16), w3s_ref[...], preferred_element_type=f32)
        + jnp.dot(weighted.astype(bf16), w3f_ref[...], preferred_element_type=f32)
        + b3, 0.0)                                                     # (TB, 256)
    out_ref[...] = v


def make_params(key):
    """Deterministic synthetic parameters, stored as (in, out) matrices."""
    shapes = {
        "W1a": (61, 150), "b1a": (150,),
        "W1b": (150, 100), "b1b": (100,),
        "W2a": (100, 100), "b2a": (100,),
        "W2b": (100, 50), "b2b": (50,),
        "Wa1": (200, 100), "ba1": (100,),
        "Wa2": (100, 100), "ba2": (100,),
        "Wa3": (100, 1), "ba3": (1,),
        "W3": (56, 150), "b3": (150,),
    }
    params = {}
    keys = jax.random.split(key, len(shapes))
    for (name, shp), k in zip(shapes.items(), keys):
        scale = 0.1 if name.startswith("W") else 0.01
        params[name] = (scale * jax.random.normal(k, shp)).astype(jnp.float32)
    return params


def _pack_params(params):
    """bf16 weights (with the h1-consumer fusion + output-lane padding) and an
    f32 bias slab."""
    bf16 = jnp.bfloat16
    w1a = params["W1a"].astype(bf16)
    w1b = params["W1b"].astype(bf16)

    wf = jnp.zeros((H1B, WF_COLS), jnp.float32)
    wf = wf.at[:, 0:H2A].set(params["W2a"])            # mlp2 layer 1
    wf = wf.at[:, 128:128 + HA].set(params["Wa1"][:H1B])  # attention, h1 half
    wf = wf.astype(bf16)

    w2b = params["W2b"].astype(bf16)
    wa1g = params["Wa1"][H1B:].astype(bf16)            # attention, global half
    wa2 = params["Wa2"].astype(bf16)

    w3s = jnp.zeros((SELF_DIM, OUT_PAD), jnp.float32).at[:, :OUT_DIM].set(
        params["W3"][:SELF_DIM]).astype(bf16)
    w3f = jnp.zeros((H2B, OUT_PAD), jnp.float32).at[:, :OUT_DIM].set(
        params["W3"][SELF_DIM:]).astype(bf16)

    slab = jnp.zeros((9, 256), jnp.float32)
    slab = slab.at[0, :H1A].set(params["b1a"])
    slab = slab.at[1, :H1B].set(params["b1b"])
    slab = slab.at[2, :H2A].set(params["b2a"])
    slab = slab.at[3, :H2B].set(params["b2b"])
    slab = slab.at[4, :HA].set(params["ba1"])
    slab = slab.at[5, :HA].set(params["ba2"])
    slab = slab.at[6, :1].set(params["ba3"])
    slab = slab.at[7, :OUT_DIM].set(params["b3"])
    slab = slab.at[8, :HA].set(params["Wa3"][:, 0])

    return [w1a, w1b, wf, w2b, wa1g, wa2, w3s, w3f, slab]


def sarl_forward(state, params, *, tb=32):
    B, N, F = state.shape
    assert F == F_IN

    # Pad the batch to a multiple of the per-step batch tile.
    B_pad = ((B + tb - 1) // tb) * tb
    if B_pad != B:
        state = jnp.pad(state, ((0, B_pad - B), (0, 0), (0, 0)))

    # Layout plumbing in the wrapper (cheap XLA slices / transposes):
    #  - agents on the leading axis so per-agent reductions in-kernel are
    #    leading-dim reductions,
    #  - the state[:, 0, :6] self-state slice pre-extracted.
    state_t = jnp.transpose(state, (1, 0, 2))            # (N, B_pad, F)
    self_state = state[:, 0, :SELF_DIM]                  # (B_pad, 6)
    weights = _pack_params(params)

    grid = (B_pad // tb,)
    in_specs = [
        pl.BlockSpec((N, tb, F), lambda b: (0, b, 0)),
        pl.BlockSpec((tb, SELF_DIM), lambda b: (b, 0)),
    ]
    for wgt in weights:
        in_specs.append(pl.BlockSpec(wgt.shape, lambda b: (0, 0)))

    out = pl.pallas_call(
        sarl_kernel,
        out_shape=jax.ShapeDtypeStruct((B_pad, OUT_PAD), jnp.float32),
        grid=grid,
        in_specs=in_specs,
        out_specs=pl.BlockSpec((tb, OUT_PAD), lambda b: (b, 0)),
        compiler_params=pltpu.CompilerParams(dimension_semantics=("parallel",)),
    )(state_t, self_state, *weights)
    return out[:B, :OUT_DIM]


def sarl_reference(state, p):
    """Plain-JAX f32 transcription of the PyTorch forward, for verification."""
    B, N, F = state.shape
    x = state.reshape(-1, F)
    h = jax.nn.relu(x @ p["W1a"] + p["b1a"])
    h1 = jax.nn.relu(h @ p["W1b"] + p["b1b"])
    h2 = jax.nn.relu(h1 @ p["W2a"] + p["b2a"])
    feat = h2 @ p["W2b"] + p["b2b"]
    g = jnp.mean(h1.reshape(B, N, -1), axis=1, keepdims=True)
    g = jnp.broadcast_to(g, (B, N, 100)).reshape(-1, 100)
    att_in = jnp.concatenate([h1, g], axis=1)
    a1 = jax.nn.relu(att_in @ p["Wa1"] + p["ba1"])
    a2 = jax.nn.relu(a1 @ p["Wa2"] + p["ba2"])
    scores = (a2 @ p["Wa3"] + p["ba3"]).reshape(B, N)
    w = jax.nn.softmax(scores, axis=1)[..., None]
    weighted = jnp.sum(w * feat.reshape(B, N, -1), axis=1)
    self_state = state[:, 0, :6]
    joint = jnp.concatenate([self_state, weighted], axis=1)
    return jax.nn.relu(joint @ p["W3"] + p["b3"])


if __name__ == "__main__":
    key = jax.random.PRNGKey(0)
    k_state, k_params = jax.random.split(key)

    # batch, num agents: TB=32 -> 256 MXU rows per step, grid of 2 steps
    # (keeps both v7x TensorCores busy).
    B, N = 64, 8
    state = jax.random.normal(k_state, (B, N, F_IN), dtype=jnp.float32)
    params = make_params(k_params)

    out = jax.block_until_ready(sarl_forward(state, params))
    ref = sarl_reference(state, params)

    assert out.shape == (B, OUT_DIM)
    # bf16 MXU inputs (f32 accumulation) => loosened tolerance vs the f32 reference.
    assert jnp.allclose(out, ref, rtol=1e-1, atol=5e-2), "Pallas kernel mismatch vs reference"
    print("KERNEL_OK")
</pallas_src>

<mosaic_0001>
module attributes {stable_mosaic.version = 11 : i64} {
  func.func @sarl_kernel(%arg0: i32, %arg1: memref<8x32x61xf32, #tpu.memory_space<vmem>>, %arg2: memref<32x6xf32, #tpu.memory_space<vmem>>, %arg3: memref<61x150xbf16, #tpu.memory_space<vmem>>, %arg4: memref<150x100xbf16, #tpu.memory_space<vmem>>, %arg5: memref<100x256xbf16, #tpu.memory_space<vmem>>, %arg6: memref<100x50xbf16, #tpu.memory_space<vmem>>, %arg7: memref<100x100xbf16, #tpu.memory_space<vmem>>, %arg8: memref<100x100xbf16, #tpu.memory_space<vmem>>, %arg9: memref<6x256xbf16, #tpu.memory_space<vmem>>, %arg10: memref<50x256xbf16, #tpu.memory_space<vmem>>, %arg11: memref<9x256xf32, #tpu.memory_space<vmem>>, %arg12: memref<32x256xf32, #tpu.memory_space<vmem>>) attributes {dimension_semantics = [#tpu.dimension_semantics<parallel>], iteration_bounds = array<i64: 2>, scalar_prefetch = 0 : i64, scratch_operands = 0 : i64, tpu.core_type = #tpu.core_type<tc>, window_params = [{transform_indices = @transform_0, window_bounds = array<i64: 8, 32, 61>}, {transform_indices = @transform_1, window_bounds = array<i64: 32, 6>}, {pipeline_mode = #tpu.pipeline_mode<synchronous>, transform_indices = @transform_2, window_bounds = array<i64: 61, 150>}, {pipeline_mode = #tpu.pipeline_mode<synchronous>, transform_indices = @transform_3, window_bounds = array<i64: 150, 100>}, {pipeline_mode = #tpu.pipeline_mode<synchronous>, transform_indices = @transform_4, window_bounds = array<i64: 100, 256>}, {pipeline_mode = #tpu.pipeline_mode<synchronous>, transform_indices = @transform_5, window_bounds = array<i64: 100, 50>}, {pipeline_mode = #tpu.pipeline_mode<synchronous>, transform_indices = @transform_6, window_bounds = array<i64: 100, 100>}, {pipeline_mode = #tpu.pipeline_mode<synchronous>, transform_indices = @transform_7, window_bounds = array<i64: 100, 100>}, {pipeline_mode = #tpu.pipeline_mode<synchronous>, transform_indices = @transform_8, window_bounds = array<i64: 6, 256>}, {pipeline_mode = #tpu.pipeline_mode<synchronous>, transform_indices = @transform_9, window_bounds = array<i64: 50, 256>}, {pipeline_mode = #tpu.pipeline_mode<synchronous>, transform_indices = @transform_10, window_bounds = array<i64: 9, 256>}, {transform_indices = @transform_11, window_bounds = array<i64: 32, 256>}]} {
    %c0 = arith.constant 0 : index
    %c0_0 = arith.constant 0 : index
    %0 = vector.load %arg11[%c0, %c0_0] : memref<9x256xf32, #tpu.memory_space<vmem>>, vector<1x150xf32>
    %c1 = arith.constant 1 : index
    %c0_1 = arith.constant 0 : index
    %1 = vector.load %arg11[%c1, %c0_1] : memref<9x256xf32, #tpu.memory_space<vmem>>, vector<1x100xf32>
    %c2 = arith.constant 2 : index
    %c0_2 = arith.constant 0 : index
    %2 = vector.load %arg11[%c2, %c0_2] : memref<9x256xf32, #tpu.memory_space<vmem>>, vector<1x100xf32>
    %c3 = arith.constant 3 : index
    %c0_3 = arith.constant 0 : index
    %3 = vector.load %arg11[%c3, %c0_3] : memref<9x256xf32, #tpu.memory_space<vmem>>, vector<1x50xf32>
    %c4 = arith.constant 4 : index
    %c0_4 = arith.constant 0 : index
    %4 = vector.load %arg11[%c4, %c0_4] : memref<9x256xf32, #tpu.memory_space<vmem>>, vector<1x100xf32>
    %c5 = arith.constant 5 : index
    %c0_5 = arith.constant 0 : index
    %5 = vector.load %arg11[%c5, %c0_5] : memref<9x256xf32, #tpu.memory_space<vmem>>, vector<1x100xf32>
    %c6 = arith.constant 6 : index
    %c0_6 = arith.constant 0 : index
    %6 = vector.load %arg11[%c6, %c0_6] : memref<9x256xf32, #tpu.memory_space<vmem>>, vector<1x1xf32>
    %c7 = arith.constant 7 : index
    %c0_7 = arith.constant 0 : index
    %7 = vector.load %arg11[%c7, %c0_7] : memref<9x256xf32, #tpu.memory_space<vmem>>, vector<1x256xf32>
    %c8 = arith.constant 8 : index
    %c0_8 = arith.constant 0 : index
    %8 = vector.load %arg11[%c8, %c0_8] : memref<9x256xf32, #tpu.memory_space<vmem>>, vector<1x100xf32>
    %c0_9 = arith.constant 0 : index
    %c0_10 = arith.constant 0 : index
    %c0_11 = arith.constant 0 : index
    %9 = vector.load %arg1[%c0_9, %c0_10, %c0_11] : memref<8x32x61xf32, #tpu.memory_space<vmem>>, vector<8x32x61xf32>
    %10 = vector.shape_cast %9 : vector<8x32x61xf32> to vector<256x61xf32>
    %11 = arith.truncf %10 : vector<256x61xf32> to vector<256x61xbf16>
    %c0_12 = arith.constant 0 : index
    %c0_13 = arith.constant 0 : index
    %12 = vector.load %arg3[%c0_12, %c0_13] : memref<61x150xbf16, #tpu.memory_space<vmem>>, vector<61x150xbf16>
    %cst = arith.constant dense<0.000000e+00> : vector<256x150xf32>
    %13 = tpu.matmul %11, %12, %cst {dimension_numbers = #tpu.dot_dimension_numbers<[1], [0], [0], [1], [0, 0, 1, 1], [], []>} : vector<256x61xbf16>, vector<61x150xbf16>, vector<256x150xf32> -> vector<256x150xf32>
    %14 = vector.broadcast %0 : vector<1x150xf32> to vector<256x150xf32>
    %15 = arith.addf %13, %14 : vector<256x150xf32>
    %cst_14 = arith.constant 0.000000e+00 : f32
    %16 = vector.broadcast %cst_14 : f32 to vector<256x150xf32>
    %17 = arith.maximumf %15, %16 : vector<256x150xf32>
    %18 = arith.truncf %17 : vector<256x150xf32> to vector<256x150xbf16>
    %c0_15 = arith.constant 0 : index
    %c0_16 = arith.constant 0 : index
    %19 = vector.load %arg4[%c0_15, %c0_16] : memref<150x100xbf16, #tpu.memory_space<vmem>>, vector<150x100xbf16>
    %cst_17 = arith.constant dense<0.000000e+00> : vector<256x100xf32>
    %20 = tpu.matmul %18, %19, %cst_17 {dimension_numbers = #tpu.dot_dimension_numbers<[1], [0], [0], [1], [0, 0, 1, 1], [], []>} : vector<256x150xbf16>, vector<150x100xbf16>, vector<256x100xf32> -> vector<256x100xf32>
    %21 = vector.broadcast %1 : vector<1x100xf32> to vector<256x100xf32>
    %22 = arith.addf %20, %21 : vector<256x100xf32>
    %cst_18 = arith.constant 0.000000e+00 : f32
    %23 = vector.broadcast %cst_18 : f32 to vector<256x100xf32>
    %24 = arith.maximumf %22, %23 : vector<256x100xf32>
    %25 = arith.truncf %24 : vector<256x100xf32> to vector<256x100xbf16>
    %c0_19 = arith.constant 0 : index
    %c0_20 = arith.constant 0 : index
    %26 = vector.load %arg5[%c0_19, %c0_20] : memref<100x256xbf16, #tpu.memory_space<vmem>>, vector<100x256xbf16>
    %cst_21 = arith.constant dense<0.000000e+00> : vector<256x256xf32>
    %27 = tpu.matmul %25, %26, %cst_21 {dimension_numbers = #tpu.dot_dimension_numbers<[1], [0], [0], [1], [0, 0, 1, 1], [], []>} : vector<256x100xbf16>, vector<100x256xbf16>, vector<256x256xf32> -> vector<256x256xf32>
    %28 = vector.extract_strided_slice %27 {offsets = [0, 0], sizes = [256, 100], strides = [1, 1]} : vector<256x256xf32> to vector<256x100xf32>
    %29 = vector.broadcast %2 : vector<1x100xf32> to vector<256x100xf32>
    %30 = arith.addf %28, %29 : vector<256x100xf32>
    %cst_22 = arith.constant 0.000000e+00 : f32
    %31 = vector.broadcast %cst_22 : f32 to vector<256x100xf32>
    %32 = arith.maximumf %30, %31 : vector<256x100xf32>
    %33 = arith.truncf %32 : vector<256x100xf32> to vector<256x100xbf16>
    %c0_23 = arith.constant 0 : index
    %c0_24 = arith.constant 0 : index
    %34 = vector.load %arg6[%c0_23, %c0_24] : memref<100x50xbf16, #tpu.memory_space<vmem>>, vector<100x50xbf16>
    %cst_25 = arith.constant dense<0.000000e+00> : vector<256x50xf32>
    %35 = tpu.matmul %33, %34, %cst_25 {dimension_numbers = #tpu.dot_dimension_numbers<[1], [0], [0], [1], [0, 0, 1, 1], [], []>} : vector<256x100xbf16>, vector<100x50xbf16>, vector<256x50xf32> -> vector<256x50xf32>
    %36 = vector.broadcast %3 : vector<1x50xf32> to vector<256x50xf32>
    %37 = arith.addf %35, %36 : vector<256x50xf32>
    %38 = vector.shape_cast %24 : vector<256x100xf32> to vector<8x32x100xf32>
    %cst_26 = arith.constant dense<0.000000e+00> : vector<32x100xf32>
    %39 = vector.multi_reduction <add>, %38, %cst_26 [0] : vector<8x32x100xf32> to vector<32x100xf32>
    %cst_27 = arith.constant 8.000000e+00 : f32
    %40 = vector.broadcast %cst_27 : f32 to vector<32x100xf32>
    %41 = arith.divf %39, %40 : vector<32x100xf32>
    %42 = arith.truncf %41 : vector<32x100xf32> to vector<32x100xbf16>
    %c0_28 = arith.constant 0 : index
    %c0_29 = arith.constant 0 : index
    %43 = vector.load %arg7[%c0_28, %c0_29] : memref<100x100xbf16, #tpu.memory_space<vmem>>, vector<100x100xbf16>
    %cst_30 = arith.constant dense<0.000000e+00> : vector<32x100xf32>
    %44 = tpu.matmul %42, %43, %cst_30 {dimension_numbers = #tpu.dot_dimension_numbers<[1], [0], [0], [1], [0, 0, 1, 1], [], []>} : vector<32x100xbf16>, vector<100x100xbf16>, vector<32x100xf32> -> vector<32x100xf32>
    %45 = vector.extract_strided_slice %27 {offsets = [0, 128], sizes = [256, 100], strides = [1, 1]} : vector<256x256xf32> to vector<256x100xf32>
    %46 = vector.shape_cast %45 : vector<256x100xf32> to vector<8x32x100xf32>
    %47 = vector.shape_cast %44 : vector<32x100xf32> to vector<1x32x100xf32>
    %48 = vector.broadcast %47 : vector<1x32x100xf32> to vector<8x32x100xf32>
    %49 = arith.addf %46, %48 : vector<8x32x100xf32>
    %50 = vector.shape_cast %4 : vector<1x100xf32> to vector<1x1x100xf32>
    %51 = vector.broadcast %50 : vector<1x1x100xf32> to vector<8x32x100xf32>
    %52 = arith.addf %49, %51 : vector<8x32x100xf32>
    %cst_31 = arith.constant 0.000000e+00 : f32
    %53 = vector.broadcast %cst_31 : f32 to vector<8x32x100xf32>
    %54 = arith.maximumf %52, %53 : vector<8x32x100xf32>
    %55 = vector.shape_cast %54 : vector<8x32x100xf32> to vector<256x100xf32>
    %56 = arith.truncf %55 : vector<256x100xf32> to vector<256x100xbf16>
    %c0_32 = arith.constant 0 : index
    %c0_33 = arith.constant 0 : index
    %57 = vector.load %arg8[%c0_32, %c0_33] : memref<100x100xbf16, #tpu.memory_space<vmem>>, vector<100x100xbf16>
    %cst_34 = arith.constant dense<0.000000e+00> : vector<256x100xf32>
    %58 = tpu.matmul %56, %57, %cst_34 {dimension_numbers = #tpu.dot_dimension_numbers<[1], [0], [0], [1], [0, 0, 1, 1], [], []>} : vector<256x100xbf16>, vector<100x100xbf16>, vector<256x100xf32> -> vector<256x100xf32>
    %59 = vector.broadcast %5 : vector<1x100xf32> to vector<256x100xf32>
    %60 = arith.addf %58, %59 : vector<256x100xf32>
    %cst_35 = arith.constant 0.000000e+00 : f32
    %61 = vector.broadcast %cst_35 : f32 to vector<256x100xf32>
    %62 = arith.maximumf %60, %61 : vector<256x100xf32>
    %63 = vector.broadcast %8 : vector<1x100xf32> to vector<256x100xf32>
    %64 = arith.mulf %62, %63 : vector<256x100xf32>
    %cst_36 = arith.constant dense<0.000000e+00> : vector<256xf32>
    %65 = vector.multi_reduction <add>, %64, %cst_36 [1] : vector<256x100xf32> to vector<256xf32>
    %66 = vector.shape_cast %65 : vector<256xf32> to vector<256x1xf32>
    %67 = vector.broadcast %6 : vector<1x1xf32> to vector<256x1xf32>
    %68 = arith.addf %66, %67 : vector<256x1xf32>
    %69 = vector.shape_cast %68 : vector<256x1xf32> to vector<8x32x1xf32>
    %cst_37 = arith.constant dense<0xFF800000> : vector<32x1xf32>
    %70 = vector.multi_reduction <maximumf>, %69, %cst_37 [0] : vector<8x32x1xf32> to vector<32x1xf32>
    %71 = vector.shape_cast %70 : vector<32x1xf32> to vector<1x32x1xf32>
    %72 = vector.broadcast %71 : vector<1x32x1xf32> to vector<8x32x1xf32>
    %73 = arith.subf %69, %72 : vector<8x32x1xf32>
    %74 = math.exp %73 : vector<8x32x1xf32>
    %cst_38 = arith.constant dense<0.000000e+00> : vector<32x1xf32>
    %75 = vector.multi_reduction <add>, %74, %cst_38 [0] : vector<8x32x1xf32> to vector<32x1xf32>
    %76 = vector.shape_cast %75 : vector<32x1xf32> to vector<1x32x1xf32>
    %77 = tpu.reciprocal %76 {approx = true} : vector<1x32x1xf32> -> vector<1x32x1xf32>
    %78 = vector.broadcast %77 : vector<1x32x1xf32> to vector<8x32x1xf32>
    %79 = arith.mulf %74, %78 : vector<8x32x1xf32>
    %80 = vector.shape_cast %37 : vector<256x50xf32> to vector<8x32x50xf32>
    %81 = vector.broadcast %79 : vector<8x32x1xf32> to vector<8x32x50xf32>
    %82 = arith.mulf %81, %80 : vector<8x32x50xf32>
    %cst_39 = arith.constant dense<0.000000e+00> : vector<32x50xf32>
    %83 = vector.multi_reduction <add>, %82, %cst_39 [0] : vector<8x32x50xf32> to vector<32x50xf32>
    %c0_40 = arith.constant 0 : index
    %c0_41 = arith.constant 0 : index
    %84 = vector.load %arg2[%c0_40, %c0_41] : memref<32x6xf32, #tpu.memory_space<vmem>>, vector<32x6xf32>
    %85 = arith.truncf %84 : vector<32x6xf32> to vector<32x6xbf16>
    %c0_42 = arith.constant 0 : index
    %c0_43 = arith.constant 0 : index
    %86 = vector.load %arg9[%c0_42, %c0_43] : memref<6x256xbf16, #tpu.memory_space<vmem>>, vector<6x256xbf16>
    %cst_44 = arith.constant dense<0.000000e+00> : vector<32x256xf32>
    %87 = tpu.matmul %85, %86, %cst_44 {dimension_numbers = #tpu.dot_dimension_numbers<[1], [0], [0], [1], [0, 0, 1, 1], [], []>} : vector<32x6xbf16>, vector<6x256xbf16>, vector<32x256xf32> -> vector<32x256xf32>
    %88 = arith.truncf %83 : vector<32x50xf32> to vector<32x50xbf16>
    %c0_45 = arith.constant 0 : index
    %c0_46 = arith.constant 0 : index
    %89 = vector.load %arg10[%c0_45, %c0_46] : memref<50x256xbf16, #tpu.memory_space<vmem>>, vector<50x256xbf16>
    %cst_47 = arith.constant dense<0.000000e+00> : vector<32x256xf32>
    %90 = tpu.matmul %88, %89, %cst_47 {dimension_numbers = #tpu.dot_dimension_numbers<[1], [0], [0], [1], [0, 0, 1, 1], [], []>} : vector<32x50xbf16>, vector<50x256xbf16>, vector<32x256xf32> -> vector<32x256xf32>
    %91 = arith.addf %87, %90 : vector<32x256xf32>
    %92 = vector.broadcast %7 : vector<1x256xf32> to vector<32x256xf32>
    %93 = arith.addf %91, %92 : vector<32x256xf32>
    %cst_48 = arith.constant 0.000000e+00 : f32
    %94 = vector.broadcast %cst_48 : f32 to vector<32x256xf32>
    %95 = arith.maximumf %93, %94 : vector<32x256xf32>
    %c0_49 = arith.constant 0 : index
    %c0_50 = arith.constant 0 : index
    %96 = vector.load %arg12[%c0_49, %c0_50] : memref<32x256xf32, #tpu.memory_space<vmem>>, vector<32x256xf32>
    tpu.vector_store %arg12[%c0_49, %c0_50], %95 {strides = array<i32>} : memref<32x256xf32, #tpu.memory_space<vmem>>, vector<32x256xf32>,
    return
  }
  func.func @transform_0(%arg0: i32) -> (i32, i32, i32) {
    %c0_i32 = arith.constant 0 : i32
    %c0_i32_0 = arith.constant 0 : i32
    %c0_i32_1 = arith.constant 0 : i32
    return %c0_i32, %arg0, %c0_i32_0 : i32, i32, i32
  }
  func.func @transform_1(%arg0: i32) -> (i32, i32) {
    %c0_i32 = arith.constant 0 : i32
    %c0_i32_0 = arith.constant 0 : i32
    return %arg0, %c0_i32 : i32, i32
  }
  func.func @transform_2(%arg0: i32) -> (i32, i32) {
    %c0_i32 = arith.constant 0 : i32
    %c0_i32_0 = arith.constant 0 : i32
    %c0_i32_1 = arith.constant 0 : i32
    return %c0_i32, %c0_i32_0 : i32, i32
  }
  func.func @transform_3(%arg0: i32) -> (i32, i32) {
    %c0_i32 = arith.constant 0 : i32
    %c0_i32_0 = arith.constant 0 : i32
    %c0_i32_1 = arith.constant 0 : i32
    return %c0_i32, %c0_i32_0 : i32, i32
  }
  func.func @transform_4(%arg0: i32) -> (i32, i32) {
    %c0_i32 = arith.constant 0 : i32
    %c0_i32_0 = arith.constant 0 : i32
    %c0_i32_1 = arith.constant 0 : i32
    return %c0_i32, %c0_i32_0 : i32, i32
  }
  func.func @transform_5(%arg0: i32) -> (i32, i32) {
    %c0_i32 = arith.constant 0 : i32
    %c0_i32_0 = arith.constant 0 : i32
    %c0_i32_1 = arith.constant 0 : i32
    return %c0_i32, %c0_i32_0 : i32, i32
  }
  func.func @transform_6(%arg0: i32) -> (i32, i32) {
    %c0_i32 = arith.constant 0 : i32
    %c0_i32_0 = arith.constant 0 : i32
    %c0_i32_1 = arith.constant 0 : i32
    return %c0_i32, %c0_i32_0 : i32, i32
  }
  func.func @transform_7(%arg0: i32) -> (i32, i32) {
    %c0_i32 = arith.constant 0 : i32
    %c0_i32_0 = arith.constant 0 : i32
    %c0_i32_1 = arith.constant 0 : i32
    return %c0_i32, %c0_i32_0 : i32, i32
  }
  func.func @transform_8(%arg0: i32) -> (i32, i32) {
    %c0_i32 = arith.constant 0 : i32
    %c0_i32_0 = arith.constant 0 : i32
    %c0_i32_1 = arith.constant 0 : i32
    return %c0_i32, %c0_i32_0 : i32, i32
  }
  func.func @transform_9(%arg0: i32) -> (i32, i32) {
    %c0_i32 = arith.constant 0 : i32
    %c0_i32_0 = arith.constant 0 : i32
    %c0_i32_1 = arith.constant 0 : i32
    return %c0_i32, %c0_i32_0 : i32, i32
  }
  func.func @transform_10(%arg0: i32) -> (i32, i32) {
    %c0_i32 = arith.constant 0 : i32
    %c0_i32_0 = arith.constant 0 : i32
    %c0_i32_1 = arith.constant 0 : i32
    return %c0_i32, %c0_i32_0 : i32, i32
  }
  func.func @transform_11(%arg0: i32) -> (i32, i32) {
    %c0_i32 = arith.constant 0 : i32
    %c0_i32_0 = arith.constant 0 : i32
    return %arg0, %c0_i32 : i32, i32
  }
}

</mosaic_0001>

<bundles_post_ra>
// kernel: tpu_custom_call.1
= control target key start
LH: loop header
LB: loop body
LE: loop exit
PB: predicated region body
PF: predicated region fallthrough
CT: control target
= control target key end

     0   :  { %s5882_s0 = inlined_call_operand.vmem [shape: f32[8,64,61], index: 0, kind: input, shape index: {}]   ;;  %s5883_s1 = inlined_call_operand.vmem [shape: f32[64,6], index: 1, kind: input, shape index: {}]   ;;  %s5884_s2 = inlined_call_operand.vmem [shape: bf16[61,150], index: 2, kind: input, shape index: {}]   ;;  %s5885_s3 = inlined_call_operand.vmem [shape: bf16[150,100], index: 3, kind: input, shape index: {}]   ;;  %s5886_s4 = inlined_call_operand.vmem [shape: bf16[100,256], index: 4, kind: input, shape index: {}]   ;;  %s5887_s5 = inlined_call_operand.vmem [shape: bf16[100,50], index: 5, kind: input, shape index: {}]   ;;  %s5888_s6 = inlined_call_operand.vmem [shape: bf16[100,100], index: 6, kind: input, shape index: {}]   ;;  %s5889_s7 = inlined_call_operand.vmem [shape: bf16[100,100], index: 7, kind: input, shape index: {}]   ;;  %s5890_s8 = inlined_call_operand.vmem [shape: bf16[6,256], index: 8, kind: input, shape index: {}]   ;;  %s5891_s9 = inlined_call_operand.vmem [shape: bf16[50,256], index: 9, kind: input, shape index: {}]   ;;  %s5892_s10 = inlined_call_operand.vmem [shape: f32[9,256], index: 10, kind: input, shape index: {}]   ;;  %s5893_s11 = inlined_call_operand.hbm [shape: f32[64,256], index: 11, kind: output, shape index: {}]  }
   0x1   :  { %5900 = sst [smem:[#allocation28_spill]] %s5882_s0 }
   0x2   :  { %16 = vsyncpa [#allocation4], 0 }
   0x3   :  { %18 = vsyncpa [#allocation4 + $0x1], 0  ;;  %s4281_s17 = smov 0   ;;  %s4283_s18 = smov 0  }
   0x4   :  { %s4285_s19 = smov 0   ;;  %s4287_s20 = smov 0  }
   0x5 LB: > { %s4302_s21 = sadd.s32 4294967295, %s4214_s20   ;;  %s3610_s22 = sadd.s32 4294967294, %s4214_s20   ;;  %s4214_s20 = sphi %s4287_s20, %s5955_s20   ;;  %s4210_s19 = sphi %s4285_s19, %s5954_s19   ;;  %s4206_s18 = sphi %s4283_s18, %s5953_s18   ;;  %s4202_s17 = sphi %s4281_s17, %s5952_s17  }
   0x6   : > { %s4306_s23 = sadd.s32 1, %s4214_s20   ;;  %s31_s24 = sadd.s32 1, %s4210_s19 }
   0x7   : > { %s28_s25 = ssub.s32 %s4214_s20, %s4306_s23  ;;  %p38_p0 = scmp.ne.s32.totalorder %s4210_s19, %s4206_s18 }
   0x8   : > { %p29_p1 = scmp.eq.s32.totalorder %s28_s25, 0  ;;  %p39_p2 = scmp.eq.s32.totalorder %s4214_s20, 0 }
   0x9   : > { %p283_p3 = scmp.eq.s32.totalorder %s4302_s21, 1  ;;  %p288_p4 = scmp.ne.s32.totalorder %s4206_s18, %s4202_s17 }
   0xa   : > { %s4318_s26 = scalar_select %p29_p1, %s4210_s19, %s31_s24  }
   0xb   : > { %p40_p5 = por %p39_p2, %p38_p0  ;;  %p4320_p6 = por %p283_p3, %p38_p0 }
   0xc   : > { %p289_p7 = scmp.eq.s32.totalorder %s3610_s22, 1  ;;  %p3612_p9 = scmp.ge.s32.totalorder %s4214_s20, 2 }
   0xe   : > { %p4324_p8 = por %p289_p7, %p288_p4  ;;  %332 = sbr.rel (%p3612_p9) target bundleno = 47 (0x2f), region = 52 }
  0x15   : > { %335 = sbr.rel (!%p40_p5) target bundleno = 47 (0x2f), region = 56  ;;  %s337_s29 = sand.u32 (%p40_p5), 1, %s4210_s19  }
  0x16   : > { %s3780_s30 = sshll.u32 (%p40_p5), %s4214_s20, 5  ;;  %s3613_s12 = sshll.u32 (%p40_p5), %s337_s29, 8 }
  0x17   : > { %s5903_s0 = sld [smem:[#allocation28_spill]] (%p40_p5)  ;;  %s4341_s16 = scalar_lea.vmem (%p40_p5), [#allocation2], %s3613_s12 }
  0x1d   : > { %s4336_s15 = scalar_lea.vmem %s5903_s0, %s3780_s30 }
  0x1e   : > { %v432_v0 = vld [vmem:[%s4336_s15] sm:$0xff]  ;;  %v434_v1 = vld [vmem:[%s4336_s15 + $0x8] sm:$0xff]  ;;  %v436_v2 = vld [vmem:[%s4336_s15 + $0x10] sm:$0xff] }
  0x1f   : > { %433 = vst [vmem:[%s4341_s16] sm:$0xff] %v432_v0  ;;  %435 = vst [vmem:[%s4341_s16 + $0x8] sm:$0xff] %v434_v1  ;;  %v438_v3 = vld [vmem:[%s4336_s15 + $0x18] sm:$0xff]  ;;  %v440_v4 = vld [vmem:[%s4336_s15 + $0x40] sm:$0xff] }
  0x20   : > { %437 = vst [vmem:[%s4341_s16 + $0x10] sm:$0xff] %v436_v2  ;;  %v442_v5 = vld [vmem:[%s4336_s15 + $0x48] sm:$0xff]  ;;  %439 = vst [vmem:[%s4341_s16 + $0x18] sm:$0xff] %v438_v3  ;;  %v444_v6 = vld [vmem:[%s4336_s15 + $0x50] sm:$0xff] }
  0x21   : > { %441 = vst [vmem:[%s4341_s16 + $0x20] sm:$0xff] %v440_v4  ;;  %443 = vst [vmem:[%s4341_s16 + $0x28] sm:$0xff] %v442_v5  ;;  %v446_v7 = vld [vmem:[%s4336_s15 + $0x58] sm:$0xff]  ;;  %v448_v8 = vld [vmem:[%s4336_s15 + $0x80] sm:$0xff] }
  0x22   : > { %445 = vst [vmem:[%s4341_s16 + $0x30] sm:$0xff] %v444_v6  ;;  %447 = vst [vmem:[%s4341_s16 + $0x38] sm:$0xff] %v446_v7  ;;  %v450_v9 = vld [vmem:[%s4336_s15 + $0x88] sm:$0xff]  ;;  %v452_v10 = vld [vmem:[%s4336_s15 + $0x90] sm:$0xff] }
  0x23   : > { %449 = vst [vmem:[%s4341_s16 + $0x40] sm:$0xff] %v448_v8  ;;  %v454_v11 = vld [vmem:[%s4336_s15 + $0x98] sm:$0xff]  ;;  %451 = vst [vmem:[%s4341_s16 + $0x48] sm:$0xff] %v450_v9  ;;  %v456_v12 = vld [vmem:[%s4336_s15 + $0xc0] sm:$0xff] }
  0x24   : > { %453 = vst [vmem:[%s4341_s16 + $0x50] sm:$0xff] %v452_v10  ;;  %455 = vst [vmem:[%s4341_s16 + $0x58] sm:$0xff] %v454_v11  ;;  %v458_v13 = vld [vmem:[%s4336_s15 + $0xc8] sm:$0xff]  ;;  %v460_v14 = vld [vmem:[%s4336_s15 + $0xd0] sm:$0xff] }
  0x25   : > { %457 = vst [vmem:[%s4341_s16 + $0x60] sm:$0xff] %v456_v12  ;;  %459 = vst [vmem:[%s4341_s16 + $0x68] sm:$0xff] %v458_v13  ;;  %v462_v15 = vld [vmem:[%s4336_s15 + $0xd8] sm:$0xff]  ;;  %v464_v16 = vld [vmem:[%s4336_s15 + $0x100] sm:$0xff] }
  0x26   : > { %461 = vst [vmem:[%s4341_s16 + $0x70] sm:$0xff] %v460_v14  ;;  %v466_v17 = vld [vmem:[%s4336_s15 + $0x108] sm:$0xff]  ;;  %463 = vst [vmem:[%s4341_s16 + $0x78] sm:$0xff] %v462_v15  ;;  %v468_v18 = vld [vmem:[%s4336_s15 + $0x110] sm:$0xff] }
  0x27   : > { %465 = vst [vmem:[%s4341_s16 + $0x80] sm:$0xff] %v464_v16  ;;  %467 = vst [vmem:[%s4341_s16 + $0x88] sm:$0xff] %v466_v17  ;;  %v470_v19 = vld [vmem:[%s4336_s15 + $0x118] sm:$0xff]  ;;  %v472_v20 = vld [vmem:[%s4336_s15 + $0x140] sm:$0xff] }
  0x28   : > { %469 = vst [vmem:[%s4341_s16 + $0x90] sm:$0xff] %v468_v18  ;;  %471 = vst [vmem:[%s4341_s16 + $0x98] sm:$0xff] %v470_v19  ;;  %v474_v21 = vld [vmem:[%s4336_s15 + $0x148] sm:$0xff]  ;;  %v476_v22 = vld [vmem:[%s4336_s15 + $0x150] sm:$0xff] }
  0x29   : > { %473 = vst [vmem:[%s4341_s16 + $0xa0] sm:$0xff] %v472_v20  ;;  %v478_v23 = vld [vmem:[%s4336_s15 + $0x158] sm:$0xff]  ;;  %475 = vst [vmem:[%s4341_s16 + $0xa8] sm:$0xff] %v474_v21  ;;  %v480_v24 = vld [vmem:[%s4336_s15 + $0x180] sm:$0xff] }
  0x2a   : > { %477 = vst [vmem:[%s4341_s16 + $0xb0] sm:$0xff] %v476_v22  ;;  %479 = vst [vmem:[%s4341_s16 + $0xb8] sm:$0xff] %v478_v23  ;;  %v482_v25 = vld [vmem:[%s4336_s15 + $0x188] sm:$0xff]  ;;  %v484_v26 = vld [vmem:[%s4336_s15 + $0x190] sm:$0xff] }
  0x2b   : > { %481 = vst [vmem:[%s4341_s16 + $0xc0] sm:$0xff] %v480_v24  ;;  %483 = vst [vmem:[%s4341_s16 + $0xc8] sm:$0xff] %v482_v25  ;;  %v486_v27 = vld [vmem:[%s4336_s15 + $0x198] sm:$0xff]  ;;  %v488_v28 = vld [vmem:[%s4336_s15 + $0x1c0] sm:$0xff] }
  0x2c   : > { %485 = vst [vmem:[%s4341_s16 + $0xd0] sm:$0xff] %v484_v26  ;;  %v490_v29 = vld [vmem:[%s4336_s15 + $0x1c8] sm:$0xff]  ;;  %487 = vst [vmem:[%s4341_s16 + $0xd8] sm:$0xff] %v486_v27  ;;  %v492_v30 = vld [vmem:[%s4336_s15 + $0x1d0] sm:$0xff] }
  0x2d   : > { %489 = vst [vmem:[%s4341_s16 + $0xe0] sm:$0xff] %v488_v28  ;;  %491 = vst [vmem:[%s4341_s16 + $0xe8] sm:$0xff] %v490_v29  ;;  %v494_v31 = vld [vmem:[%s4336_s15 + $0x1d8] sm:$0xff] }
  0x2e   : > { %493 = vst [vmem:[%s4341_s16 + $0xf0] sm:$0xff] %v492_v30  ;;  %495 = vst [vmem:[%s4341_s16 + $0xf8] sm:$0xff] %v494_v31 }
  0x2f PF: > { %p3616_p10 = scmp.ge.s32.totalorder %s4214_s20, 1  ;;  %p509_p11 = scmp.lt.s32.totalorder %s4214_s20, 3 }
  0x31   : > { %p510_p12 = pnand %p3616_p10, %p509_p11 }
  0x33   : > { %513 = sbr.rel (%p510_p12) target bundleno = 1796 (0x704), region = 98 }
  0x3a   : > { %v4004_v32 = vld [vmem:[%s5884_s2 + $0x4] ss:$8 sps:$4 sm:$0xff]   ;;  %vm733_vm0 = vcmask 1045504   ;;  %v4006_v33 = vld [vmem:[%s5884_s2] ss:$8 sps:$4 sm:$0xff]   ;;  %vm734_vm1 = vcmask 1046528  }
  0x3b   : > { %743 = vmatprep.subr.bf16.mxu0 %v4004_v32  ;;  %v4007_v34 = vld [vmem:[%s5884_s2 + $0x14] ss:$8 sps:$4 sm:$0xff]   ;;  %v4216_v35 = vmov 65535   ;;  %v5896_v37 = vmov 0   ;;  %v4009_v38 = vld [vmem:[%s5884_s2 + $0x10] ss:$8 sps:$4 sm:$0xff]  }
  0x3c   : > { %v735_v36 = vsel %vm733_vm0, 4294967295, %v4216_v35  ;;  %775 = vmatprep.mubr.bf16.mxu0 %v5896_v37  ;;  %744 = vmatpush1.bf16.msra.mxu0 %v4006_v33  ;;  %v4010_v39 = vld [vmem:[%s5884_s2 + $0x24] ss:$8 sps:$4 sm:$0xff]   ;;  %v4013_v40 = vld [vmem:[%s5884_s2 + $0x34] ss:$8 sps:$4 sm:$0x7f]  }
  0x3d   : > { %1161 = vmatprep.subr.bf16.mxu1 %v5896_v37  ;;  %745 = vmatprep.subr.bf16.mxu0 %v4007_v34  ;;  %v4012_v41 = vld [vmem:[%s5884_s2 + $0x20] ss:$8 sps:$4 sm:$0xff]   ;;  %v736_v42 = vsel %vm734_vm1, %v735_v36, 0  ;;  %v4015_v43 = vld [vmem:[%s5884_s2 + $0x30] ss:$8 sps:$4 sm:$0x7f]  }
  0x3e   : > { %4003 = vset.pattern.permute.xlu0 %v5896_v37  ;;  %s4434_s13 = sand.u32 1, %s4206_s18   ;;  %4002 = vset.pattern.permute.xlu1 %v5896_v37  ;;  %v741_v44 = vand.u32 %v4013_v40, %v736_v42  ;;  %v738_v45 = vand.u32 %v4015_v43, %v736_v42  ;;  %vm684_vm2 = vcmask 498688   ;;  %v4016_v50 = vld [vmem:[%s5885_s3] sm:$0xff]   ;;  %v4017_v52 = vld [vmem:[%s5885_s3 + $0x8] sm:$0xff]   ;;  %v4018_v54 = vld [vmem:[%s5885_s3 + $0x10] sm:$0xff]   ;;  %vm1157_vm3 = vcmask 1042432  }
  0x3f   : > { %s3617_s14 = sshll.u32 %s4434_s13, 8  ;;  %1162 = vmatpush1.bf16.msra.mxu1 %v4016_v50  ;;  %v4019_v57 = vld [vmem:[%s5885_s3 + $0x18] sm:$0xff]   ;;  %v4020_v59 = vld [vmem:[%s5885_s3 + $0x20] sm:$0xff]   ;;  %v4021_v62 = vld [vmem:[%s5885_s3 + $0x28] sm:$0xff]   ;;  %vm1108_vm4 = vcmask 179200   ;;  %vm1497_vm5 = vcmask 1041408  }
  0x40   : > { %746 = vmatpush1.bf16.msra.mxu0 %v4009_v38  ;;  %s4438_s15 = scalar_lea.vmem [#allocation2], %s3617_s14  ;;  %1163 = vmatprep.subr.bf16.mxu1 %v5896_v37  ;;  %v4022_v0 = vld [vmem:[%s5885_s3 + $0x30] sm:$0xff]   ;;  %v4023_v24 = vld [vmem:[%s5885_s3 + $0x38] sm:$0xff]   ;;  %v4024_v26 = vld [vmem:[%s5885_s3 + $0x40] sm:$0xff]   ;;  %vm1448_vm6 = vcmask 818176   ;;  %vm2786_vm7 = vcmask 7168  }
  0x41   : > { %747 = vmatprep.subr.bf16.mxu0 %v4010_v39  ;;  %v579_v46 = vld [vmem:[%s4438_s15] sm:$0xff]  ;;  %v580_v47 = vld [vmem:[%s4438_s15 + $0x8] sm:$0xff]  ;;  %v581_v49 = vld [vmem:[%s4438_s15 + $0x10] sm:$0xff]  ;;  %vm3349_vm8 = vcmask 1040384   ;;  %s3619_s25 = sshll.u32 %s4302_s21, 2  ;;  %vm3414_vm9 = vcmask 48128  }
  0x42   : > { %v611_v48 = vpack.c.bf16 %v580_v47, %v579_v46  ;;  %v582_v51 = vld [vmem:[%s4438_s15 + $0x18] sm:$0xff]  ;;  %v583_v55 = vld [vmem:[%s4438_s15 + $0x20] sm:$0xff]  ;;  %v584_v56 = vld [vmem:[%s4438_s15 + $0x28] sm:$0xff]  ;;  %p562_p13 = scmp.lt.s32.totalorder %s3619_s25, 7  ;;  %vm3231_vm10 = vcmask 408576   ;;  %s3782_s30 = sshll.u32 %s4302_s21, 10 }
  0x43   : > { %v612_v53 = vpack.c.bf16 %v582_v51, %v581_v49  ;;  %1164 = vmatpush1.bf16.msra.mxu1 %v4017_v52  ;;  %v613_v58 = vpack.c.bf16 %v584_v56, %v583_v55  ;;  %v585_v60 = vld [vmem:[%s4438_s15 + $0x30] sm:$0xff]  ;;  %v586_v61 = vld [vmem:[%s4438_s15 + $0x38] sm:$0xff]  ;;  %v587_v1 = vld [vmem:[%s4438_s15 + $0x40] sm:$0xff]  ;;  %s5836_s16 = scalar_lea.hbm %s5893_s11, %s3782_s30  ;;  %s4218_s24 = smov [#allocation3]  }
  0x44   : > { %748 = vmatpush1.bf16.msra.mxu0 %v4012_v41  ;;  %1165 = vmatprep.subr.bf16.mxu1 %v5896_v37  ;;  %v614_v63 = vpack.c.bf16 %v586_v61, %v585_v60  ;;  %v588_v2 = vld [vmem:[%s4438_s15 + $0x48] sm:$0xff]  ;;  %v589_v4 = vld [vmem:[%s4438_s15 + $0x50] sm:$0xff]  ;;  %v590_v5 = vld [vmem:[%s4438_s15 + $0x58] sm:$0xff]  ;;  %s5957_s25 = smov (!%p562_p13, %s3619_s25), 7 }
  0x45   : > { %749 = vmatprep.subr.bf16.mxu0 %v741_v44  ;;  %v615_v3 = vpack.c.bf16 %v588_v2, %v587_v1  ;;  %v616_v6 = vpack.c.bf16 %v590_v5, %v589_v4  ;;  %v591_v7 = vld [vmem:[%s4438_s15 + $0x60] sm:$0xff]  ;;  %v592_v8 = vld [vmem:[%s4438_s15 + $0x68] sm:$0xff]  ;;  %v593_v10 = vld [vmem:[%s4438_s15 + $0x70] sm:$0xff]  ;;  %v636_v44 = vlaneseq  ;;  %s3620_s29 = sshll.u32 %s5957_s25, 3  ;;  %s3618_s25 = sshll.u32 %s4434_s13, 6 }
  0x46   : > { %v617_v9 = vpack.c.bf16 %v592_v8, %v591_v7  ;;  %v594_v11 = vld [vmem:[%s4438_s15 + $0x78] sm:$0xff]  ;;  %v595_v13 = vld [vmem:[%s4438_s15 + $0x80] sm:$0xff]  ;;  %v596_v14 = vld [vmem:[%s4438_s15 + $0x88] sm:$0xff]  ;;  %s565_s14 = scalar_lea.vmem %s5883_s1, %s3620_s29  ;;  %s559_s29 = scalar_lea.vmem [#allocation3], %s3618_s25 }
  0x47   : > { %1166 = vmatpush1.bf16.msra.mxu1 %v4018_v54  ;;  %v618_v12 = vpack.c.bf16 %v594_v11, %v593_v10  ;;  %v619_v15 = vpack.c.bf16 %v596_v14, %v595_v13  ;;  %v597_v16 = vld [vmem:[%s4438_s15 + $0x90] sm:$0xff]  ;;  %v598_v17 = vld [vmem:[%s4438_s15 + $0x98] sm:$0xff]  ;;  %v599_v19 = vld [vmem:[%s4438_s15 + $0xa0] sm:$0xff]  ;;  %s3530_s12 = sshll.u32 %s559_s29, 4  ;;  %s4156_s25 = sshll.u32 %s4218_s24, 4  ;;  %s5838_s12 = int_to_ptr.vmem [resolvable:$true] %s3530_s12  ;;  %s4157_s25 = int_to_ptr.vmem [resolvable:$false] %s4156_s25 }
  0x48   : > { %750 = vmatpush1.bf16.msra.mxu0 %v738_v45  ;;  %1167 = vmatprep.subr.bf16.mxu1 %v5896_v37  ;;  %v620_v18 = vpack.c.bf16 %v598_v17, %v597_v16  ;;  %v600_v20 = vld [vmem:[%s4438_s15 + $0xa8] sm:$0xff]  ;;  %v601_v22 = vld [vmem:[%s4438_s15 + $0xb0] sm:$0xff]  ;;  %v602_v23 = vld [vmem:[%s4438_s15 + $0xb8] sm:$0xff]  ;;  %v4550_v45 = vshrl.u32 %v636_v44, 7  ;;  %s4152_s22 = scalar_lea.vmem %s5838_s12, 1024  ;;  %s4158_s30 = scalar_lea.vmem %s4157_s25, 2048 }
  0x49   : > { %v621_v21 = vpack.c.bf16 %v600_v20, %v599_v19  ;;  %v622_v25 = vpack.c.bf16 %v602_v23, %v601_v22  ;;  %v4025_v27 = vld [vmem:[%s5885_s3 + $0x48] ss:$0 sps:$4 sm:$0x77]   ;;  %v603_v28 = vld [vmem:[%s4438_s15 + $0xc0] sm:$0xff]  ;;  %v605_v32 = vld [vmem:[%s4438_s15 + $0xd0] sm:$0xff]  ;;  %p4153_p0 = scmp.ne.s32.totalorder %s5838_s12, %s4152_s22  ;;  %p4159_p3 = scmp.lt.s32.totalorder %s5838_s12, %s4157_s25 }
  0x4a   : > { %v604_v29 = vld [vmem:[%s4438_s15 + $0xc8] sm:$0xff]  ;;  %v1159_v30 = vsel %vm1157_vm3, %v4025_v27, 0  ;;  %v606_v33 = vld [vmem:[%s4438_s15 + $0xd8] sm:$0xff]  ;;  %v607_v35 = vld [vmem:[%s4438_s15 + $0xe0] sm:$0xff]  ;;  %5904 = vst [vmem:[#allocation6_spill] sm:$0xff] %v4550_v45  ;;  %v5895_v46 = vsub.s32 0, %v4550_v45  ;;  %p4160_p4 = scmp.lt.s32.totalorder %s4158_s30, %s4152_s22 }
  0x4b   : > { %3630 = vmatmul.mubr.msk.bf16.vlgmr.msra.gmra.mrb[0].mxu0 %vm684_vm2, %v611_v48  ;;  %1168 = vmatpush1.bf16.msra.mxu1 %v4019_v57  ;;  %v623_v31 = vpack.c.bf16 %v604_v29, %v603_v28  ;;  %v624_v34 = vpack.c.bf16 %v606_v33, %v605_v32  ;;  %v608_v36 = vld [vmem:[%s4438_s15 + $0xe8] sm:$0xff]  ;;  %v609_v39 = vld [vmem:[%s4438_s15 + $0xf0] sm:$0xff]  ;;  %v610_v40 = vld [vmem:[%s4438_s15 + $0xf8] sm:$0xff]  ;;  %v5894_v48 = vsub.s32 1, %v4550_v45  ;;  %p4154_p1 = pnand %p4153_p0, %p4320_p6 }
  0x4c   : > { %785 = vmatprep.mubr.bf16.mxu0 %v5896_v37  ;;  %1169 = vmatprep.subr.bf16.mxu1 %v5896_v37  ;;  %v625_v38 = vpack.c.bf16 %v608_v36, %v607_v35  ;;  %v626_v41 = vpack.c.bf16 %v610_v40, %v609_v39  ;;  %v4026_v42 = vld [vmem:[%s5886_s4] ss:$8 sps:$4 sm:$0xff]   ;;  %v4028_v43 = vld [vmem:[%s5886_s4 + $0x4] ss:$8 sps:$4 sm:$0xff]   ;;  %v4029_v49 = vld [vmem:[%s5886_s4 + $0x10] ss:$8 sps:$4 sm:$0xff]   ;;  %p4161_p5 = por %p4160_p4, %p4159_p3 }
  0x4d   : > { %1504 = vmatprep.subr.bf16.mxu0 %v4028_v43  ;;  %v569_v47 = vld [vmem:[%s5892_s10] ss:$8 sm:$0x3]  ;;  %v4031_v50 = vld [vmem:[%s5886_s4 + $0x14] ss:$8 sps:$4 sm:$0xff]   ;;  %p4155_p2 = pneg %p4154_p1 }
  0x4e   : > { %1505 = vmatpush1.bf16.msra.mxu0 %v4026_v42  ;;  %v4565_v51 = vrot.slane %v569_v47, %v5895_v46  ;;  %v4569_v52 = vrot.slane %v569_v47, %v5894_v48  ;;  %v4032_v60 = vld [vmem:[%s5886_s4 + $0x20] ss:$8 sps:$4 sm:$0xff]   ;;  %v4034_v61 = vld [vmem:[%s5886_s4 + $0x24] ss:$8 sps:$4 sm:$0xff]   ;;  %v4035_v4 = vld [vmem:[%s5886_s4 + $0x30] ss:$8 sps:$4 sm:$0xff]  }
  0x4f   : > { %1170 = vmatpush1.bf16.msra.mxu1 %v4020_v59  ;;  %1506 = vmatprep.subr.bf16.mxu0 %v4031_v50  ;;  %v4038_v13 = vld [vmem:[%s5886_s4 + $0x40] ss:$8 sps:$4 sm:$0xff]   ;;  %v4043_v16 = vld [vmem:[%s5886_s4 + $0x54] ss:$8 sps:$4 sm:$0xff]   ;;  %v4041_v23 = vld [vmem:[%s5886_s4 + $0x50] ss:$8 sps:$4 sm:$0xff]   ;;  %p4162_p7 = pnand %p4161_p5, %p4155_p2 }
  0x50   : > { %1171 = vmatprep.subr.bf16.mxu1 %v5896_v37 }
  0x52   : > { %1507 = vmatpush1.bf16.msra.mxu0 %v4029_v49 }
  0x53   : > { %3631 = vmatmul.mubr.msk.bf16.gmra.mrb[4].mxu0 %vm684_vm2, %v612_v53  ;;  %1172 = vmatpush1.bf16.msra.mxu1 %v4021_v62 }
  0x54   : > { %795 = vmatprep.mubr.bf16.mxu0 %v5896_v37  ;;  %1173 = vmatprep.subr.bf16.mxu1 %v5896_v37 }
  0x55   : > { %1508 = vmatprep.subr.bf16.mxu0 %v4034_v61 }
  0x56   : > { %1509 = vmatpush1.bf16.msra.mxu0 %v4032_v60 }
  0x57   : > { %1174 = vmatpush1.bf16.msra.mxu1 %v4022_v0 }
  0x58   : > { %1175 = vmatprep.subr.bf16.mxu1 %v5896_v37 }
  0x5b   : > { %3632 = vmatmul.mubr.msk.bf16.gmra.mrb[8].mxu0 %vm684_vm2, %v613_v58  ;;  %1176 = vmatpush1.bf16.msra.mxu1 %v4023_v24 }
  0x5c   : > { %805 = vmatprep.mubr.bf16.mxu0 %v5896_v37  ;;  %1177 = vmatprep.subr.bf16.mxu1 %v5896_v37 }
  0x5f   : > { %1178 = vmatpush1.bf16.msra.mxu1 %v4024_v26 }
  0x60   : > { %1179 = vmatprep.subr.bf16.mxu1 %v5896_v37 }
  0x63   : > { %3633 = vmatmul.mubr.msk.bf16.gmra.mrb[12].mxu0 %vm684_vm2, %v614_v63  ;;  %1180 = vmatpush1.bf16.msra.mxu1 %v1159_v30  ;;  %v4037_v63 = vld [vmem:[%s5886_s4 + $0x34] ss:$8 sps:$4 sm:$0xff]  }
  0x64   : > { %815 = vmatprep.mubr.bf16.mxu0 %v5896_v37  ;;  %1510 = vmatprep.subr.bf16.mxu0 %v4037_v63 }
  0x65   : > { %1511 = vmatpush1.bf16.msra.mxu0 %v4035_v4 }
  0x6b   : > { %3634 = vmatmul.mubr.msk.bf16.gmra.mrb[16].mxu0 %vm684_vm2, %v615_v3 }
  0x6c   : > { %825 = vmatprep.mubr.bf16.mxu0 %v5896_v37 }
  0x73   : > { %3635 = vmatmul.mubr.msk.bf16.gmra.mrb[20].mxu0 %vm684_vm2, %v616_v6  ;;  %v4040_v6 = vld [vmem:[%s5886_s4 + $0x44] ss:$8 sps:$4 sm:$0xff]  }
  0x74   : > { %835 = vmatprep.mubr.bf16.mxu0 %v5896_v37  ;;  %1512 = vmatprep.subr.bf16.mxu0 %v4040_v6 }
  0x75   : > { %1513 = vmatpush1.bf16.msra.mxu0 %v4038_v13 }
  0x76   : > { %1514 = vmatprep.subr.bf16.mxu0 %v4043_v16 }
  0x79   : > { %1515 = vmatpush1.bf16.msra.mxu0 %v4041_v23 }
  0x7b   : > { %3636 = vmatmul.mubr.msk.bf16.gmra.mrb[24].mxu0 %vm684_vm2, %v617_v9 }
  0x7c   : > { %845 = vmatprep.mubr.bf16.mxu0 %v5896_v37 }
  0x83   : > { %3637 = vmatmul.mubr.msk.bf16.gmra.mrb[28].mxu0 %vm684_vm2, %v618_v12 }
  0x84   : > { %855 = vmatprep.mubr.bf16.mxu0 %v5896_v37 }
  0x8b   : > { %3638 = vmatmul.mubr.msk.bf16.gmra.mrb[32].mxu0 %vm684_vm2, %v619_v15 }
  0x8c   : > { %865 = vmatprep.mubr.bf16.mxu0 %v5896_v37 }
  0x93   : > { %3639 = vmatmul.mubr.msk.bf16.gmra.mrb[36].mxu0 %vm684_vm2, %v620_v18  ;;  %v1382_v18 = vld [vmem:[%s5886_s4 + $0x60] sm:$0x33] }
  0x94   : > { %875 = vmatprep.mubr.bf16.mxu0 %v5896_v37  ;;  %v3684_v26 = vcombine.low %v1382_v18, %v1382_v18 }
  0x96   : > { %v1499_v35 = vsel %vm1497_vm5, %v3684_v26, 0 }
  0x9b   : > { %3640 = vmatmul.mubr.msk.bf16.gmra.mrb[40].mxu0 %vm684_vm2, %v621_v21 }
  0x9c   : > { %885 = vmatprep.mubr.bf16.mxu0 %v5896_v37 }
  0xa3   : > { %3641 = vmatmul.mubr.msk.bf16.gmra.mrb[44].mxu0 %vm684_vm2, %v622_v25  ;;  %v3685_v25 = vcombine.high %v1382_v18, %v1382_v18 }
  0xa4   : > { %895 = vmatprep.mubr.bf16.mxu0 %v5896_v37 }
  0xa5   : > { %3686 = vmatprep.subr.msk.bf16.mxu0 %vm1497_vm5, %v3685_v25 }
  0xa6   : > { %1517 = vmatpush1.bf16.msra.mxu0 %v1499_v35 }
  0xab   : > { %3642 = vmatmul.mubr.msk.bf16.gmra.mrb[48].mxu0 %vm684_vm2, %v623_v31 }
  0xac   : > { %905 = vmatprep.mubr.bf16.mxu0 %v5896_v37 }
  0xb3   : > { %3643 = vmatmul.mubr.msk.bf16.gmra.mrb[52].mxu0 %vm684_vm2, %v624_v34 }
  0xb4   : > { %915 = vmatprep.mubr.bf16.mxu0 %v5896_v37 }
  0xbb   : > { %3644 = vmatmul.mubr.msk.bf16.gmra.mrb[56].mxu0 %vm684_vm2, %v625_v38 }
  0xbc   : > { %925 = vmatprep.mubr.bf16.mxu0 %v5896_v37 }
  0xc3   : > { %3645 = vmatmul.mubr.msk.bf16.gmra.mrb[60].mxu0 %vm684_vm2, %v626_v41 }
  0xc4   : > { %1536 = vmatprep.mubr.bf16.mxu0 %v5896_v37 }
 0x11e   : > { %v777_v53 = vpop.f32.mrb[0].mxu0 }
 0x11f   : > { %v778_v54 = vadd.f32 %v777_v53, %v4565_v51  ;;  %v779_v55 = vpop.f32.mrb[1].mxu0 }
 0x120   : > { %v780_v56 = vadd.f32 %v779_v55, %v4569_v52  ;;  %v781_v57 = vpop.f32.mrb[2].mxu0 }
 0x121   : > { %v782_v58 = vadd.f32 %v781_v57, %v4565_v51  ;;  %v783_v59 = vpop.f32.mrb[3].mxu0  ;;  %v936_v0 = vmax.f32 %v778_v54, 0.0 }
 0x122   : > { %v784_v62 = vadd.f32 %v783_v59, %v4569_v52  ;;  %v937_v2 = vmax.f32 %v780_v56, 0.0 }
 0x123   : > { %v938_v1 = vmax.f32 %v782_v58, 0.0 }
 0x124   : > { %v939_v3 = vmax.f32 %v784_v62, 0.0 }
 0x125   : > { %v1000_v5 = vpack.c.bf16 %v938_v1, %v936_v0 }
 0x126   : > { %v787_v7 = vpop.f32.mrb[4].mxu0  ;;  %v1001_v8 = vpack.c.bf16 %v939_v3, %v937_v2 }
 0x127   : > { %v788_v9 = vadd.f32 %v787_v7, %v4565_v51  ;;  %v789_v10 = vpop.f32.mrb[5].mxu0 }
 0x128   : > { %v790_v11 = vadd.f32 %v789_v10, %v4569_v52  ;;  %v791_v12 = vpop.f32.mrb[6].mxu0  ;;  %3656 = vmatprep.mubr.msk.bf16.mxu1 %vm1108_vm4, %v1001_v8 }
 0x129   : > { %v792_v14 = vadd.f32 %v791_v12, %v4565_v51  ;;  %v793_v15 = vpop.f32.mrb[7].mxu0  ;;  %1194 = vmatmul.mubr.bf16.vlgmr.msra.gmra.mrb[0].mxu1 %v1000_v5  ;;  %v940_v19 = vmax.f32 %v788_v9, 0.0 }
 0x12a   : > { %v794_v17 = vadd.f32 %v793_v15, %v4569_v52  ;;  %v941_v21 = vmax.f32 %v790_v11, 0.0 }
 0x12b   : > { %v942_v20 = vmax.f32 %v792_v14, 0.0 }
 0x12c   : > { %v943_v22 = vmax.f32 %v794_v17, 0.0 }
 0x12d   : > { %v1002_v24 = vpack.c.bf16 %v942_v20, %v940_v19 }
 0x12e   : > { %v1003_v27 = vpack.c.bf16 %v943_v22, %v941_v21  ;;  %v797_v28 = vpop.f32.mrb[8].mxu0 }
 0x12f   : > { %v798_v29 = vadd.f32 %v797_v28, %v4565_v51  ;;  %v799_v30 = vpop.f32.mrb[9].mxu0 }
 0x130   : > { %v800_v31 = vadd.f32 %v799_v30, %v4569_v52  ;;  %v801_v32 = vpop.f32.mrb[10].mxu0  ;;  %3657 = vmatprep.mubr.msk.bf16.mxu1 %vm1108_vm4, %v1003_v27 }
 0x131   : > { %v802_v33 = vadd.f32 %v801_v32, %v4565_v51  ;;  %v803_v34 = vpop.f32.mrb[11].mxu0  ;;  %1202 = vmatmul.mubr.bf16.gmra.mrb[4].mxu1 %v1002_v24  ;;  %v944_v38 = vmax.f32 %v798_v29, 0.0 }
 0x132   : > { %v804_v36 = vadd.f32 %v803_v34, %v4569_v52  ;;  %v945_v40 = vmax.f32 %v800_v31, 0.0 }
 0x133   : > { %v946_v39 = vmax.f32 %v802_v33, 0.0 }
 0x134   : > { %v947_v41 = vmax.f32 %v804_v36, 0.0 }
 0x135   : > { %v1004_v42 = vpack.c.bf16 %v946_v39, %v944_v38 }
 0x136   : > { %v1005_v43 = vpack.c.bf16 %v947_v41, %v945_v40  ;;  %v807_v44 = vpop.f32.mrb[12].mxu0 }
 0x137   : > { %v808_v47 = vadd.f32 %v807_v44, %v4565_v51  ;;  %v809_v49 = vpop.f32.mrb[13].mxu0 }
 0x138   : > { %v810_v50 = vadd.f32 %v809_v49, %v4569_v52  ;;  %v811_v53 = vpop.f32.mrb[14].mxu0  ;;  %3658 = vmatprep.mubr.msk.bf16.mxu1 %vm1108_vm4, %v1005_v43 }
 0x139   : > { %v812_v54 = vadd.f32 %v811_v53, %v4565_v51  ;;  %v813_v55 = vpop.f32.mrb[15].mxu0  ;;  %1210 = vmatmul.mubr.bf16.gmra.mrb[8].mxu1 %v1004_v42  ;;  %v948_v57 = vmax.f32 %v808_v47, 0.0 }
 0x13a   : > { %v814_v56 = vadd.f32 %v813_v55, %v4569_v52  ;;  %v949_v59 = vmax.f32 %v810_v50, 0.0 }
 0x13b   : > { %v950_v58 = vmax.f32 %v812_v54, 0.0 }
 0x13c   : > { %v951_v60 = vmax.f32 %v814_v56, 0.0 }
 0x13d   : > { %v1006_v61 = vpack.c.bf16 %v950_v58, %v948_v57 }
 0x13e   : > { %v1007_v62 = vpack.c.bf16 %v951_v60, %v949_v59  ;;  %v817_v63 = vpop.f32.mrb[16].mxu0 }
 0x13f   : > { %v818_v0 = vadd.f32 %v817_v63, %v4565_v51  ;;  %v819_v1 = vpop.f32.mrb[17].mxu0 }
 0x140   : > { %v820_v2 = vadd.f32 %v819_v1, %v4569_v52  ;;  %v821_v3 = vpop.f32.mrb[18].mxu0  ;;  %3659 = vmatprep.mubr.msk.bf16.mxu1 %vm1108_vm4, %v1007_v62 }
 0x141   : > { %v822_v4 = vadd.f32 %v821_v3, %v4565_v51  ;;  %v823_v5 = vpop.f32.mrb[19].mxu0  ;;  %1218 = vmatmul.mubr.bf16.gmra.mrb[12].mxu1 %v1006_v61  ;;  %v952_v7 = vmax.f32 %v818_v0, 0.0 }
 0x142   : > { %v824_v6 = vadd.f32 %v823_v5, %v4569_v52  ;;  %v953_v9 = vmax.f32 %v820_v2, 0.0 }
 0x143   : > { %v954_v8 = vmax.f32 %v822_v4, 0.0 }
 0x144   : > { %v955_v10 = vmax.f32 %v824_v6, 0.0 }
 0x145   : > { %v1008_v11 = vpack.c.bf16 %v954_v8, %v952_v7 }
 0x146   : > { %v1009_v12 = vpack.c.bf16 %v955_v10, %v953_v9  ;;  %v827_v13 = vpop.f32.mrb[20].mxu0 }
 0x147   : > { %v828_v14 = vadd.f32 %v827_v13, %v4565_v51  ;;  %v829_v15 = vpop.f32.mrb[21].mxu0 }
 0x148   : > { %v830_v16 = vadd.f32 %v829_v15, %v4569_v52  ;;  %v831_v17 = vpop.f32.mrb[22].mxu0  ;;  %3660 = vmatprep.mubr.msk.bf16.mxu1 %vm1108_vm4, %v1009_v12 }
 0x149   : > { %v832_v18 = vadd.f32 %v831_v17, %v4565_v51  ;;  %v833_v19 = vpop.f32.mrb[23].mxu0  ;;  %1226 = vmatmul.mubr.bf16.gmra.mrb[16].mxu1 %v1008_v11  ;;  %v956_v21 = vmax.f32 %v828_v14, 0.0 }
 0x14a   : > { %v834_v20 = vadd.f32 %v833_v19, %v4569_v52  ;;  %v957_v23 = vmax.f32 %v830_v16, 0.0 }
 0x14b   : > { %v958_v22 = vmax.f32 %v832_v18, 0.0 }
 0x14c   : > { %v959_v24 = vmax.f32 %v834_v20, 0.0 }
 0x14d   : > { %v1010_v25 = vpack.c.bf16 %v958_v22, %v956_v21 }
 0x14e   : > { %v1011_v26 = vpack.c.bf16 %v959_v24, %v957_v23  ;;  %v837_v27 = vpop.f32.mrb[24].mxu0 }
 0x14f   : > { %v838_v28 = vadd.f32 %v837_v27, %v4565_v51  ;;  %v839_v29 = vpop.f32.mrb[25].mxu0 }
 0x150   : > { %v840_v30 = vadd.f32 %v839_v29, %v4569_v52  ;;  %v841_v31 = vpop.f32.mrb[26].mxu0  ;;  %3661 = vmatprep.mubr.msk.bf16.mxu1 %vm1108_vm4, %v1011_v26 }
 0x151   : > { %v842_v32 = vadd.f32 %v841_v31, %v4565_v51  ;;  %v843_v33 = vpop.f32.mrb[27].mxu0  ;;  %1234 = vmatmul.mubr.bf16.gmra.mrb[20].mxu1 %v1010_v25  ;;  %v960_v35 = vmax.f32 %v838_v28, 0.0 }
 0x152   : > { %v844_v34 = vadd.f32 %v843_v33, %v4569_v52  ;;  %v961_v38 = vmax.f32 %v840_v30, 0.0 }
 0x153   : > { %v962_v36 = vmax.f32 %v842_v32, 0.0 }
 0x154   : > { %v963_v39 = vmax.f32 %v844_v34, 0.0 }
 0x155   : > { %v1012_v40 = vpack.c.bf16 %v962_v36, %v960_v35 }
 0x156   : > { %v1013_v41 = vpack.c.bf16 %v963_v39, %v961_v38  ;;  %v847_v42 = vpop.f32.mrb[28].mxu0 }
 0x157   : > { %v848_v43 = vadd.f32 %v847_v42, %v4565_v51  ;;  %v849_v44 = vpop.f32.mrb[29].mxu0 }
 0x158   : > { %v850_v47 = vadd.f32 %v849_v44, %v4569_v52  ;;  %v851_v49 = vpop.f32.mrb[30].mxu0  ;;  %3662 = vmatprep.mubr.msk.bf16.mxu1 %vm1108_vm4, %v1013_v41 }
 0x159   : > { %v852_v50 = vadd.f32 %v851_v49, %v4565_v51  ;;  %v853_v53 = vpop.f32.mrb[31].mxu0  ;;  %1242 = vmatmul.mubr.bf16.gmra.mrb[24].mxu1 %v1012_v40  ;;  %v964_v55 = vmax.f32 %v848_v43, 0.0 }
 0x15a   : > { %v854_v54 = vadd.f32 %v853_v53, %v4569_v52  ;;  %v965_v57 = vmax.f32 %v850_v47, 0.0 }
 0x15b   : > { %v966_v56 = vmax.f32 %v852_v50, 0.0 }
 0x15c   : > { %v967_v58 = vmax.f32 %v854_v54, 0.0 }
 0x15d   : > { %v1014_v59 = vpack.c.bf16 %v966_v56, %v964_v55 }
 0x15e   : > { %v1015_v60 = vpack.c.bf16 %v967_v58, %v965_v57  ;;  %v857_v61 = vpop.f32.mrb[32].mxu0 }
 0x15f   : > { %v858_v62 = vadd.f32 %v857_v61, %v4565_v51  ;;  %v859_v63 = vpop.f32.mrb[33].mxu0 }
 0x160   : > { %v860_v0 = vadd.f32 %v859_v63, %v4569_v52  ;;  %v861_v1 = vpop.f32.mrb[34].mxu0  ;;  %3663 = vmatprep.mubr.msk.bf16.mxu1 %vm1108_vm4, %v1015_v60 }
 0x161   : > { %v862_v2 = vadd.f32 %v861_v1, %v4565_v51  ;;  %v863_v3 = vpop.f32.mrb[35].mxu0  ;;  %1250 = vmatmul.mubr.bf16.gmra.mrb[28].mxu1 %v1014_v59  ;;  %v968_v5 = vmax.f32 %v858_v62, 0.0 }
 0x162   : > { %v864_v4 = vadd.f32 %v863_v3, %v4569_v52  ;;  %v969_v7 = vmax.f32 %v860_v0, 0.0 }
 0x163   : > { %v970_v6 = vmax.f32 %v862_v2, 0.0 }
 0x164   : > { %v971_v8 = vmax.f32 %v864_v4, 0.0 }
 0x165   : > { %v1016_v9 = vpack.c.bf16 %v970_v6, %v968_v5 }
 0x166   : > { %v1017_v10 = vpack.c.bf16 %v971_v8, %v969_v7  ;;  %v867_v11 = vpop.f32.mrb[36].mxu0 }
 0x167   : > { %v868_v12 = vadd.f32 %v867_v11, %v4565_v51  ;;  %v869_v13 = vpop.f32.mrb[37].mxu0 }
 0x168   : > { %v870_v14 = vadd.f32 %v869_v13, %v4569_v52  ;;  %v871_v15 = vpop.f32.mrb[38].mxu0  ;;  %3664 = vmatprep.mubr.msk.bf16.mxu1 %vm1108_vm4, %v1017_v10 }
 0x169   : > { %v872_v16 = vadd.f32 %v871_v15, %v4565_v51  ;;  %v873_v17 = vpop.f32.mrb[39].mxu0  ;;  %1258 = vmatmul.mubr.bf16.gmra.mrb[32].mxu1 %v1016_v9  ;;  %v972_v19 = vmax.f32 %v868_v12, 0.0 }
 0x16a   : > { %v874_v18 = vadd.f32 %v873_v17, %v4569_v52  ;;  %v973_v21 = vmax.f32 %v870_v14, 0.0 }
 0x16b   : > { %v974_v20 = vmax.f32 %v872_v16, 0.0  ;;  %v4046_v16 = vld [vmem:[%s5888_s6] sm:$0xff]  }
 0x16c   : > { %v975_v22 = vmax.f32 %v874_v18, 0.0  ;;  %3884 = vmatprep.subr.bf16.mxu0 %v4046_v16 }
 0x16d   : > { %v1018_v23 = vpack.c.bf16 %v974_v20, %v972_v19 }
 0x16e   : > { %v1019_v24 = vpack.c.bf16 %v975_v22, %v973_v21  ;;  %v877_v25 = vpop.f32.mrb[40].mxu0 }
 0x16f   : > { %v878_v26 = vadd.f32 %v877_v25, %v4565_v51  ;;  %v879_v27 = vpop.f32.mrb[41].mxu0 }
 0x170   : > { %v880_v28 = vadd.f32 %v879_v27, %v4569_v52  ;;  %v881_v29 = vpop.f32.mrb[42].mxu0  ;;  %3665 = vmatprep.mubr.msk.bf16.mxu1 %vm1108_vm4, %v1019_v24 }
 0x171   : > { %v882_v30 = vadd.f32 %v881_v29, %v4565_v51  ;;  %v883_v31 = vpop.f32.mrb[43].mxu0  ;;  %1266 = vmatmul.mubr.bf16.gmra.mrb[36].mxu1 %v1018_v23  ;;  %v976_v33 = vmax.f32 %v878_v26, 0.0 }
 0x172   : > { %v884_v32 = vadd.f32 %v883_v31, %v4569_v52  ;;  %v977_v35 = vmax.f32 %v880_v28, 0.0 }
 0x173   : > { %v978_v34 = vmax.f32 %v882_v30, 0.0 }
 0x174   : > { %v979_v36 = vmax.f32 %v884_v32, 0.0 }
 0x175   : > { %v1020_v38 = vpack.c.bf16 %v978_v34, %v976_v33 }
 0x176   : > { %v1021_v39 = vpack.c.bf16 %v979_v36, %v977_v35  ;;  %v887_v40 = vpop.f32.mrb[44].mxu0 }
 0x177   : > { %v888_v41 = vadd.f32 %v887_v40, %v4565_v51  ;;  %v889_v42 = vpop.f32.mrb[45].mxu0 }
 0x178   : > { %v890_v43 = vadd.f32 %v889_v42, %v4569_v52  ;;  %v891_v44 = vpop.f32.mrb[46].mxu0  ;;  %3666 = vmatprep.mubr.msk.bf16.mxu1 %vm1108_vm4, %v1021_v39 }
 0x179   : > { %v892_v47 = vadd.f32 %v891_v44, %v4565_v51  ;;  %v893_v49 = vpop.f32.mrb[47].mxu0  ;;  %1274 = vmatmul.mubr.bf16.gmra.mrb[40].mxu1 %v1020_v38  ;;  %v980_v53 = vmax.f32 %v888_v41, 0.0 }
 0x17a   : > { %v894_v50 = vadd.f32 %v893_v49, %v4569_v52  ;;  %v981_v55 = vmax.f32 %v890_v43, 0.0 }
 0x17b   : > { %v982_v54 = vmax.f32 %v892_v47, 0.0 }
 0x17c   : > { %v983_v56 = vmax.f32 %v894_v50, 0.0 }
 0x17d   : > { %v1022_v57 = vpack.c.bf16 %v982_v54, %v980_v53 }
 0x17e   : > { %v1023_v58 = vpack.c.bf16 %v983_v56, %v981_v55  ;;  %v897_v59 = vpop.f32.mrb[48].mxu0 }
 0x17f   : > { %v898_v60 = vadd.f32 %v897_v59, %v4565_v51  ;;  %v899_v61 = vpop.f32.mrb[49].mxu0 }
 0x180   : > { %v900_v62 = vadd.f32 %v899_v61, %v4569_v52  ;;  %v901_v63 = vpop.f32.mrb[50].mxu0  ;;  %3667 = vmatprep.mubr.msk.bf16.mxu1 %vm1108_vm4, %v1023_v58  ;;  %v4686_v58 = vld [vmem:[%s5892_s10 + $0x1] ss:$0 sm:$0xff] }
 0x181   : > { %v902_v0 = vadd.f32 %v901_v63, %v4565_v51  ;;  %v903_v1 = vpop.f32.mrb[51].mxu0  ;;  %1282 = vmatmul.mubr.bf16.gmra.mrb[44].mxu1 %v1022_v57  ;;  %v984_v3 = vmax.f32 %v898_v60, 0.0 }
 0x182   : > { %v904_v2 = vadd.f32 %v903_v1, %v4569_v52  ;;  %v985_v5 = vmax.f32 %v900_v62, 0.0 }
 0x183   : > { %v986_v4 = vmax.f32 %v902_v0, 0.0 }
 0x184   : > { %v987_v6 = vmax.f32 %v904_v2, 0.0  ;;  %v4047_v2 = vld [vmem:[%s5888_s6 + $0x8] sm:$0xff]  }
 0x185   : > { %v1024_v7 = vpack.c.bf16 %v986_v4, %v984_v3 }
 0x186   : > { %v1025_v8 = vpack.c.bf16 %v987_v6, %v985_v5  ;;  %v907_v9 = vpop.f32.mrb[52].mxu0  ;;  %v4053_v6 = vld [vmem:[%s5887_s5] sm:$0xff]  }
 0x187   : > { %v908_v10 = vadd.f32 %v907_v9, %v4565_v51  ;;  %v909_v11 = vpop.f32.mrb[53].mxu0  ;;  %3838 = vmatprep.subr.bf16.mxu1 %v4053_v6 }
 0x188   : > { %v910_v12 = vadd.f32 %v909_v11, %v4569_v52  ;;  %v911_v13 = vpop.f32.mrb[54].mxu0  ;;  %3668 = vmatprep.mubr.msk.bf16.mxu1 %vm1108_vm4, %v1025_v8  ;;  %v4048_v11 = vld [vmem:[%s5888_s6 + $0x10] sm:$0xff]   ;;  %3839 = vmatpush3.bf16.msra.mxu1 %v4053_v6 }
 0x189   : > { %v912_v14 = vadd.f32 %v911_v13, %v4565_v51  ;;  %v913_v15 = vpop.f32.mrb[55].mxu0  ;;  %1290 = vmatmul.mubr.bf16.gmra.mrb[48].mxu1 %v1024_v7  ;;  %v988_v18 = vmax.f32 %v908_v10, 0.0  ;;  %v4054_v7 = vld [vmem:[%s5887_s5 + $0x8] sm:$0xff]  }
 0x18a   : > { %v914_v17 = vadd.f32 %v913_v15, %v4569_v52  ;;  %v989_v20 = vmax.f32 %v910_v12, 0.0  ;;  %3840 = vmatprep.subr.bf16.mxu1 %v4054_v7 }
 0x18b   : > { %v990_v19 = vmax.f32 %v912_v14, 0.0  ;;  %v4055_v14 = vld [vmem:[%s5887_s5 + $0x10] sm:$0xff]  }
 0x18c   : > { %v991_v21 = vmax.f32 %v914_v17, 0.0  ;;  %3841 = vmatpush3.bf16.msra.mxu1 %v4054_v7 }
 0x18d   : > { %v1026_v22 = vpack.c.bf16 %v990_v19, %v988_v18  ;;  %3842 = vmatprep.subr.bf16.mxu1 %v4055_v14 }
 0x18e   : > { %v1027_v23 = vpack.c.bf16 %v991_v21, %v989_v20  ;;  %v917_v24 = vpop.f32.mrb[56].mxu0 }
 0x18f   : > { %v918_v25 = vadd.f32 %v917_v24, %v4565_v51  ;;  %v919_v26 = vpop.f32.mrb[57].mxu0  ;;  %v4050_v24 = vld [vmem:[%s5888_s6 + $0x20] sm:$0xff]  }
 0x190   : > { %v920_v27 = vadd.f32 %v919_v26, %v4569_v52  ;;  %v921_v28 = vpop.f32.mrb[58].mxu0  ;;  %3669 = vmatprep.mubr.msk.bf16.mxu1 %vm1108_vm4, %v1027_v23  ;;  %3843 = vmatpush3.bf16.msra.mxu1 %v4055_v14 }
 0x191   : > { %v922_v29 = vadd.f32 %v921_v28, %v4565_v51  ;;  %v923_v30 = vpop.f32.mrb[59].mxu0  ;;  %1298 = vmatmul.mubr.bf16.gmra.mrb[52].mxu1 %v1026_v22  ;;  %v992_v32 = vmax.f32 %v918_v25, 0.0 }
 0x192   : > { %v924_v31 = vadd.f32 %v923_v30, %v4569_v52  ;;  %v993_v34 = vmax.f32 %v920_v27, 0.0 }
 0x193   : > { %v994_v33 = vmax.f32 %v922_v29, 0.0 }
 0x194   : > { %v995_v35 = vmax.f32 %v924_v31, 0.0 }
 0x195   : > { %v1028_v36 = vpack.c.bf16 %v994_v33, %v992_v32  ;;  %v4051_v32 = vld [vmem:[%s5888_s6 + $0x28] sm:$0xff]  }
 0x196   : > { %v1029_v38 = vpack.c.bf16 %v995_v35, %v993_v34  ;;  %v927_v39 = vpop.f32.mrb[60].mxu0 }
 0x197   : > { %v928_v40 = vadd.f32 %v927_v39, %v4565_v51  ;;  %v929_v41 = vpop.f32.mrb[61].mxu0 }
 0x198   : > { %v930_v42 = vadd.f32 %v929_v41, %v4569_v52  ;;  %v931_v43 = vpop.f32.mrb[62].mxu0  ;;  %3670 = vmatprep.mubr.msk.bf16.mxu1 %vm1108_vm4, %v1029_v38 }
 0x199   : > { %v932_v44 = vadd.f32 %v931_v43, %v4565_v51  ;;  %v933_v47 = vpop.f32.mrb[63].mxu0  ;;  %1306 = vmatmul.mubr.bf16.gmra.mrb[56].mxu1 %v1028_v36  ;;  %v996_v50 = vmax.f32 %v928_v40, 0.0 }
 0x19a   : > { %v934_v49 = vadd.f32 %v933_v47, %v4569_v52  ;;  %v997_v54 = vmax.f32 %v930_v42, 0.0  ;;  %v4052_v42 = vld [vmem:[%s5888_s6 + $0x30] ss:$0 sps:$4 sm:$0x33]  }
 0x19b   : > { %v998_v53 = vmax.f32 %v932_v44, 0.0 }
 0x19c   : > { %v999_v55 = vmax.f32 %v934_v49, 0.0 }
 0x19d   : > { %v1030_v56 = vpack.c.bf16 %v998_v53, %v996_v50 }
 0x19e   : > { %v1031_v57 = vpack.c.bf16 %v999_v55, %v997_v54  ;;  %v2167_v55 = vsel %vm1497_vm5, %v4052_v42, 0 }
 0x1a0   : > { %3671 = vmatprep.mubr.msk.bf16.mxu1 %vm1108_vm4, %v1031_v57 }
 0x1a1   : > { %1314 = vmatmul.mubr.bf16.gmra.mrb[60].mxu1 %v1030_v56 }
 0x1fc   : > { %v1195_v59 = vpop.f32.mrb[0].mxu1 }
 0x1fd   : > { %v1196_v51 = vadd.f32 %v1195_v59, %v4686_v58  ;;  %v1197_v60 = vpop.f32.mrb[1].mxu1 }
 0x1fe   : > { %v1198_v61 = vpop.f32.mrb[2].mxu1 }
 0x1ff   : > { %v1199_v52 = vadd.f32 %v1198_v61, %v4686_v58  ;;  %v1200_v62 = vpop.f32.mrb[3].mxu1  ;;  %v1322_v63 = vmax.f32 %v1196_v51, 0.0 }
 0x201   : > { %v1323_v0 = vmax.f32 %v1199_v52, 0.0  ;;  %v2041_v25 = vsel %vm1448_vm6, %v1322_v63, 0.0 }
 0x203   : > { %v1354_v1 = vpack.c.bf16 %v1323_v0, %v1322_v63  ;;  %v2056_v29 = vsel %vm1448_vm6, %v1323_v0, 0.0 }
 0x204   : > { %v1203_v3 = vpop.f32.mrb[4].mxu1 }
 0x205   : > { %v1204_v4 = vadd.f32 %v1203_v3, %v4686_v58  ;;  %v1205_v5 = vpop.f32.mrb[5].mxu1  ;;  %3687 = vmatmul.mubr.msk.bf16.vlgmr.msra.gmra.mrb[64].mxu0 %vm1448_vm6, %v1354_v1 }
 0x206   : > { %3885 = vmatpush3.bf16.msra.mxu0 %v4046_v16  ;;  %v1206_v8 = vpop.f32.mrb[6].mxu1  ;;  %1546 = vmatprep.mubr.bf16.mxu0 %v5896_v37  ;;  %v4049_v16 = vld [vmem:[%s5888_s6 + $0x18] sm:$0xff]  }
 0x207   : > { %v1207_v9 = vadd.f32 %v1206_v8, %v4686_v58  ;;  %v1208_v10 = vpop.f32.mrb[7].mxu1  ;;  %3886 = vmatprep.subr.bf16.mxu0 %v4047_v2  ;;  %v1324_v12 = vmax.f32 %v1204_v4, 0.0 }
 0x209   : > { %v1325_v13 = vmax.f32 %v1207_v9, 0.0  ;;  %v2071_v43 = vsel %vm1448_vm6, %v1324_v12, 0.0 }
 0x20a   : > { %3887 = vmatpush3.bf16.msra.mxu0 %v4047_v2 }
 0x20b   : > { %v1355_v15 = vpack.c.bf16 %v1325_v13, %v1324_v12  ;;  %3888 = vmatprep.subr.bf16.mxu0 %v4048_v11  ;;  %v2086_v50 = vsel %vm1448_vm6, %v1325_v13, 0.0 }
 0x20c   : > { %v1211_v17 = vpop.f32.mrb[8].mxu1 }
 0x20d   : > { %v1212_v18 = vadd.f32 %v1211_v17, %v4686_v58  ;;  %v1213_v19 = vpop.f32.mrb[9].mxu1  ;;  %3688 = vmatmul.mubr.msk.bf16.gmra.mrb[68].mxu0 %vm1448_vm6, %v1355_v15 }
 0x20e   : > { %v1214_v20 = vpop.f32.mrb[10].mxu1  ;;  %1556 = vmatprep.mubr.bf16.mxu0 %v5896_v37  ;;  %3889 = vmatpush3.bf16.msra.mxu0 %v4048_v11 }
 0x20f   : > { %v1326_v21 = vmax.f32 %v1212_v18, 0.0  ;;  %v1215_v22 = vadd.f32 %v1214_v20, %v4686_v58  ;;  %v1216_v23 = vpop.f32.mrb[11].mxu1  ;;  %3890 = vmatprep.subr.bf16.mxu0 %v4049_v16 }
 0x211   : > { %v2042_v26 = vsel %vm1448_vm6, %v1326_v21, 0.0  ;;  %v1327_v27 = vmax.f32 %v1215_v22, 0.0 }
 0x212   : > { %v2043_v28 = vadd.f32 %v2042_v26, %v2041_v25  ;;  %3891 = vmatpush3.bf16.msra.mxu0 %v4049_v16 }
 0x213   : > { %v1356_v30 = vpack.c.bf16 %v1327_v27, %v1326_v21  ;;  %v2057_v31 = vsel %vm1448_vm6, %v1327_v27, 0.0  ;;  %3892 = vmatprep.subr.bf16.mxu0 %v4050_v24 }
 0x214   : > { %v2058_v33 = vadd.f32 %v2057_v31, %v2056_v29  ;;  %v1219_v34 = vpop.f32.mrb[12].mxu1 }
 0x215   : > { %v1220_v35 = vadd.f32 %v1219_v34, %v4686_v58  ;;  %v1221_v36 = vpop.f32.mrb[13].mxu1  ;;  %3689 = vmatmul.mubr.msk.bf16.gmra.mrb[72].mxu0 %vm1448_vm6, %v1356_v30 }
 0x216   : > { %v1222_v38 = vpop.f32.mrb[14].mxu1  ;;  %1566 = vmatprep.mubr.bf16.mxu0 %v5896_v37  ;;  %3893 = vmatpush3.bf16.msra.mxu0 %v4050_v24 }
 0x217   : > { %v1328_v39 = vmax.f32 %v1220_v35, 0.0  ;;  %v1223_v40 = vadd.f32 %v1222_v38, %v4686_v58  ;;  %v1224_v41 = vpop.f32.mrb[15].mxu1  ;;  %3894 = vmatprep.subr.bf16.mxu0 %v4051_v32 }
 0x219   : > { %v2072_v44 = vsel %vm1448_vm6, %v1328_v39, 0.0  ;;  %v1329_v47 = vmax.f32 %v1223_v40, 0.0 }
 0x21a   : > { %v2073_v49 = vadd.f32 %v2072_v44, %v2071_v43  ;;  %3895 = vmatpush3.bf16.msra.mxu0 %v4051_v32 }
 0x21b   : > { %v1357_v53 = vpack.c.bf16 %v1329_v47, %v1328_v39  ;;  %v2087_v54 = vsel %vm1448_vm6, %v1329_v47, 0.0  ;;  %3957 = vmatprep.subr.msk.bf16.mxu0 %vm1497_vm5, %v4052_v42 }
 0x21c   : > { %v2088_v56 = vadd.f32 %v2087_v54, %v2086_v50  ;;  %v1227_v57 = vpop.f32.mrb[16].mxu1 }
 0x21d   : > { %v1228_v59 = vadd.f32 %v1227_v57, %v4686_v58  ;;  %v1229_v51 = vpop.f32.mrb[17].mxu1  ;;  %3690 = vmatmul.mubr.msk.bf16.gmra.mrb[76].mxu0 %vm1448_vm6, %v1357_v53 }
 0x21e   : > { %v1230_v60 = vpop.f32.mrb[18].mxu1  ;;  %1576 = vmatprep.mubr.bf16.mxu0 %v5896_v37  ;;  %3897 = vmatpush3.bf16.msra.mxu0 %v2167_v55 }
 0x21f   : > { %v1330_v61 = vmax.f32 %v1228_v59, 0.0  ;;  %v1231_v52 = vadd.f32 %v1230_v60, %v4686_v58  ;;  %v1232_v62 = vpop.f32.mrb[19].mxu1 }
 0x221   : > { %v2044_v63 = vsel %vm1448_vm6, %v1330_v61, 0.0  ;;  %v1331_v0 = vmax.f32 %v1231_v52, 0.0 }
 0x222   : > { %v2045_v1 = vadd.f32 %v2044_v63, %v2043_v28 }
 0x223   : > { %v1358_v2 = vpack.c.bf16 %v1331_v0, %v1330_v61  ;;  %v2059_v3 = vsel %vm1448_vm6, %v1331_v0, 0.0 }
 0x224   : > { %v2060_v4 = vadd.f32 %v2059_v3, %v2058_v33  ;;  %v1235_v5 = vpop.f32.mrb[20].mxu1 }
 0x225   : > { %v1236_v6 = vadd.f32 %v1235_v5, %v4686_v58  ;;  %v1237_v7 = vpop.f32.mrb[21].mxu1  ;;  %3691 = vmatmul.mubr.msk.bf16.gmra.mrb[80].mxu0 %vm1448_vm6, %v1358_v2 }
 0x226   : > { %v1238_v8 = vpop.f32.mrb[22].mxu1  ;;  %1586 = vmatprep.mubr.bf16.mxu0 %v5896_v37 }
 0x227   : > { %v1332_v9 = vmax.f32 %v1236_v6, 0.0  ;;  %v1239_v10 = vadd.f32 %v1238_v8, %v4686_v58  ;;  %v1240_v11 = vpop.f32.mrb[23].mxu1 }
 0x229   : > { %v2074_v12 = vsel %vm1448_vm6, %v1332_v9, 0.0  ;;  %v1333_v13 = vmax.f32 %v1239_v10, 0.0 }
 0x22a   : > { %v2075_v14 = vadd.f32 %v2074_v12, %v2073_v49 }
 0x22b   : > { %v1359_v15 = vpack.c.bf16 %v1333_v13, %v1332_v9  ;;  %v2089_v16 = vsel %vm1448_vm6, %v1333_v13, 0.0 }
 0x22c   : > { %v2090_v17 = vadd.f32 %v2089_v16, %v2088_v56  ;;  %v1243_v18 = vpop.f32.mrb[24].mxu1 }
 0x22d   : > { %v1244_v19 = vadd.f32 %v1243_v18, %v4686_v58  ;;  %v1245_v20 = vpop.f32.mrb[25].mxu1  ;;  %3692 = vmatmul.mubr.msk.bf16.gmra.mrb[84].mxu0 %vm1448_vm6, %v1359_v15 }
 0x22e   : > { %v1246_v21 = vpop.f32.mrb[26].mxu1  ;;  %1596 = vmatprep.mubr.bf16.mxu0 %v5896_v37 }
 0x22f   : > { %v1334_v22 = vmax.f32 %v1244_v19, 0.0  ;;  %v1247_v23 = vadd.f32 %v1246_v21, %v4686_v58  ;;  %v1248_v24 = vpop.f32.mrb[27].mxu1 }
 0x231   : > { %v2046_v25 = vsel %vm1448_vm6, %v1334_v22, 0.0  ;;  %v1335_v26 = vmax.f32 %v1247_v23, 0.0 }
 0x232   : > { %v2047_v27 = vadd.f32 %v2046_v25, %v2045_v1 }
 0x233   : > { %v1360_v28 = vpack.c.bf16 %v1335_v26, %v1334_v22  ;;  %v2061_v29 = vsel %vm1448_vm6, %v1335_v26, 0.0 }
 0x234   : > { %v2062_v30 = vadd.f32 %v2061_v29, %v2060_v4  ;;  %v1251_v31 = vpop.f32.mrb[28].mxu1 }
 0x235   : > { %v1252_v32 = vadd.f32 %v1251_v31, %v4686_v58  ;;  %v1253_v33 = vpop.f32.mrb[29].mxu1  ;;  %3693 = vmatmul.mubr.msk.bf16.gmra.mrb[88].mxu0 %vm1448_vm6, %v1360_v28  ;;  %v4056_v31 = vld [vmem:[%s5887_s5 + $0x18] sm:$0xff]  }
 0x236   : > { %v1254_v34 = vpop.f32.mrb[30].mxu1  ;;  %1606 = vmatprep.mubr.bf16.mxu0 %v5896_v37  ;;  %3844 = vmatprep.subr.bf16.mxu1 %v4056_v31 }
 0x237   : > { %v1336_v35 = vmax.f32 %v1252_v32, 0.0  ;;  %v1255_v36 = vadd.f32 %v1254_v34, %v4686_v58  ;;  %v1256_v38 = vpop.f32.mrb[31].mxu1  ;;  %3845 = vmatpush3.bf16.msra.mxu1 %v4056_v31 }
 0x238   : > { %v4057_v38 = vld [vmem:[%s5887_s5 + $0x20] sm:$0xff]  }
 0x239   : > { %v2076_v39 = vsel %vm1448_vm6, %v1336_v35, 0.0  ;;  %v1337_v40 = vmax.f32 %v1255_v36, 0.0  ;;  %3846 = vmatprep.subr.bf16.mxu1 %v4057_v38 }
 0x23a   : > { %v2077_v41 = vadd.f32 %v2076_v39, %v2075_v14 }
 0x23b   : > { %v1361_v42 = vpack.c.bf16 %v1337_v40, %v1336_v35  ;;  %v2091_v43 = vsel %vm1448_vm6, %v1337_v40, 0.0  ;;  %3847 = vmatpush3.bf16.msra.mxu1 %v4057_v38 }
 0x23c   : > { %v2092_v44 = vadd.f32 %v2091_v43, %v2090_v17  ;;  %v1259_v47 = vpop.f32.mrb[32].mxu1 }
 0x23d   : > { %v1260_v49 = vadd.f32 %v1259_v47, %v4686_v58  ;;  %v1261_v50 = vpop.f32.mrb[33].mxu1  ;;  %3694 = vmatmul.mubr.msk.bf16.gmra.mrb[92].mxu0 %vm1448_vm6, %v1361_v42 }
 0x23e   : > { %v1262_v53 = vpop.f32.mrb[34].mxu1  ;;  %1616 = vmatprep.mubr.bf16.mxu0 %v5896_v37  ;;  %v4058_v50 = vld [vmem:[%s5887_s5 + $0x28] sm:$0xff]  }
 0x23f   : > { %v1338_v54 = vmax.f32 %v1260_v49, 0.0  ;;  %v1263_v55 = vadd.f32 %v1262_v53, %v4686_v58  ;;  %v1264_v56 = vpop.f32.mrb[35].mxu1  ;;  %3848 = vmatprep.subr.bf16.mxu1 %v4058_v50 }
 0x240   : > { %3849 = vmatpush3.bf16.msra.mxu1 %v4058_v50 }
 0x241   : > { %v2048_v57 = vsel %vm1448_vm6, %v1338_v54, 0.0  ;;  %v1339_v59 = vmax.f32 %v1263_v55, 0.0 }
 0x242   : > { %v2049_v51 = vadd.f32 %v2048_v57, %v2047_v27 }
 0x243   : > { %v1362_v60 = vpack.c.bf16 %v1339_v59, %v1338_v54  ;;  %v2063_v61 = vsel %vm1448_vm6, %v1339_v59, 0.0  ;;  %v4059_v59 = vld [vmem:[%s5887_s5 + $0x30] ss:$0 sps:$4 sm:$0x33]  }
 0x244   : > { %v2064_v52 = vadd.f32 %v2063_v61, %v2062_v30  ;;  %v1267_v62 = vpop.f32.mrb[36].mxu1  ;;  %3956 = vmatprep.subr.msk.bf16.mxu1 %vm1497_vm5, %v4059_v59 }
 0x245   : > { %v1268_v63 = vadd.f32 %v1267_v62, %v4686_v58  ;;  %v1269_v0 = vpop.f32.mrb[37].mxu1  ;;  %3695 = vmatmul.mubr.msk.bf16.gmra.mrb[96].mxu0 %vm1448_vm6, %v1362_v60  ;;  %v1878_v62 = vsel %vm1497_vm5, %v4059_v59, 0 }
 0x246   : > { %v1270_v1 = vpop.f32.mrb[38].mxu1  ;;  %1626 = vmatprep.mubr.bf16.mxu0 %v5896_v37  ;;  %3851 = vmatpush3.bf16.msra.mxu1 %v1878_v62 }
 0x247   : > { %v1340_v2 = vmax.f32 %v1268_v63, 0.0  ;;  %v1271_v3 = vadd.f32 %v1270_v1, %v4686_v58  ;;  %v1272_v4 = vpop.f32.mrb[39].mxu1 }
 0x249   : > { %v2078_v5 = vsel %vm1448_vm6, %v1340_v2, 0.0  ;;  %v1341_v6 = vmax.f32 %v1271_v3, 0.0 }
 0x24a   : > { %v2079_v7 = vadd.f32 %v2078_v5, %v2077_v41 }
 0x24b   : > { %v1363_v8 = vpack.c.bf16 %v1341_v6, %v1340_v2  ;;  %v2093_v9 = vsel %vm1448_vm6, %v1341_v6, 0.0 }
 0x24c   : > { %v2094_v10 = vadd.f32 %v2093_v9, %v2092_v44  ;;  %v1275_v11 = vpop.f32.mrb[40].mxu1 }
 0x24d   : > { %v1276_v12 = vadd.f32 %v1275_v11, %v4686_v58  ;;  %v1277_v13 = vpop.f32.mrb[41].mxu1  ;;  %3696 = vmatmul.mubr.msk.bf16.gmra.mrb[100].mxu0 %vm1448_vm6, %v1363_v8 }
 0x24e   : > { %v1278_v14 = vpop.f32.mrb[42].mxu1  ;;  %1636 = vmatprep.mubr.bf16.mxu0 %v5896_v37 }
 0x24f   : > { %v1342_v15 = vmax.f32 %v1276_v12, 0.0  ;;  %v1279_v16 = vadd.f32 %v1278_v14, %v4686_v58  ;;  %v1280_v17 = vpop.f32.mrb[43].mxu1 }
 0x251   : > { %v2050_v18 = vsel %vm1448_vm6, %v1342_v15, 0.0  ;;  %v1343_v19 = vmax.f32 %v1279_v16, 0.0 }
 0x252   : > { %v2051_v20 = vadd.f32 %v2050_v18, %v2049_v51 }
 0x253   : > { %v1364_v21 = vpack.c.bf16 %v1343_v19, %v1342_v15  ;;  %v2065_v22 = vsel %vm1448_vm6, %v1343_v19, 0.0 }
 0x254   : > { %v2066_v23 = vadd.f32 %v2065_v22, %v2064_v52  ;;  %v1283_v24 = vpop.f32.mrb[44].mxu1 }
 0x255   : > { %v1284_v25 = vadd.f32 %v1283_v24, %v4686_v58  ;;  %v1285_v26 = vpop.f32.mrb[45].mxu1  ;;  %3697 = vmatmul.mubr.msk.bf16.gmra.mrb[104].mxu0 %vm1448_vm6, %v1364_v21 }
 0x256   : > { %v1286_v27 = vpop.f32.mrb[46].mxu1  ;;  %1646 = vmatprep.mubr.bf16.mxu0 %v5896_v37 }
 0x257   : > { %v1344_v28 = vmax.f32 %v1284_v25, 0.0  ;;  %v1287_v29 = vadd.f32 %v1286_v27, %v4686_v58  ;;  %v1288_v30 = vpop.f32.mrb[47].mxu1 }
 0x259   : > { %v2080_v32 = vsel %vm1448_vm6, %v1344_v28, 0.0  ;;  %v1345_v33 = vmax.f32 %v1287_v29, 0.0 }
 0x25a   : > { %v2081_v34 = vadd.f32 %v2080_v32, %v2079_v7 }
 0x25b   : > { %v1365_v35 = vpack.c.bf16 %v1345_v33, %v1344_v28  ;;  %v2095_v36 = vsel %vm1448_vm6, %v1345_v33, 0.0 }
 0x25c   : > { %v2096_v39 = vadd.f32 %v2095_v36, %v2094_v10  ;;  %v1291_v40 = vpop.f32.mrb[48].mxu1 }
 0x25d   : > { %v1292_v41 = vadd.f32 %v1291_v40, %v4686_v58  ;;  %v1293_v42 = vpop.f32.mrb[49].mxu1  ;;  %3698 = vmatmul.mubr.msk.bf16.gmra.mrb[108].mxu0 %vm1448_vm6, %v1365_v35 }
 0x25e   : > { %v1294_v43 = vpop.f32.mrb[50].mxu1  ;;  %1656 = vmatprep.mubr.bf16.mxu0 %v5896_v37  ;;  %v4835_v42 = vld [vmem:[%s5892_s10 + $0x2] ss:$0 sm:$0xff] }
 0x25f   : > { %v1346_v44 = vmax.f32 %v1292_v41, 0.0  ;;  %v1295_v47 = vadd.f32 %v1294_v43, %v4686_v58  ;;  %v1296_v49 = vpop.f32.mrb[51].mxu1 }
 0x261   : > { %v2052_v53 = vsel %vm1448_vm6, %v1346_v44, 0.0  ;;  %v1347_v54 = vmax.f32 %v1295_v47, 0.0 }
 0x262   : > { %v2053_v55 = vadd.f32 %v2052_v53, %v2051_v20 }
 0x263   : > { %v1366_v56 = vpack.c.bf16 %v1347_v54, %v1346_v44  ;;  %v2067_v57 = vsel %vm1448_vm6, %v1347_v54, 0.0 }
 0x264   : > { %v2068_v51 = vadd.f32 %v2067_v57, %v2066_v23  ;;  %v1299_v60 = vpop.f32.mrb[52].mxu1 }
 0x265   : > { %v1300_v61 = vadd.f32 %v1299_v60, %v4686_v58  ;;  %v1301_v52 = vpop.f32.mrb[53].mxu1  ;;  %3699 = vmatmul.mubr.msk.bf16.gmra.mrb[112].mxu0 %vm1448_vm6, %v1366_v56 }
 0x266   : > { %v1302_v63 = vpop.f32.mrb[54].mxu1  ;;  %1666 = vmatprep.mubr.bf16.mxu0 %v5896_v37 }
 0x267   : > { %v1348_v0 = vmax.f32 %v1300_v61, 0.0  ;;  %v1303_v1 = vadd.f32 %v1302_v63, %v4686_v58  ;;  %v1304_v2 = vpop.f32.mrb[55].mxu1 }
 0x269   : > { %v2082_v3 = vsel %vm1448_vm6, %v1348_v0, 0.0  ;;  %v1349_v4 = vmax.f32 %v1303_v1, 0.0  ;;  %v4061_v1 = vld [vmem:[%s5889_s7 + $0x8] sm:$0xff]  }
 0x26a   : > { %v2083_v5 = vadd.f32 %v2082_v3, %v2081_v34 }
 0x26b   : > { %v1367_v6 = vpack.c.bf16 %v1349_v4, %v1348_v0  ;;  %v2097_v7 = vsel %vm1448_vm6, %v1349_v4, 0.0 }
 0x26c   : > { %v2098_v8 = vadd.f32 %v2097_v7, %v2096_v39  ;;  %v1307_v9 = vpop.f32.mrb[56].mxu1 }
 0x26d   : > { %v1308_v10 = vadd.f32 %v1307_v9, %v4686_v58  ;;  %v1309_v11 = vpop.f32.mrb[57].mxu1  ;;  %3700 = vmatmul.mubr.msk.bf16.gmra.mrb[116].mxu0 %vm1448_vm6, %v1367_v6 }
 0x26e   : > { %v1310_v12 = vpop.f32.mrb[58].mxu1  ;;  %1676 = vmatprep.mubr.bf16.mxu0 %v5896_v37 }
 0x26f   : > { %v1350_v13 = vmax.f32 %v1308_v10, 0.0  ;;  %v1311_v14 = vadd.f32 %v1310_v12, %v4686_v58  ;;  %v1312_v15 = vpop.f32.mrb[59].mxu1  ;;  %v4063_v12 = vld [vmem:[%s5889_s7 + $0x18] sm:$0xff]  }
 0x271   : > { %v2054_v16 = vsel %vm1448_vm6, %v1350_v13, 0.0  ;;  %v1351_v17 = vmax.f32 %v1311_v14, 0.0 }
 0x272   : > { %v2055_v18 = vadd.f32 %v2054_v16, %v2053_v55 }
 0x273   : > { %v1368_v19 = vpack.c.bf16 %v1351_v17, %v1350_v13  ;;  %v2069_v20 = vsel %vm1448_vm6, %v1351_v17, 0.0 }
 0x274   : > { %v2070_v21 = vadd.f32 %v2069_v20, %v2068_v51  ;;  %v1315_v22 = vpop.f32.mrb[60].mxu1  ;;  %v2102_v25 = vmul.f32 0.125, %v2055_v18 }
 0x275   : > { %v1316_v23 = vadd.f32 %v1315_v22, %v4686_v58  ;;  %v1317_v24 = vpop.f32.mrb[61].mxu1  ;;  %3701 = vmatmul.mubr.msk.bf16.gmra.mrb[120].mxu0 %vm1448_vm6, %v1368_v19  ;;  %v4064_v19 = vld [vmem:[%s5889_s7 + $0x20] sm:$0xff]  }
 0x276   : > { %v2103_v26 = vmul.f32 0.125, %v2070_v21  ;;  %v1318_v27 = vpop.f32.mrb[62].mxu1  ;;  %1686 = vmatprep.mubr.bf16.mxu0 %v5896_v37 }
 0x277   : > { %v1352_v28 = vmax.f32 %v1316_v23, 0.0  ;;  %v1319_v29 = vadd.f32 %v1318_v27, %v4686_v58  ;;  %v1320_v30 = vpop.f32.mrb[63].mxu1  ;;  %v4060_v58 = vld [vmem:[%s5889_s7] sm:$0xff]   ;;  %v4065_v23 = vld [vmem:[%s5889_s7 + $0x28] sm:$0xff]  }
 0x278   : > { %v2106_v31 = vpack.c.bf16 %v2103_v26, %v2102_v25  ;;  %3902 = vmatprep.subr.bf16.mxu1 %v4060_v58  ;;  %v4066_v30 = vld [vmem:[%s5889_s7 + $0x30] ss:$0 sps:$4 sm:$0x33]  }
 0x279   : > { %v2084_v32 = vsel %vm1448_vm6, %v1352_v28, 0.0  ;;  %v1353_v33 = vmax.f32 %v1319_v29, 0.0 }
 0x27a   : > { %v2085_v34 = vadd.f32 %v2084_v32, %v2083_v5 }
 0x27b   : > { %v1369_v35 = vpack.c.bf16 %v1353_v33, %v1352_v28  ;;  %v2099_v36 = vsel %vm1448_vm6, %v1353_v33, 0.0 }
 0x27c   : > { %v2100_v38 = vadd.f32 %v2099_v36, %v2098_v8  ;;  %v2104_v39 = vmul.f32 0.125, %v2085_v34  ;;  %v4062_v8 = vld [vmem:[%s5889_s7 + $0x10] sm:$0xff]   ;;  %v2431_v34 = vsel %vm1497_vm5, %v4066_v30, 0 }
 0x27d   : > { %3702 = vmatmul.mubr.msk.bf16.gmra.mrb[124].mxu0 %vm1448_vm6, %v1369_v35 }
 0x27e   : > { %v2105_v40 = vmul.f32 0.125, %v2100_v38  ;;  %3898 = vmatprep.mubr.msk.bf16.mxu0 %vm1448_vm6, %v2106_v31 }
 0x280   : > { %v2107_v41 = vpack.c.bf16 %v2105_v40, %v2104_v39 }
 0x285   : > { %3899 = vmatmul.mubr.msk.bf16.vlgmr.msra.gmra.mrb[128].mxu0 %vm1448_vm6, %v2107_v41 }
 0x286   : > { %3459 = vmatprep.mubr.bf16.mxu0 %v5896_v37 }
 0x2d8   : > { %v1538_v43 = vpop.f32.mrb[64].mxu0 }
 0x2d9   : > { %v1697_v44 = vadd.f32 %v1538_v43, %v4835_v42  ;;  %v4838_v47 = vpop.f32.mrb[65].mxu0 }
 0x2da   : > { %v1542_v49 = vpop.f32.mrb[66].mxu0 }
 0x2db   : > { %v1698_v50 = vadd.f32 %v1542_v49, %v4835_v42  ;;  %v4841_v53 = vpop.f32.mrb[67].mxu0  ;;  %v1729_v54 = vmax.f32 %v1697_v44, 0.0 }
 0x2dd   : > { %v1730_v55 = vmax.f32 %v1698_v50, 0.0 }
 0x2df   : > { %v1761_v56 = vpack.c.bf16 %v1730_v55, %v1729_v54 }
 0x2e0   : > { %v1548_v57 = vpop.f32.mrb[68].mxu0 }
 0x2e1   : > { %v1699_v59 = vadd.f32 %v1548_v57, %v4835_v42  ;;  %v4844_v51 = vpop.f32.mrb[69].mxu0  ;;  %3852 = vmatprep.mubr.msk.bf16.mxu1 %vm1448_vm6, %v1761_v56 }
 0x2e2   : > { %v1552_v60 = vpop.f32.mrb[70].mxu0 }
 0x2e3   : > { %v1700_v61 = vadd.f32 %v1552_v60, %v4835_v42  ;;  %v4848_v52 = vpop.f32.mrb[71].mxu0  ;;  %v1731_v62 = vmax.f32 %v1699_v59, 0.0 }
 0x2e5   : > { %v1732_v63 = vmax.f32 %v1700_v61, 0.0 }
 0x2e7   : > { %v1762_v0 = vpack.c.bf16 %v1732_v63, %v1731_v62 }
 0x2e8   : > { %v1558_v2 = vpop.f32.mrb[72].mxu0 }
 0x2e9   : > { %v1701_v3 = vadd.f32 %v1558_v2, %v4835_v42  ;;  %v4854_v4 = vpop.f32.mrb[73].mxu0  ;;  %3853 = vmatmul.mubr.msk.bf16.vlgmr.msra.gmra.mrb[64].mxu1 %vm1448_vm6, %v1762_v0 }
 0x2ea   : > { %v1562_v5 = vpop.f32.mrb[74].mxu0  ;;  %3903 = vmatpush3.bf16.msra.mxu1 %v4060_v58 }
 0x2eb   : > { %v1702_v6 = vadd.f32 %v1562_v5, %v4835_v42  ;;  %v4858_v7 = vpop.f32.mrb[75].mxu0  ;;  %3904 = vmatprep.subr.bf16.mxu1 %v4061_v1  ;;  %v1733_v9 = vmax.f32 %v1701_v3, 0.0 }
 0x2ed   : > { %v1734_v10 = vmax.f32 %v1702_v6, 0.0 }
 0x2ee   : > { %3905 = vmatpush3.bf16.msra.mxu1 %v4061_v1 }
 0x2ef   : > { %v1763_v11 = vpack.c.bf16 %v1734_v10, %v1733_v9  ;;  %3906 = vmatprep.subr.bf16.mxu1 %v4062_v8 }
 0x2f0   : > { %v1568_v13 = vpop.f32.mrb[76].mxu0 }
 0x2f1   : > { %v1703_v14 = vadd.f32 %v1568_v13, %v4835_v42  ;;  %v4867_v15 = vpop.f32.mrb[77].mxu0  ;;  %3856 = vmatprep.mubr.msk.bf16.mxu1 %vm1448_vm6, %v1763_v11 }
 0x2f2   : > { %v1572_v16 = vpop.f32.mrb[78].mxu0  ;;  %3907 = vmatpush3.bf16.msra.mxu1 %v4062_v8 }
 0x2f3   : > { %v1704_v17 = vadd.f32 %v1572_v16, %v4835_v42  ;;  %v4871_v18 = vpop.f32.mrb[79].mxu0  ;;  %3908 = vmatprep.subr.bf16.mxu1 %v4063_v12  ;;  %v1735_v20 = vmax.f32 %v1703_v14, 0.0 }
 0x2f5   : > { %v1736_v21 = vmax.f32 %v1704_v17, 0.0 }
 0x2f6   : > { %3909 = vmatpush3.bf16.msra.mxu1 %v4063_v12 }
 0x2f7   : > { %v1764_v22 = vpack.c.bf16 %v1736_v21, %v1735_v20  ;;  %3910 = vmatprep.subr.bf16.mxu1 %v4064_v19 }
 0x2f8   : > { %v1578_v24 = vpop.f32.mrb[80].mxu0 }
 0x2f9   : > { %v1705_v25 = vadd.f32 %v1578_v24, %v4835_v42  ;;  %v4880_v26 = vpop.f32.mrb[81].mxu0  ;;  %3857 = vmatmul.mubr.msk.bf16.gmra.mrb[68].mxu1 %vm1448_vm6, %v1764_v22 }
 0x2fa   : > { %v1582_v27 = vpop.f32.mrb[82].mxu0  ;;  %3911 = vmatpush3.bf16.msra.mxu1 %v4064_v19 }
 0x2fb   : > { %v1706_v28 = vadd.f32 %v1582_v27, %v4835_v42  ;;  %v4884_v29 = vpop.f32.mrb[83].mxu0  ;;  %3912 = vmatprep.subr.bf16.mxu1 %v4065_v23  ;;  %v1737_v31 = vmax.f32 %v1705_v25, 0.0 }
 0x2fd   : > { %v1738_v32 = vmax.f32 %v1706_v28, 0.0 }
 0x2fe   : > { %3913 = vmatpush3.bf16.msra.mxu1 %v4065_v23 }
 0x2ff   : > { %v1765_v33 = vpack.c.bf16 %v1738_v32, %v1737_v31  ;;  %3958 = vmatprep.subr.msk.bf16.mxu1 %vm1497_vm5, %v4066_v30 }
 0x300   : > { %v1588_v35 = vpop.f32.mrb[84].mxu0 }
 0x301   : > { %v1707_v36 = vadd.f32 %v1588_v35, %v4835_v42  ;;  %v4892_v38 = vpop.f32.mrb[85].mxu0  ;;  %3860 = vmatprep.mubr.msk.bf16.mxu1 %vm1448_vm6, %v1765_v33 }
 0x302   : > { %v1592_v39 = vpop.f32.mrb[86].mxu0  ;;  %3915 = vmatpush3.bf16.msra.mxu1 %v2431_v34 }
 0x303   : > { %v1708_v40 = vadd.f32 %v1592_v39, %v4835_v42  ;;  %v4896_v41 = vpop.f32.mrb[87].mxu0  ;;  %v1739_v58 = vmax.f32 %v1707_v36, 0.0 }
 0x305   : > { %v1740_v43 = vmax.f32 %v1708_v40, 0.0 }
 0x307   : > { %v1766_v44 = vpack.c.bf16 %v1740_v43, %v1739_v58 }
 0x308   : > { %v1598_v49 = vpop.f32.mrb[88].mxu0 }
 0x309   : > { %v1709_v50 = vadd.f32 %v1598_v49, %v4835_v42  ;;  %v4899_v54 = vpop.f32.mrb[89].mxu0  ;;  %3861 = vmatmul.mubr.msk.bf16.gmra.mrb[72].mxu1 %vm1448_vm6, %v1766_v44 }
 0x30a   : > { %v1602_v55 = vpop.f32.mrb[90].mxu0 }
 0x30b   : > { %v1710_v56 = vadd.f32 %v1602_v55, %v4835_v42  ;;  %v4903_v57 = vpop.f32.mrb[91].mxu0  ;;  %v1741_v59 = vmax.f32 %v1709_v50, 0.0 }
 0x30d   : > { %v1742_v60 = vmax.f32 %v1710_v56, 0.0 }
 0x30f   : > { %v1767_v61 = vpack.c.bf16 %v1742_v60, %v1741_v59 }
 0x310   : > { %v1608_v62 = vpop.f32.mrb[92].mxu0 }
 0x311   : > { %v1711_v63 = vadd.f32 %v1608_v62, %v4835_v42  ;;  %v4906_v0 = vpop.f32.mrb[93].mxu0  ;;  %3864 = vmatprep.mubr.msk.bf16.mxu1 %vm1448_vm6, %v1767_v61 }
 0x312   : > { %v1612_v1 = vpop.f32.mrb[94].mxu0 }
 0x313   : > { %v1712_v2 = vadd.f32 %v1612_v1, %v4835_v42  ;;  %v4910_v3 = vpop.f32.mrb[95].mxu0  ;;  %v1743_v5 = vmax.f32 %v1711_v63, 0.0 }
 0x315   : > { %v1744_v6 = vmax.f32 %v1712_v2, 0.0 }
 0x317   : > { %v1768_v8 = vpack.c.bf16 %v1744_v6, %v1743_v5 }
 0x318   : > { %v1618_v9 = vpop.f32.mrb[96].mxu0 }
 0x319   : > { %v1713_v10 = vadd.f32 %v1618_v9, %v4835_v42  ;;  %v4913_v11 = vpop.f32.mrb[97].mxu0  ;;  %3865 = vmatmul.mubr.msk.bf16.gmra.mrb[76].mxu1 %vm1448_vm6, %v1768_v8 }
 0x31a   : > { %v1622_v12 = vpop.f32.mrb[98].mxu0 }
 0x31b   : > { %v1714_v13 = vadd.f32 %v1622_v12, %v4835_v42  ;;  %v4917_v14 = vpop.f32.mrb[99].mxu0  ;;  %v1745_v16 = vmax.f32 %v1713_v10, 0.0 }
 0x31d   : > { %v1746_v17 = vmax.f32 %v1714_v13, 0.0 }
 0x31f   : > { %v1769_v19 = vpack.c.bf16 %v1746_v17, %v1745_v16 }
 0x320   : > { %v1628_v20 = vpop.f32.mrb[100].mxu0 }
 0x321   : > { %v1715_v21 = vadd.f32 %v1628_v20, %v4835_v42  ;;  %v4920_v22 = vpop.f32.mrb[101].mxu0  ;;  %3868 = vmatprep.mubr.msk.bf16.mxu1 %vm1448_vm6, %v1769_v19 }
 0x322   : > { %v1632_v23 = vpop.f32.mrb[102].mxu0 }
 0x323   : > { %v1716_v24 = vadd.f32 %v1632_v23, %v4835_v42  ;;  %v4924_v25 = vpop.f32.mrb[103].mxu0  ;;  %v1747_v27 = vmax.f32 %v1715_v21, 0.0 }
 0x325   : > { %v1748_v28 = vmax.f32 %v1716_v24, 0.0 }
 0x327   : > { %v1770_v30 = vpack.c.bf16 %v1748_v28, %v1747_v27 }
 0x328   : > { %v1638_v31 = vpop.f32.mrb[104].mxu0 }
 0x329   : > { %v1717_v32 = vadd.f32 %v1638_v31, %v4835_v42  ;;  %v4927_v33 = vpop.f32.mrb[105].mxu0  ;;  %3869 = vmatmul.mubr.msk.bf16.gmra.mrb[80].mxu1 %vm1448_vm6, %v1770_v30 }
 0x32a   : > { %v1642_v34 = vpop.f32.mrb[106].mxu0 }
 0x32b   : > { %v1718_v35 = vadd.f32 %v1642_v34, %v4835_v42  ;;  %v4931_v36 = vpop.f32.mrb[107].mxu0  ;;  %v1749_v39 = vmax.f32 %v1717_v32, 0.0 }
 0x32d   : > { %v1750_v40 = vmax.f32 %v1718_v35, 0.0 }
 0x32f   : > { %v1771_v58 = vpack.c.bf16 %v1750_v40, %v1749_v39 }
 0x330   : > { %v1648_v43 = vpop.f32.mrb[108].mxu0 }
 0x331   : > { %v1719_v44 = vadd.f32 %v1648_v43, %v4835_v42  ;;  %v4934_v49 = vpop.f32.mrb[109].mxu0  ;;  %3872 = vmatprep.mubr.msk.bf16.mxu1 %vm1448_vm6, %v1771_v58 }
 0x332   : > { %v1652_v50 = vpop.f32.mrb[110].mxu0 }
 0x333   : > { %v1720_v55 = vadd.f32 %v1652_v50, %v4835_v42  ;;  %v4938_v56 = vpop.f32.mrb[111].mxu0  ;;  %v1751_v59 = vmax.f32 %v1719_v44, 0.0 }
 0x335   : > { %v1752_v60 = vmax.f32 %v1720_v55, 0.0 }
 0x337   : > { %v1772_v61 = vpack.c.bf16 %v1752_v60, %v1751_v59 }
 0x338   : > { %v1658_v62 = vpop.f32.mrb[112].mxu0 }
 0x339   : > { %v1721_v63 = vadd.f32 %v1658_v62, %v4835_v42  ;;  %v4941_v1 = vpop.f32.mrb[113].mxu0  ;;  %3873 = vmatmul.mubr.msk.bf16.gmra.mrb[84].mxu1 %vm1448_vm6, %v1772_v61 }
 0x33a   : > { %v1662_v2 = vpop.f32.mrb[114].mxu0 }
 0x33b   : > { %v1722_v5 = vadd.f32 %v1662_v2, %v4835_v42  ;;  %v4945_v6 = vpop.f32.mrb[115].mxu0  ;;  %v1753_v8 = vmax.f32 %v1721_v63, 0.0  ;;  %v4973_v2 = vld [vmem:[%s5892_s10 + $0x4] ss:$0 sm:$0xff] }
 0x33d   : > { %v1754_v9 = vmax.f32 %v1722_v5, 0.0 }
 0x33f   : > { %v1773_v10 = vpack.c.bf16 %v1754_v9, %v1753_v8 }
 0x340   : > { %v1668_v12 = vpop.f32.mrb[116].mxu0 }
 0x341   : > { %v1723_v13 = vadd.f32 %v1668_v12, %v4835_v42  ;;  %v4948_v16 = vpop.f32.mrb[117].mxu0  ;;  %3876 = vmatprep.mubr.msk.bf16.mxu1 %vm1448_vm6, %v1773_v10 }
 0x342   : > { %v1672_v17 = vpop.f32.mrb[118].mxu0 }
 0x343   : > { %v1724_v19 = vadd.f32 %v1672_v17, %v4835_v42  ;;  %v4952_v20 = vpop.f32.mrb[119].mxu0  ;;  %v1755_v21 = vmax.f32 %v1723_v13, 0.0 }
 0x345   : > { %v1756_v23 = vmax.f32 %v1724_v19, 0.0 }
 0x347   : > { %v1774_v24 = vpack.c.bf16 %v1756_v23, %v1755_v21 }
 0x348   : > { %v1678_v27 = vpop.f32.mrb[120].mxu0 }
 0x349   : > { %v1725_v28 = vadd.f32 %v1678_v27, %v4835_v42  ;;  %v4955_v30 = vpop.f32.mrb[121].mxu0  ;;  %3877 = vmatmul.mubr.msk.bf16.gmra.mrb[88].mxu1 %vm1448_vm6, %v1774_v24 }
 0x34a   : > { %v1682_v31 = vpop.f32.mrb[122].mxu0 }
 0x34b   : > { %v1726_v32 = vadd.f32 %v1682_v31, %v4835_v42  ;;  %v4959_v34 = vpop.f32.mrb[123].mxu0  ;;  %v1757_v35 = vmax.f32 %v1725_v28, 0.0 }
 0x34d   : > { %v1758_v39 = vmax.f32 %v1726_v32, 0.0 }
 0x34f   : > { %v1775_v40 = vpack.c.bf16 %v1758_v39, %v1757_v35 }
 0x350   : > { %v1688_v58 = vpop.f32.mrb[124].mxu0 }
 0x351   : > { %v1727_v43 = vadd.f32 %v1688_v58, %v4835_v42  ;;  %v4962_v44 = vpop.f32.mrb[125].mxu0  ;;  %3880 = vmatprep.mubr.msk.bf16.mxu1 %vm1448_vm6, %v1775_v40 }
 0x352   : > { %v1692_v50 = vpop.f32.mrb[126].mxu0 }
 0x353   : > { %v1728_v55 = vadd.f32 %v1692_v50, %v4835_v42  ;;  %v4966_v59 = vpop.f32.mrb[127].mxu0  ;;  %v1759_v60 = vmax.f32 %v1727_v43, 0.0 }
 0x355   : > { %v1760_v61 = vmax.f32 %v1728_v55, 0.0 }
 0x357   : > { %v1776_v62 = vpack.c.bf16 %v1760_v61, %v1759_v60 }
 0x358   : > { %v4968_v63 = vpop.f32.mrb[128].mxu0 }
 0x359   : > { %v2220_v5 = vadd.f32 %v4968_v63, %v4844_v51  ;;  %3881 = vmatmul.mubr.msk.bf16.gmra.mrb[92].mxu1 %vm1448_vm6, %v1776_v62  ;;  %v4978_v8 = vpop.f32.mrb[129].mxu0  ;;  %v2224_v42 = vadd.f32 %v4968_v63, %v4867_v15  ;;  %v2228_v9 = vadd.f32 %v4968_v63, %v4892_v38  ;;  %v2232_v10 = vadd.f32 %v4968_v63, %v4906_v0 }
 0x35a   : > { %v4986_v12 = vpop.f32.mrb[130].mxu0  ;;  %v2218_v13 = vadd.f32 %v4978_v8, %v4838_v47  ;;  %v2222_v51 = vadd.f32 %v4978_v8, %v4854_v4  ;;  %v2226_v17 = vadd.f32 %v4978_v8, %v4880_v26  ;;  %v2230_v15 = vadd.f32 %v4978_v8, %v4899_v54 }
 0x35b   : > { %v2221_v38 = vadd.f32 %v4986_v12, %v4848_v52  ;;  %v4998_v19 = vpop.f32.mrb[131].mxu0  ;;  %v2252_v0 = vadd.f32 %v2220_v5, %v4973_v2  ;;  %v2225_v21 = vadd.f32 %v4986_v12, %v4871_v18  ;;  %v2256_v47 = vadd.f32 %v2224_v42, %v4973_v2 }
 0x35c   : > { %v2219_v4 = vadd.f32 %v4998_v19, %v4841_v53  ;;  %v2250_v26 = vadd.f32 %v2218_v13, %v4973_v2  ;;  %v2223_v54 = vadd.f32 %v4998_v19, %v4858_v7  ;;  %v2254_v23 = vadd.f32 %v2222_v51, %v4973_v2 }
 0x35d   : > { %v2253_v52 = vadd.f32 %v2221_v38, %v4973_v2  ;;  %v2284_v24 = vmax.f32 %v2252_v0, 0.0  ;;  %v2257_v27 = vadd.f32 %v2225_v21, %v4973_v2  ;;  %v2288_v28 = vmax.f32 %v2256_v47, 0.0 }
 0x35e   : > { %v2251_v18 = vadd.f32 %v2219_v4, %v4973_v2  ;;  %v2282_v31 = vmax.f32 %v2250_v26, 0.0  ;;  %v2255_v32 = vadd.f32 %v2223_v54, %v4973_v2  ;;  %v2286_v35 = vmax.f32 %v2254_v23, 0.0 }
 0x35f   : > { %v2285_v53 = vmax.f32 %v2253_v52, 0.0  ;;  %v2289_v39 = vmax.f32 %v2257_v27, 0.0  ;;  %v2227_v40 = vadd.f32 %v4998_v19, %v4884_v29  ;;  %v2258_v7 = vadd.f32 %v2226_v17, %v4973_v2 }
 0x360   : > { %v2283_v58 = vmax.f32 %v2251_v18, 0.0  ;;  %v2287_v43 = vmax.f32 %v2255_v32, 0.0  ;;  %v2229_v50 = vadd.f32 %v4986_v12, %v4896_v41  ;;  %v2260_v55 = vadd.f32 %v2228_v9, %v4973_v2 }
 0x361   : > { %v2315_v60 = vpack.c.bf16 %v2285_v53, %v2284_v24  ;;  %v2317_v61 = vpack.c.bf16 %v2289_v39, %v2288_v28  ;;  %v2259_v62 = vadd.f32 %v2227_v40, %v4973_v2  ;;  %v2290_v5 = vmax.f32 %v2258_v7, 0.0 }
 0x362   : > { %v2314_v42 = vpack.c.bf16 %v2283_v58, %v2282_v31  ;;  %v2316_v13 = vpack.c.bf16 %v2287_v43, %v2286_v35  ;;  %v2261_v51 = vadd.f32 %v2229_v50, %v4973_v2  ;;  %v2292_v38 = vmax.f32 %v2260_v55, 0.0 }
 0x363   : > { %v2291_v29 = vmax.f32 %v2259_v62, 0.0  ;;  %v2231_v17 = vadd.f32 %v4998_v19, %v4903_v57  ;;  %v2262_v0 = vadd.f32 %v2230_v15, %v4973_v2  ;;  %v2233_v41 = vadd.f32 %v4986_v12, %v4910_v3 }
 0x364   : > { %3916 = vmatprep.mubr.msk.bf16.mxu1 %vm1448_vm6, %v2314_v42  ;;  %v2293_v9 = vmax.f32 %v2261_v51, 0.0  ;;  %v2264_v21 = vadd.f32 %v2232_v10, %v4973_v2  ;;  %v2234_v47 = vadd.f32 %v4978_v8, %v4913_v11  ;;  %v2235_v4 = vadd.f32 %v4998_v19, %v4917_v14 }
 0x365   : > { %3917 = vmatmul.mubr.msk.bf16.vlgmr.msra.gmra.mrb[96].mxu1 %vm1448_vm6, %v2315_v60  ;;  %v2318_v26 = vpack.c.bf16 %v2291_v29, %v2290_v5  ;;  %v2263_v57 = vadd.f32 %v2231_v17, %v4973_v2  ;;  %v2294_v15 = vmax.f32 %v2262_v0, 0.0  ;;  %v2265_v54 = vadd.f32 %v2233_v41, %v4973_v2 }
 0x366   : > { %3920 = vmatprep.mubr.msk.bf16.mxu1 %vm1448_vm6, %v2316_v13  ;;  %v2319_v3 = vpack.c.bf16 %v2293_v9, %v2292_v38  ;;  %v2296_v23 = vmax.f32 %v2264_v21, 0.0  ;;  %v2266_v10 = vadd.f32 %v2234_v47, %v4973_v2  ;;  %v2267_v52 = vadd.f32 %v2235_v4, %v4973_v2 }
 0x367   : > { %v2295_v11 = vmax.f32 %v2263_v57, 0.0  ;;  %v2297_v24 = vmax.f32 %v2265_v54, 0.0  ;;  %v2236_v14 = vadd.f32 %v4968_v63, %v4920_v22  ;;  %v2237_v27 = vadd.f32 %v4986_v12, %v4924_v25 }
 0x368   : > { %v2298_v28 = vmax.f32 %v2266_v10, 0.0  ;;  %v2299_v18 = vmax.f32 %v2267_v52, 0.0  ;;  %v2238_v31 = vadd.f32 %v4978_v8, %v4927_v33  ;;  %v2239_v32 = vadd.f32 %v4998_v19, %v4931_v36 }
 0x369   : > { %v2320_v35 = vpack.c.bf16 %v2295_v11, %v2294_v15  ;;  %v2321_v53 = vpack.c.bf16 %v2297_v24, %v2296_v23  ;;  %v2268_v39 = vadd.f32 %v2236_v14, %v4973_v2  ;;  %v2269_v40 = vadd.f32 %v2237_v27, %v4973_v2 }
 0x36a   : > { %v2322_v7 = vpack.c.bf16 %v2299_v18, %v2298_v28  ;;  %v2270_v22 = vadd.f32 %v2238_v31, %v4973_v2  ;;  %v2271_v58 = vadd.f32 %v2239_v32, %v4973_v2  ;;  %v2240_v25 = vadd.f32 %v4968_v63, %v4934_v49 }
 0x36b   : > { %v2300_v43 = vmax.f32 %v2268_v39, 0.0  ;;  %v2301_v50 = vmax.f32 %v2269_v40, 0.0  ;;  %v2241_v33 = vadd.f32 %v4986_v12, %v4938_v56  ;;  %v2242_v36 = vadd.f32 %v4978_v8, %v4941_v1 }
 0x36c   : > { %v2302_v55 = vmax.f32 %v2270_v22, 0.0  ;;  %v2303_v60 = vmax.f32 %v2271_v58, 0.0  ;;  %v2272_v62 = vadd.f32 %v2240_v25, %v4973_v2  ;;  %v2243_v5 = vadd.f32 %v4998_v19, %v4945_v6 }
 0x36d   : > { %3921 = vmatmul.mubr.msk.bf16.gmra.mrb[100].mxu1 %vm1448_vm6, %v2317_v61  ;;  %v2323_v42 = vpack.c.bf16 %v2301_v50, %v2300_v43  ;;  %v2273_v49 = vadd.f32 %v2241_v33, %v4973_v2  ;;  %v2274_v13 = vadd.f32 %v2242_v36, %v4973_v2  ;;  %v2244_v56 = vadd.f32 %v4968_v63, %v4948_v16 }
 0x36e   : > { %3924 = vmatprep.mubr.msk.bf16.mxu1 %vm1448_vm6, %v2318_v26  ;;  %v2324_v1 = vpack.c.bf16 %v2303_v60, %v2302_v55  ;;  %v2304_v51 = vmax.f32 %v2272_v62, 0.0  ;;  %v2275_v38 = vadd.f32 %v2243_v5, %v4973_v2  ;;  %v2245_v29 = vadd.f32 %v4986_v12, %v4952_v20 }
 0x36f   : > { %v2305_v6 = vmax.f32 %v2273_v49, 0.0  ;;  %v2306_v17 = vmax.f32 %v2274_v13, 0.0  ;;  %v2276_v61 = vadd.f32 %v2244_v56, %v4973_v2  ;;  %v2246_v0 = vadd.f32 %v4978_v8, %v4955_v30 }
 0x370   : > { %v2307_v41 = vmax.f32 %v2275_v38, 0.0  ;;  %v2277_v9 = vadd.f32 %v2245_v29, %v4973_v2  ;;  %v2247_v16 = vadd.f32 %v4998_v19, %v4959_v34  ;;  %v2248_v21 = vadd.f32 %v4968_v63, %v4962_v44 }
 0x371   : > { %v2325_v47 = vpack.c.bf16 %v2305_v6, %v2304_v51  ;;  %v2308_v4 = vmax.f32 %v2276_v61, 0.0  ;;  %v2278_v20 = vadd.f32 %v2246_v0, %v4973_v2  ;;  %v2249_v26 = vadd.f32 %v4986_v12, %v4966_v59  ;;  %v5169_v61 = vld [vmem:[%s5892_s10 + $0x10] ss:$0 sm:$0xff] }
 0x372   : > { %v2326_v57 = vpack.c.bf16 %v2307_v41, %v2306_v17  ;;  %v2309_v15 = vmax.f32 %v2277_v9, 0.0  ;;  %v2279_v30 = vadd.f32 %v2247_v16, %v4973_v2  ;;  %v2280_v8 = vadd.f32 %v2248_v21, %v4973_v2 }
 0x373   : > { %v2281_v54 = vadd.f32 %v2249_v26, %v4973_v2  ;;  %v2310_v34 = vmax.f32 %v2278_v20, 0.0 }
 0x374   : > { %v2327_v23 = vpack.c.bf16 %v2309_v15, %v2308_v4  ;;  %v2311_v19 = vmax.f32 %v2279_v30, 0.0  ;;  %v2312_v44 = vmax.f32 %v2280_v8, 0.0 }
 0x375   : > { %3925 = vmatmul.mubr.msk.bf16.gmra.mrb[104].mxu1 %vm1448_vm6, %v2319_v3  ;;  %v2313_v63 = vmax.f32 %v2281_v54, 0.0 }
 0x376   : > { %3928 = vmatprep.mubr.msk.bf16.mxu1 %vm1448_vm6, %v2320_v35  ;;  %v2328_v10 = vpack.c.bf16 %v2311_v19, %v2310_v34 }
 0x377   : > { %v2329_v52 = vpack.c.bf16 %v2313_v63, %v2312_v44 }
 0x37d   : > { %3929 = vmatmul.mubr.msk.bf16.gmra.mrb[108].mxu1 %vm1448_vm6, %v2321_v53 }
 0x37e   : > { %3932 = vmatprep.mubr.msk.bf16.mxu1 %vm1448_vm6, %v2322_v7 }
 0x385   : > { %3933 = vmatmul.mubr.msk.bf16.gmra.mrb[112].mxu1 %vm1448_vm6, %v2323_v42 }
 0x386   : > { %3936 = vmatprep.mubr.msk.bf16.mxu1 %vm1448_vm6, %v2324_v1  ;;  %v5162_v1 = vld [vmem:[%s5892_s10 + $0x5] ss:$0 sm:$0xff] }
 0x38d   : > { %3937 = vmatmul.mubr.msk.bf16.gmra.mrb[116].mxu1 %vm1448_vm6, %v2325_v47 }
 0x38e   : > { %3940 = vmatprep.mubr.msk.bf16.mxu1 %vm1448_vm6, %v2326_v57 }
 0x395   : > { %3941 = vmatmul.mubr.msk.bf16.gmra.mrb[120].mxu1 %vm1448_vm6, %v2327_v23 }
 0x396   : > { %3944 = vmatprep.mubr.msk.bf16.mxu1 %vm1448_vm6, %v2328_v10 }
 0x39d   : > { %3945 = vmatmul.mubr.msk.bf16.gmra.mrb[124].mxu1 %vm1448_vm6, %v2329_v52 }
 0x39e   : > { %3388 = vmatprep.mubr.bf16.mxu1 %v5896_v37 }
 0x3bc   : > { %v5095_v59 = vpop.f32.mrb[64].mxu1 }
 0x3bd   : > { %v5097_v2 = vpop.f32.mrb[65].mxu1 }
 0x3be   : > { %v5099_v12 = vpop.f32.mrb[66].mxu1 }
 0x3bf   : > { %v5101_v3 = vpop.f32.mrb[67].mxu1 }
 0x3c0   : > { %5905 = vst [vmem:[#allocation7_spill] sm:$0xff] %v5101_v3 }
 0x3cc   : > { %v5103_v11 = vpop.f32.mrb[68].mxu1 }
 0x3cd   : > { %v5105_v24 = vpop.f32.mrb[69].mxu1 }
 0x3ce   : > { %v5107_v14 = vpop.f32.mrb[70].mxu1 }
 0x3cf   : > { %v5109_v27 = vpop.f32.mrb[71].mxu1 }
 0x3d0   : > { %5906 = vst [vmem:[#allocation8_spill] sm:$0xff] %v5109_v27 }
 0x3dc   : > { %v5111_v28 = vpop.f32.mrb[72].mxu1 }
 0x3dd   : > { %v5113_v18 = vpop.f32.mrb[73].mxu1 }
 0x3de   : > { %5907 = vst [vmem:[#allocation9_spill] sm:$0xff] %v5113_v18  ;;  %v5115_v31 = vpop.f32.mrb[74].mxu1 }
 0x3df   : > { %v5117_v32 = vpop.f32.mrb[75].mxu1 }
 0x3e0   : > { %5908 = vst [vmem:[#allocation10_spill] sm:$0xff] %v5117_v32 }
 0x3ec   : > { %v5119_v35 = vpop.f32.mrb[76].mxu1 }
 0x3ed   : > { %v5121_v53 = vpop.f32.mrb[77].mxu1 }
 0x3ee   : > { %5909 = vst [vmem:[#allocation11_spill] sm:$0xff] %v5121_v53  ;;  %v5123_v39 = vpop.f32.mrb[78].mxu1 }
 0x3ef   : > { %v5125_v40 = vpop.f32.mrb[79].mxu1 }
 0x3f0   : > { %5910 = vst [vmem:[#allocation12_spill] sm:$0xff] %v5125_v40 }
 0x3fc   : > { %v5127_v7 = vpop.f32.mrb[80].mxu1 }
 0x3fd   : > { %5911 = vst [vmem:[#allocation13_spill] sm:$0xff] %v5127_v7  ;;  %v5129_v22 = vpop.f32.mrb[81].mxu1 }
 0x3fe   : > { %5912 = vst [vmem:[#allocation14_spill] sm:$0xff] %v5129_v22  ;;  %v5131_v58 = vpop.f32.mrb[82].mxu1 }
 0x3ff   : > { %v5133_v25 = vpop.f32.mrb[83].mxu1 }
 0x400   : > { %5913 = vst [vmem:[#allocation15_spill] sm:$0xff] %v5133_v25 }
 0x40c   : > { %v5135_v43 = vpop.f32.mrb[84].mxu1 }
 0x40d   : > { %5914 = vst [vmem:[#allocation16_spill] sm:$0xff] %v5135_v43  ;;  %v5137_v50 = vpop.f32.mrb[85].mxu1 }
 0x40e   : > { %5915 = vst [vmem:[#allocation17_spill] sm:$0xff] %v5137_v50  ;;  %v5139_v33 = vpop.f32.mrb[86].mxu1 }
 0x40f   : > { %5916 = vst [vmem:[#allocation18_spill] sm:$0xff] %v5139_v33  ;;  %v5141_v36 = vpop.f32.mrb[87].mxu1 }
 0x410   : > { %5917 = vst [vmem:[#allocation19_spill] sm:$0xff] %v5141_v36 }
 0x41c   : > { %v5143_v55 = vpop.f32.mrb[88].mxu1 }
 0x41d   : > { %5918 = vst [vmem:[#allocation20_spill] sm:$0xff] %v5143_v55  ;;  %v5145_v60 = vpop.f32.mrb[89].mxu1 }
 0x41e   : > { %5919 = vst [vmem:[#allocation21_spill] sm:$0xff] %v5145_v60  ;;  %v5147_v62 = vpop.f32.mrb[90].mxu1 }
 0x41f   : > { %5920 = vst [vmem:[#allocation22_spill] sm:$0xff] %v5147_v62  ;;  %v5149_v5 = vpop.f32.mrb[91].mxu1 }
 0x420   : > { %5921 = vst [vmem:[#allocation23_spill] sm:$0xff] %v5149_v5 }
 0x42c   : > { %v5151_v42 = vpop.f32.mrb[92].mxu1 }
 0x42d   : > { %5922 = vst [vmem:[#allocation24_spill] sm:$0xff] %v5151_v42  ;;  %v5153_v49 = vpop.f32.mrb[93].mxu1 }
 0x42e   : > { %5923 = vst [vmem:[#allocation25_spill] sm:$0xff] %v5153_v49  ;;  %v5155_v13 = vpop.f32.mrb[94].mxu1 }
 0x42f   : > { %5924 = vst [vmem:[#allocation26_spill] sm:$0xff] %v5155_v13  ;;  %v5157_v56 = vpop.f32.mrb[95].mxu1 }
 0x430   : > { %5925 = vst [vmem:[#allocation27_spill] sm:$0xff] %v5157_v56 }
 0x438   : > { %v3918_v51 = vpop.f32.mrb[96].mxu1 }
 0x439   : > { %v2476_v38 = vadd.f32 %v3918_v51, %v5162_v1  ;;  %v2467_v29 = vpop.f32.mrb[97].mxu1 }
 0x43a   : > { %v2468_v6 = vadd.f32 %v2467_v29, %v5162_v1  ;;  %v3919_v17 = vpop.f32.mrb[98].mxu1 }
 0x43b   : > { %v2596_v0 = vmax.f32 %v2476_v38, 0.0  ;;  %v2479_v41 = vadd.f32 %v3919_v17, %v5162_v1  ;;  %v2470_v9 = vpop.f32.mrb[99].mxu1 }
 0x43c   : > { %v2594_v16 = vmax.f32 %v2468_v6, 0.0  ;;  %v2471_v21 = vadd.f32 %v2470_v9, %v5162_v1 }
 0x43d   : > { %v2597_v47 = vmax.f32 %v2479_v41, 0.0  ;;  %v2628_v4 = vmul.f32 %v2596_v0, %v5169_v61 }
 0x43e   : > { %v2595_v20 = vmax.f32 %v2471_v21, 0.0  ;;  %v2626_v15 = vmul.f32 %v2594_v16, %v5169_v61 }
 0x43f   : > { %v2664_v26 = vsel %vm1448_vm6, %v2628_v4, 0.0  ;;  %v2629_v57 = vmul.f32 %v2597_v47, %v5169_v61 }
 0x440   : > { %2665 = vadd.xlane.f32.xlu0 %v2664_v26  ;;  %v3922_v30 = vpop.f32.mrb[100].mxu1  ;;  %v2658_v52 = vsel %vm1448_vm6, %v2626_v15, 0.0  ;;  %v2627_v51 = vmul.f32 %v2595_v20, %v5169_v61 }
 0x441   : > { %v2492_v8 = vadd.f32 %v3922_v30, %v5162_v1  ;;  %v2483_v54 = vpop.f32.mrb[101].mxu1  ;;  %v2667_v23 = vsel %vm1448_vm6, %v2629_v57, 0.0 }
 0x442   : > { %v2484_v34 = vadd.f32 %v2483_v54, %v5162_v1  ;;  %2668 = vadd.xlane.f32.xlu1 %v2667_v23  ;;  %v3923_v19 = vpop.f32.mrb[102].mxu1  ;;  %v2661_v0 = vsel %vm1448_vm6, %v2627_v51, 0.0 }
 0x443   : > { %v2600_v44 = vmax.f32 %v2492_v8, 0.0  ;;  %v2495_v63 = vadd.f32 %v3923_v19, %v5162_v1  ;;  %v2486_v10 = vpop.f32.mrb[103].mxu1 }
 0x444   : > { %v2598_v38 = vmax.f32 %v2484_v34, 0.0  ;;  %v2487_v29 = vadd.f32 %v2486_v10, %v5162_v1  ;;  %2659 = vadd.xlane.f32.xlu0 %v2658_v52 }
 0x445   : > { %v2601_v6 = vmax.f32 %v2495_v63, 0.0  ;;  %v2632_v41 = vmul.f32 %v2600_v44, %v5169_v61 }
 0x446   : > { %v2630_v17 = vmul.f32 %v2598_v38, %v5169_v61  ;;  %v2599_v9 = vmax.f32 %v2487_v29, 0.0 }
 0x447   : > { %v2633_v47 = vmul.f32 %v2601_v6, %v5169_v61  ;;  %v2676_v54 = vsel %vm1448_vm6, %v2632_v41, 0.0 }
 0x448   : > { %v3926_v16 = vpop.f32.mrb[104].mxu1  ;;  %2662 = vadd.xlane.f32.xlu0 %v2661_v0  ;;  %v2670_v21 = vsel %vm1448_vm6, %v2630_v17, 0.0  ;;  %v2631_v44 = vmul.f32 %v2599_v9, %v5169_v61 }
 0x449   : > { %v2508_v4 = vadd.f32 %v3926_v16, %v5162_v1  ;;  %v2499_v20 = vpop.f32.mrb[105].mxu1  ;;  %2671 = vadd.xlane.f32.xlu1 %v2670_v21  ;;  %v2679_v19 = vsel %vm1448_vm6, %v2633_v47, 0.0 }
 0x44a   : > { %v2500_v26 = vadd.f32 %v2499_v20, %v5162_v1  ;;  %v3927_v57 = vpop.f32.mrb[106].mxu1  ;;  %v2673_v6 = vsel %vm1448_vm6, %v2631_v44, 0.0 }
 0x44b   : > { %v2604_v15 = vmax.f32 %v2508_v4, 0.0  ;;  %v2511_v30 = vadd.f32 %v3927_v57, %v5162_v1  ;;  %v2502_v8 = vpop.f32.mrb[107].mxu1 }
 0x44c   : > { %v2602_v23 = vmax.f32 %v2500_v26, 0.0  ;;  %v2503_v34 = vadd.f32 %v2502_v8, %v5162_v1  ;;  %2677 = vadd.xlane.f32.xlu0 %v2676_v54 }
 0x44d   : > { %v2605_v63 = vmax.f32 %v2511_v30, 0.0  ;;  %2680 = vadd.xlane.f32.xlu1 %v2679_v19  ;;  %v2636_v10 = vmul.f32 %v2604_v15, %v5169_v61 }
 0x44e   : > { %v2634_v51 = vmul.f32 %v2602_v23, %v5169_v61  ;;  %v2603_v38 = vmax.f32 %v2503_v34, 0.0 }
 0x44f   : > { %v2688_v52 = vsel %vm1448_vm6, %v2636_v10, 0.0  ;;  %v2637_v17 = vmul.f32 %v2605_v63, %v5169_v61 }
 0x450   : > { %v3930_v29 = vpop.f32.mrb[108].mxu1  ;;  %2689 = vadd.xlane.f32.xlu0 %v2688_v52  ;;  %v2682_v20 = vsel %vm1448_vm6, %v2634_v51, 0.0  ;;  %v2635_v30 = vmul.f32 %v2603_v38, %v5169_v61 }
 0x451   : > { %v2524_v0 = vadd.f32 %v3930_v29, %v5162_v1  ;;  %v2515_v41 = vpop.f32.mrb[109].mxu1  ;;  %2674 = vadd.xlane.f32.xlu1 %v2673_v6  ;;  %v2691_v15 = vsel %vm1448_vm6, %v2637_v17, 0.0 }
 0x452   : > { %v2516_v9 = vadd.f32 %v2515_v41, %v5162_v1  ;;  %v3931_v16 = vpop.f32.mrb[110].mxu1  ;;  %v2685_v63 = vsel %vm1448_vm6, %v2635_v30, 0.0 }
 0x453   : > { %v2608_v21 = vmax.f32 %v2524_v0, 0.0  ;;  %v2527_v47 = vadd.f32 %v3931_v16, %v5162_v1  ;;  %v2518_v4 = vpop.f32.mrb[111].mxu1 }
 0x454   : > { %v2606_v26 = vmax.f32 %v2516_v9, 0.0  ;;  %v2519_v57 = vadd.f32 %v2518_v4, %v5162_v1  ;;  %2683 = vadd.xlane.f32.xlu0 %v2682_v20 }
 0x455   : > { %v2609_v8 = vmax.f32 %v2527_v47, 0.0  ;;  %2692 = vadd.xlane.f32.xlu1 %v2691_v15  ;;  %v2640_v54 = vmul.f32 %v2608_v21, %v5169_v61 }
 0x456   : > { %v2638_v34 = vmul.f32 %v2606_v26, %v5169_v61  ;;  %v2607_v19 = vmax.f32 %v2519_v57, 0.0 }
 0x457   : > { %v2700_v23 = vsel %vm1448_vm6, %v2640_v54, 0.0  ;;  %v2641_v10 = vmul.f32 %v2609_v8, %v5169_v61 }
 0x458   : > { %v3934_v44 = vpop.f32.mrb[112].mxu1  ;;  %2701 = vadd.xlane.f32.xlu0 %v2700_v23  ;;  %v2694_v41 = vsel %vm1448_vm6, %v2638_v34, 0.0  ;;  %v2639_v47 = vmul.f32 %v2607_v19, %v5169_v61 }
 0x459   : > { %v2540_v52 = vadd.f32 %v3934_v44, %v5162_v1  ;;  %v2531_v51 = vpop.f32.mrb[113].mxu1  ;;  %2686 = vadd.xlane.f32.xlu1 %v2685_v63  ;;  %v2703_v21 = vsel %vm1448_vm6, %v2641_v10, 0.0 }
 0x45a   : > { %v2532_v38 = vadd.f32 %v2531_v51, %v5162_v1  ;;  %v3935_v29 = vpop.f32.mrb[114].mxu1  ;;  %v2697_v8 = vsel %vm1448_vm6, %v2639_v47, 0.0 }
 0x45b   : > { %v2612_v6 = vmax.f32 %v2540_v52, 0.0  ;;  %v2543_v17 = vadd.f32 %v3935_v29, %v5162_v1  ;;  %v2534_v0 = vpop.f32.mrb[115].mxu1 }
 0x45c   : > { %v2610_v9 = vmax.f32 %v2532_v38, 0.0  ;;  %v2535_v16 = vadd.f32 %v2534_v0, %v5162_v1  ;;  %2695 = vadd.xlane.f32.xlu0 %v2694_v41 }
 0x45d   : > { %v2613_v4 = vmax.f32 %v2543_v17, 0.0  ;;  %2704 = vadd.xlane.f32.xlu1 %v2703_v21  ;;  %v2644_v20 = vmul.f32 %v2612_v6, %v5169_v61 }
 0x45e   : > { %v2642_v57 = vmul.f32 %v2610_v9, %v5169_v61  ;;  %v2611_v15 = vmax.f32 %v2535_v16, 0.0 }
 0x45f   : > { %v2712_v26 = vsel %vm1448_vm6, %v2644_v20, 0.0  ;;  %v2645_v54 = vmul.f32 %v2613_v4, %v5169_v61 }
 0x460   : > { %v3938_v30 = vpop.f32.mrb[116].mxu1  ;;  %2713 = vadd.xlane.f32.xlu0 %v2712_v26  ;;  %v2706_v51 = vsel %vm1448_vm6, %v2642_v57, 0.0  ;;  %v2643_v17 = vmul.f32 %v2611_v15, %v5169_v61 }
 0x461   : > { %v2556_v23 = vadd.f32 %v3938_v30, %v5162_v1  ;;  %v2547_v34 = vpop.f32.mrb[117].mxu1  ;;  %2698 = vadd.xlane.f32.xlu1 %v2697_v8  ;;  %v2715_v6 = vsel %vm1448_vm6, %v2645_v54, 0.0 }
 0x462   : > { %v2548_v19 = vadd.f32 %v2547_v34, %v5162_v1  ;;  %v3939_v44 = vpop.f32.mrb[118].mxu1  ;;  %v2709_v4 = vsel %vm1448_vm6, %v2643_v17, 0.0 }
 0x463   : > { %v2616_v63 = vmax.f32 %v2556_v23, 0.0  ;;  %v2559_v10 = vadd.f32 %v3939_v44, %v5162_v1  ;;  %v2550_v52 = vpop.f32.mrb[119].mxu1 }
 0x464   : > { %v2614_v38 = vmax.f32 %v2548_v19, 0.0  ;;  %v2551_v29 = vadd.f32 %v2550_v52, %v5162_v1  ;;  %2707 = vadd.xlane.f32.xlu0 %v2706_v51 }
 0x465   : > { %v2617_v0 = vmax.f32 %v2559_v10, 0.0  ;;  %2716 = vadd.xlane.f32.xlu1 %v2715_v6  ;;  %v2648_v41 = vmul.f32 %v2616_v63, %v5169_v61 }
 0x466   : > { %v2646_v16 = vmul.f32 %v2614_v38, %v5169_v61  ;;  %v2615_v21 = vmax.f32 %v2551_v29, 0.0 }
 0x467   : > { %v2724_v9 = vsel %vm1448_vm6, %v2648_v41, 0.0  ;;  %v2649_v20 = vmul.f32 %v2617_v0, %v5169_v61 }
 0x468   : > { %v3942_v47 = vpop.f32.mrb[120].mxu1  ;;  %2725 = vadd.xlane.f32.xlu0 %v2724_v9  ;;  %v2718_v8 = vsel %vm1448_vm6, %v2646_v16, 0.0  ;;  %v2647_v19 = vmul.f32 %v2615_v21, %v5169_v61 }
 0x469   : > { %v2563_v26 = vpop.f32.mrb[121].mxu1  ;;  %2710 = vadd.xlane.f32.xlu1 %v2709_v4  ;;  %v2727_v34 = vsel %vm1448_vm6, %v2649_v20, 0.0  ;;  %v2572_v10 = vadd.f32 %v3942_v47, %v5162_v1 }
 0x46a   : > { %v2564_v57 = vadd.f32 %v2563_v26, %v5162_v1  ;;  %v3943_v15 = vpop.f32.mrb[122].mxu1  ;;  %v2721_v51 = vsel %vm1448_vm6, %v2647_v19, 0.0 }
 0x46b   : > { %v2566_v30 = vpop.f32.mrb[123].mxu1  ;;  %v2575_v0 = vadd.f32 %v3943_v15, %v5162_v1  ;;  %v2620_v4 = vmax.f32 %v2572_v10, 0.0 }
 0x46c   : > { %v2618_v54 = vmax.f32 %v2564_v57, 0.0  ;;  %v2567_v23 = vadd.f32 %v2566_v30, %v5162_v1  ;;  %2719 = vadd.xlane.f32.xlu0 %v2718_v8 }
 0x46d   : > { %2728 = vadd.xlane.f32.xlu1 %v2727_v34 }
 0x46e   : > { %v2619_v44 = vmax.f32 %v2567_v23, 0.0  ;;  %v2650_v63 = vmul.f32 %v2618_v54, %v5169_v61  ;;  %v2621_v54 = vmax.f32 %v2575_v0, 0.0 }
 0x470   : > { %v3946_v52 = vpop.f32.mrb[124].mxu1  ;;  %v2730_v38 = vsel %vm1448_vm6, %v2650_v63, 0.0  ;;  %v2651_v29 = vmul.f32 %v2619_v44, %v5169_v61  ;;  %v2652_v63 = vmul.f32 %v2620_v4, %v5169_v61  ;;  %v2653_v10 = vmul.f32 %v2621_v54, %v5169_v61 }
 0x471   : > { %v2588_v6 = vadd.f32 %v3946_v52, %v5162_v1  ;;  %v2579_v17 = vpop.f32.mrb[125].mxu1  ;;  %2722 = vadd.xlane.f32.xlu1 %v2721_v51  ;;  %2731 = vadd.xlane.f32.xlu0 %v2730_v38 }
 0x472   : > { %v2580_v41 = vadd.f32 %v2579_v17, %v5162_v1  ;;  %v3947_v9 = vpop.f32.mrb[126].mxu1  ;;  %v2733_v57 = vsel %vm1448_vm6, %v2651_v29, 0.0  ;;  %v2736_v52 = vsel %vm1448_vm6, %v2652_v63, 0.0  ;;  %v2739_v51 = vsel %vm1448_vm6, %v2653_v10, 0.0 }
 0x473   : > { %v2624_v16 = vmax.f32 %v2588_v6, 0.0  ;;  %v2591_v21 = vadd.f32 %v3947_v9, %v5162_v1  ;;  %v2582_v47 = vpop.f32.mrb[127].mxu1 }
 0x474   : > { %v2622_v20 = vmax.f32 %v2580_v41, 0.0  ;;  %v2583_v26 = vadd.f32 %v2582_v47, %v5162_v1 }
 0x475   : > { %v2625_v30 = vmax.f32 %v2591_v21, 0.0  ;;  %2734 = vadd.xlane.f32.xlu1 %v2733_v57  ;;  %v2656_v8 = vmul.f32 %v2624_v16, %v5169_v61 }
 0x476   : > { %v2623_v23 = vmax.f32 %v2583_v26, 0.0  ;;  %v2654_v15 = vmul.f32 %v2622_v20, %v5169_v61 }
 0x477   : > { %v2657_v34 = vmul.f32 %v2625_v30, %v5169_v61  ;;  %v2748_v38 = vsel %vm1448_vm6, %v2656_v8, 0.0 }
 0x478   : > { %v2742_v19 = vsel %vm1448_vm6, %v2654_v15, 0.0  ;;  %v2655_v44 = vmul.f32 %v2623_v23, %v5169_v61 }
 0x479   : > { %2743 = vadd.xlane.f32.xlu0 %v2742_v19  ;;  %v2751_v29 = vsel %vm1448_vm6, %v2657_v34, 0.0 }
 0x47a   : > { %v2745_v1 = vsel %vm1448_vm6, %v2655_v44, 0.0 }
 0x47b   : > { %2746 = vadd.xlane.f32.xlu1 %v2745_v1 }
 0x47d   : > { %2737 = vadd.xlane.f32.xlu0 %v2736_v52  ;;  %v5274_v52 = vld [vmem:[%s5892_s10 + $0x6] ss:$0 sm:$0xff] }
 0x47f   : > { %2740 = vadd.xlane.f32.xlu1 %v2739_v51 }
 0x481   : > { %2749 = vadd.xlane.f32.xlu0 %v2748_v38 }
 0x483   : > { %2752 = vadd.xlane.f32.xlu1 %v2751_v29 }
 0x4cd   : > { %v2666_v6 = vpop.xlane.xlu0 %2665 }
 0x4ce   : > { %v5289_v37 = vadd.f32 %v2666_v6, %v5274_v52 }
 0x4cf   : > { %v2669_v0 = vpop.xlane.xlu1 %2668 }
 0x4d0   : > { %v5292_v45 = vadd.f32 %v2669_v0, %v5274_v52  ;;  %v2817_v5 = vsel %vm2786_vm7, %v5289_v37, -inf }
 0x4d1   : > { %v2660_v17 = vpop.xlane.xlu0 %2659 }
 0x4d2   : > { %v5280_v38 = vadd.f32 %v2660_v17, %v5274_v52 }
 0x4d4   : > { %v2787_v6 = vsel %vm2786_vm7, %v5280_v38, -inf }
 0x4d5   : > { %v2663_v41 = vpop.xlane.xlu0 %2662 }
 0x4d6   : > { %v2672_v9 = vpop.xlane.xlu1 %2671 }
 0x4d7   : > { %v5277_v51 = vadd.f32 %v2672_v9, %v5274_v52 }
 0x4d9   : > { %v2678_v16 = vpop.xlane.xlu0 %2677  ;;  %v2788_v9 = vsel %vm2786_vm7, %v5277_v51, -inf }
 0x4da   : > { %v2681_v61 = vpop.xlane.xlu1 %2680  ;;  %v5286_v46 = vadd.f32 %v2678_v16, %v5274_v52  ;;  %v2789_v56 = vmax.f32 %v2787_v6, %v2788_v9 }
 0x4db   : > { %v5303_v55 = vadd.f32 %v2681_v61, %v5274_v52 }
 0x4dd   : > { %v2690_v21 = vpop.xlane.xlu0 %2689 }
 0x4de   : > { %v2675_v47 = vpop.xlane.xlu1 %2674  ;;  %v5308_v16 = vadd.f32 %v2690_v21, %v5274_v52  ;;  %v2832_v21 = vsel %vm2786_vm7, %v5292_v45, -inf }
 0x4df   : > { %v5318_v61 = vadd.f32 %v2675_v47, %v5274_v52  ;;  %v2833_v47 = vsel %vm2786_vm7, %v5303_v55, -inf }
 0x4e0   : > { %v2820_v32 = vsel %vm2786_vm7, %v5308_v16, -inf }
 0x4e1   : > { %v2684_v4 = vpop.xlane.xlu0 %2683  ;;  %v2803_v13 = vsel %vm2786_vm7, %v5318_v61, -inf }
 0x4e2   : > { %v2693_v20 = vpop.xlane.xlu1 %2692  ;;  %v5283_v29 = vadd.f32 %v2684_v4, %v5274_v52  ;;  %v5300_v4 = vadd.f32 %v2663_v41, %v5274_v52  ;;  %v2818_v41 = vsel %vm2786_vm7, %v5286_v46, -inf }
 0x4e3   : > { %v2819_v40 = vmax.f32 %v2817_v5, %v2818_v41  ;;  %v5346_v3 = vadd.f32 %v2693_v20, %v5274_v52  ;;  %v2834_v5 = vmax.f32 %v2832_v21, %v2833_v47 }
 0x4e4   : > { %v2790_v0 = vsel %vm2786_vm7, %v5283_v29, -inf  ;;  %v2802_v9 = vsel %vm2786_vm7, %v5300_v4, -inf }
 0x4e5   : > { %v2702_v26 = vpop.xlane.xlu0 %2701  ;;  %v2791_v6 = vmax.f32 %v2789_v56, %v2790_v0  ;;  %v2821_v49 = vmax.f32 %v2819_v40, %v2820_v32  ;;  %v2835_v32 = vsel %vm2786_vm7, %v5346_v3, -inf }
 0x4e6   : > { %v2687_v57 = vpop.xlane.xlu1 %2686  ;;  %v5352_v0 = vadd.f32 %v2702_v26, %v5274_v52 }
 0x4e7   : > { %v5334_v25 = vadd.f32 %v2687_v57, %v5274_v52 }
 0x4e9   : > { %v2696_v30 = vpop.xlane.xlu0 %2695  ;;  %v2805_v20 = vsel %vm2786_vm7, %v5334_v25, -inf }
 0x4ea   : > { %v2705_v54 = vpop.xlane.xlu1 %2704  ;;  %v5297_v17 = vadd.f32 %v2696_v30, %v5274_v52 }
 0x4eb   : > { %v5365_v21 = vadd.f32 %v2705_v54, %v5274_v52 }
 0x4ec   : > { %v2792_v7 = vsel %vm2786_vm7, %v5297_v17, -inf }
 0x4ed   : > { %v2714_v8 = vpop.xlane.xlu0 %2713  ;;  %v2793_v56 = vmax.f32 %v2791_v6, %v2792_v7 }
 0x4ee   : > { %v2699_v23 = vpop.xlane.xlu1 %2698  ;;  %v5368_v26 = vadd.f32 %v2714_v8, %v5274_v52 }
 0x4ef   : > { %v5349_v57 = vadd.f32 %v2699_v23, %v5274_v52  ;;  %v2804_v23 = vmax.f32 %v2802_v9, %v2803_v13  ;;  %v2822_v13 = vsel %vm2786_vm7, %v5352_v0, -inf }
 0x4f0   : > { %v2823_v53 = vmax.f32 %v2821_v49, %v2822_v13 }
 0x4f1   : > { %v2708_v15 = vpop.xlane.xlu0 %2707  ;;  %v2806_v54 = vmax.f32 %v2804_v23, %v2805_v20 }
 0x4f2   : > { %v5265_v34 = vpop.xlane.xlu1 %2716  ;;  %v5313_v43 = vadd.f32 %v2708_v15, %v5274_v52 }
 0x4f3   : > { %v5383_v8 = vadd.f32 %v5265_v34, %v5274_v52  ;;  %v2824_v34 = vsel %vm2786_vm7, %v5368_v26, -inf }
 0x4f4   : > { %v2794_v27 = vsel %vm2786_vm7, %v5313_v43, -inf }
 0x4f5   : > { %v5267_v19 = vpop.xlane.xlu0 %2725  ;;  %v2795_v60 = vmax.f32 %v2793_v56, %v2794_v27  ;;  %v2807_v27 = vsel %vm2786_vm7, %v5349_v57, -inf }
 0x4f6   : > { %v2711_v44 = vpop.xlane.xlu1 %2710  ;;  %v5389_v6 = vadd.f32 %v5267_v19, %v5274_v52  ;;  %v2808_v20 = vmax.f32 %v2806_v54, %v2807_v27  ;;  %v2839_v27 = vsel %vm2786_vm7, %v5383_v8, -inf }
 0x4f7   : > { %v5362_v7 = vadd.f32 %v2711_v44, %v5274_v52 }
 0x4f8   : > { %v2826_v33 = vsel %vm2786_vm7, %v5389_v6, -inf }
 0x4f9   : > { %v2720_v1 = vpop.xlane.xlu0 %2719 }
 0x4fa   : > { %v5269_v63 = vpop.xlane.xlu1 %2728  ;;  %v5327_v15 = vadd.f32 %v2720_v1, %v5274_v52 }
 0x4fb   : > { %v5402_v23 = vadd.f32 %v5269_v63, %v5274_v52 }
 0x4fc   : > { %v2796_v41 = vsel %vm2786_vm7, %v5327_v15, -inf }
 0x4fd   : > { %v2797_v40 = vmax.f32 %v2795_v60, %v2796_v41  ;;  %v2809_v60 = vsel %vm2786_vm7, %v5362_v7, -inf  ;;  %v2837_v41 = vsel %vm2786_vm7, %v5365_v21, -inf  ;;  %v2841_v49 = vsel %vm2786_vm7, %v5402_v23, -inf }
 0x4fe   : > { %v2723_v10 = vpop.xlane.xlu1 %2722  ;;  %v2732_v48 = vpop.xlane.xlu0 %2731  ;;  %v2810_v54 = vmax.f32 %v2808_v20, %v2809_v60 }
 0x4ff   : > { %v5341_v1 = vadd.f32 %v2732_v48, %v5274_v52  ;;  %v5377_v44 = vadd.f32 %v2723_v10, %v5274_v52 }
 0x501   : > { %v2811_v50 = vsel %vm2786_vm7, %v5377_v44, -inf }
 0x502   : > { %v2735_v42 = vpop.xlane.xlu1 %2734 }
 0x503   : > { %v5394_v56 = vadd.f32 %v2735_v42, %v5274_v52 }
 0x506   : > { %v2744_v30 = vpop.xlane.xlu0 %2743 }
 0x507   : > { %v5357_v48 = vadd.f32 %v2744_v30, %v5274_v52  ;;  %v2798_v30 = vsel %vm2786_vm7, %v5341_v1, -inf }
 0x508   : > { %v2747_v36 = vpop.xlane.xlu1 %2746  ;;  %v2799_v10 = vmax.f32 %v2797_v40, %v2798_v30  ;;  %v2836_v40 = vmax.f32 %v2834_v5, %v2835_v32  ;;  %v2825_v5 = vmax.f32 %v2823_v53, %v2824_v34  ;;  %v2812_v32 = vmax.f32 %v2810_v54, %v2811_v50 }
 0x509   : > { %v2800_v9 = vsel %vm2786_vm7, %v5357_v48, -inf  ;;  %v5409_v42 = vadd.f32 %v2747_v36, %v5274_v52 }
 0x50a   : > { %v2738_v62 = vpop.xlane.xlu0 %2737  ;;  %v5406_v22 = vmax.f32 %v2799_v10, %v2800_v9  ;;  %v2813_v9 = vsel %vm2786_vm7, %v5394_v56, -inf  ;;  %v2827_v18 = vmax.f32 %v2825_v5, %v2826_v33 }
 0x50b   : > { %v5412_v30 = vadd.f32 %v2738_v62, %v5274_v52  ;;  %v2838_v62 = vmax.f32 %v2836_v40, %v2837_v41  ;;  %v2815_v60 = vsel %vm2786_vm7, %v5409_v42, -inf  ;;  %v2814_v41 = vmax.f32 %v2812_v32, %v2813_v9 }
 0x50c   : > { %v2741_v47 = vpop.xlane.xlu1 %2740  ;;  %v2851_v13 = vsub.f32 %v5277_v51, %v5406_v22  ;;  %v2855_v53 = vsub.f32 %v5283_v29, %v5406_v22  ;;  %v2859_v50 = vsub.f32 %v5297_v17, %v5406_v22 }
 0x50d   : > { %v5421_v10 = vadd.f32 %v2741_v47, %v5274_v52  ;;  %v2828_v20 = vsel %vm2786_vm7, %v5412_v30, -inf  ;;  %v5447_v54 = vmax.f32 %v2814_v41, %v2815_v60 }
 0x50e   : > { %v2750_v19 = vpop.xlane.xlu0 %2749  ;;  %v2829_v33 = vmax.f32 %v2827_v18, %v2828_v20  ;;  %v2887_v29 = vmul.f32 1.442695, %v2851_v13  ;;  %v2895_v9 = vmul.f32 1.442695, %v2855_v53 }
 0x50f   : > { %v5424_v36 = vadd.f32 %v2750_v19, %v5274_v52  ;;  %v2840_v19 = vmax.f32 %v2838_v62, %v2839_v27  ;;  %v2843_v51 = vsel %vm2786_vm7, %v5421_v10, -inf  ;;  %v2867_v27 = vsub.f32 %v5327_v15, %v5406_v22 }
 0x510   : > { %v2753_v63 = vpop.xlane.xlu1 %2752  ;;  %v2848_v18 = vsub.f32 %v5300_v4, %v5447_v54  ;;  %4080 = vpow2.f32 %v2887_v29  ;;  %v2852_v60 = vsub.f32 %v5318_v61, %v5447_v54 }
 0x511   : > { %v5435_v47 = vadd.f32 %v2753_v63, %v5274_v52  ;;  %v2830_v34 = vsel %vm2786_vm7, %v5424_v36, -inf  ;;  %v2842_v40 = vmax.f32 %v2840_v19, %v2841_v49  ;;  %v2863_v52 = vsub.f32 %v5313_v43, %v5406_v22 }
 0x512   : > { %v2871_v63 = vsub.f32 %v5341_v1, %v5406_v22  ;;  %v5455_v5 = vmax.f32 %v2829_v33, %v2830_v34  ;;  %v2875_v43 = vsub.f32 %v5357_v48, %v5406_v22  ;;  %v2903_v49 = vmul.f32 1.442695, %v2859_v50 }
 0x513   : > { %v2845_v17 = vsel %vm2786_vm7, %v5435_v47, -inf  ;;  %v2844_v62 = vmax.f32 %v2842_v40, %v2843_v51  ;;  %v2911_v32 = vmul.f32 1.442695, %v2863_v52  ;;  %v2919_v13 = vmul.f32 1.442695, %v2867_v27 }
 0x514   : > { %4082 = vpow2.f32 %v2895_v9  ;;  %v2927_v1 = vmul.f32 1.442695, %v2871_v63  ;;  %v2853_v20 = vsub.f32 %v5286_v46, %v5455_v5  ;;  %v2935_v19 = vmul.f32 1.442695, %v2875_v43 }
 0x515   : > { %v5461_v15 = vmax.f32 %v2844_v62, %v2845_v17  ;;  %4084 = vpow2.f32 %v2903_v49  ;;  %v2857_v48 = vsub.f32 %v5308_v16, %v5455_v5  ;;  %v2881_v41 = vmul.f32 1.442695, %v2848_v18 }
 0x516   : > { %4086 = vpow2.f32 %v2911_v32  ;;  %v2889_v53 = vmul.f32 1.442695, %v2852_v60  ;;  %v2891_v50 = vmul.f32 1.442695, %v2853_v20  ;;  %v2847_v46 = vsub.f32 %v5280_v38, %v5406_v22 }
 0x517   : > { %v2854_v4 = vsub.f32 %v5303_v55, %v5461_v15  ;;  %4088 = vpow2.f32 %v2919_v13  ;;  %v2858_v61 = vsub.f32 %v5346_v3, %v5461_v15  ;;  %v2899_v51 = vmul.f32 1.442695, %v2857_v48 }
 0x518   : > { %4090 = vpow2.f32 %v2927_v1  ;;  %v2849_v16 = vsub.f32 %v5289_v37, %v5455_v5  ;;  %v2850_v55 = vsub.f32 %v5292_v45, %v5461_v15  ;;  %v2861_v40 = vsub.f32 %v5352_v0, %v5455_v5 }
 0x519   : > { %4092 = vpow2.f32 %v2935_v19  ;;  %v2893_v34 = vmul.f32 1.442695, %v2854_v4  ;;  %v2901_v3 = vmul.f32 1.442695, %v2858_v61  ;;  %v2862_v52 = vsub.f32 %v5365_v21, %v5461_v15 }
 0x51a   : > { %4094 = vpow2.f32 %v2881_v41  ;;  %v2879_v22 = vmul.f32 1.442695, %v2847_v46  ;;  %v5483_v38 = vpop.eup %4080  ;;  %v2865_v37 = vsub.f32 %v5368_v26, %v5455_v5  ;;  %v2883_v33 = vmul.f32 1.442695, %v2849_v16 }
 0x51b   : > { %4096 = vpow2.f32 %v2889_v53  ;;  %v2866_v45 = vsub.f32 %v5383_v8, %v5461_v15  ;;  %v2885_v0 = vmul.f32 1.442695, %v2850_v55  ;;  %v2869_v21 = vsub.f32 %v5389_v6, %v5455_v5 }
 0x51c   : > { %4098 = vpow2.f32 %v2891_v50  ;;  %v2907_v17 = vmul.f32 1.442695, %v2861_v40  ;;  %v2870_v26 = vsub.f32 %v5402_v23, %v5461_v15  ;;  %v2909_v9 = vmul.f32 1.442695, %v2862_v52 }
 0x51d   : > { %4100 = vpow2.f32 %v2899_v51  ;;  %v2873_v8 = vsub.f32 %v5412_v30, %v5455_v5  ;;  %v2915_v43 = vmul.f32 1.442695, %v2865_v37  ;;  %v2874_v6 = vsub.f32 %v5421_v10, %v5461_v15 }
 0x51e   : > { %v5487_v27 = vpop.eup %4082  ;;  %4102 = vpow2.f32 %v2893_v34  ;;  %v2917_v32 = vmul.f32 1.442695, %v2866_v45  ;;  %v2877_v23 = vsub.f32 %v5424_v36, %v5455_v5  ;;  %v2923_v13 = vmul.f32 1.442695, %v2869_v21 }
 0x51f   : > { %v5491_v29 = vpop.eup %4084  ;;  %4104 = vpow2.f32 %v2901_v3  ;;  %v2878_v30 = vsub.f32 %v5435_v47, %v5461_v15  ;;  %v2925_v1 = vmul.f32 1.442695, %v2870_v26  ;;  %v2931_v10 = vmul.f32 1.442695, %v2873_v8 }
 0x520   : > { %v5495_v63 = vpop.eup %4086  ;;  %4106 = vpow2.f32 %v2879_v22  ;;  %v2856_v48 = vsub.f32 %v5334_v25, %v5447_v54  ;;  %v2933_v36 = vmul.f32 1.442695, %v2874_v6  ;;  %v2939_v41 = vmul.f32 1.442695, %v2877_v23 }
 0x521   : > { %v5499_v62 = vpop.eup %4088  ;;  %4108 = vpow2.f32 %v2883_v33  ;;  %v2860_v47 = vsub.f32 %v5349_v57, %v5447_v54  ;;  %v2941_v15 = vmul.f32 1.442695, %v2878_v30  ;;  %v2944_v61 = vsel %vm2786_vm7, %v5483_v38, 0.0 }
 0x522   : > { %v5503_v49 = vpop.eup %4090  ;;  %4110 = vpow2.f32 %v2885_v0  ;;  %v2897_v50 = vmul.f32 1.442695, %v2856_v48  ;;  %v2946_v22 = vsel %vm2786_vm7, %v5487_v27, 0.0  ;;  %v2864_v45 = vsub.f32 %v5362_v7, %v5447_v54 }
 0x523   : > { %v5507_v18 = vpop.eup %4092  ;;  %4112 = vpow2.f32 %v2907_v17  ;;  %v2905_v55 = vmul.f32 1.442695, %v2860_v47  ;;  %v2868_v8 = vsub.f32 %v5377_v44, %v5447_v54  ;;  %v2872_v23 = vsub.f32 %v5394_v56, %v5447_v54 }
 0x524   : > { %v5511_v60 = vpop.eup %4094  ;;  %4114 = vpow2.f32 %v2909_v9  ;;  %v2950_v44 = vsel %vm2786_vm7, %v5495_v63, 0.0 }
 0x525   : > { %v5515_v20 = vpop.eup %4096  ;;  %4116 = vpow2.f32 %v2915_v43  ;;  %v2948_v43 = vsel %vm2786_vm7, %v5491_v29, 0.0 }
 0x526   : > { %v5517_v19 = vpop.eup %4098  ;;  %4118 = vpow2.f32 %v2917_v32 }
 0x527   : > { %v5521_v5 = vpop.eup %4100  ;;  %4120 = vpow2.f32 %v2923_v13  ;;  %v2974_v46 = vsel %vm2786_vm7, %v5517_v19, 0.0 }
 0x528   : > { %v5523_v4 = vpop.eup %4102  ;;  %4122 = vpow2.f32 %v2925_v1  ;;  %v2976_v17 = vsel %vm2786_vm7, %v5521_v5, 0.0 }
 0x529   : > { %v5527_v53 = vpop.eup %4104  ;;  %4124 = vpow2.f32 %v2931_v10  ;;  %v2989_v16 = vsel %vm2786_vm7, %v5523_v4, 0.0 }
 0x52a   : > { %v5531_v25 = vpop.eup %4106  ;;  %4126 = vpow2.f32 %v2933_v36  ;;  %v2991_v7 = vsel %vm2786_vm7, %v5527_v53, 0.0 }
 0x52b   : > { %v5535_v51 = vpop.eup %4108  ;;  %4128 = vpow2.f32 %v2939_v41  ;;  %v2943_v57 = vsel %vm2786_vm7, %v5531_v25, 0.0  ;;  %v2913_v41 = vmul.f32 1.442695, %v2864_v45 }
 0x52c   : > { %v5541_v34 = vpop.eup %4110  ;;  %4130 = vpow2.f32 %v2941_v15  ;;  %v2945_v40 = vadd.f32 %v2944_v61, %v2943_v57  ;;  %v2973_v3 = vsel %vm2786_vm7, %v5535_v51, 0.0  ;;  %v2952_v57 = vsel %vm2786_vm7, %v5499_v62, 0.0 }
 0x52d   : > { %v5545_v52 = vpop.eup %4112  ;;  %v2975_v37 = vadd.f32 %v2974_v46, %v2973_v3  ;;  %v2988_v33 = vsel %vm2786_vm7, %v5541_v34, 0.0  ;;  %4132 = vpow2.f32 %v2897_v50  ;;  %v2921_v46 = vmul.f32 1.442695, %v2868_v8 }
 0x52e   : > { %v5553_v0 = vpop.eup %4114  ;;  %v2947_v21 = vadd.f32 %v2946_v22, %v2945_v40  ;;  %v2990_v26 = vadd.f32 %v2989_v16, %v2988_v33  ;;  %v2978_v30 = vsel %vm2786_vm7, %v5545_v52, 0.0  ;;  %4134 = vpow2.f32 %v2905_v55 }
 0x52f   : > { %v5557_v9 = vpop.eup %4116  ;;  %v2977_v6 = vadd.f32 %v2976_v17, %v2975_v37  ;;  %v2993_v36 = vsel %vm2786_vm7, %v5553_v0, 0.0  ;;  %v2954_v55 = vsel %vm2786_vm7, %v5503_v49, 0.0  ;;  %v2959_v8 = vsel %vm2786_vm7, %v5515_v20, 0.0 }
 0x530   : > { %v5565_v32 = vpop.eup %4118  ;;  %v2949_v13 = vadd.f32 %v2948_v43, %v2947_v21  ;;  %v2992_v1 = vadd.f32 %v2991_v7, %v2990_v26  ;;  %v2980_v56 = vsel %vm2786_vm7, %v5557_v9, 0.0  ;;  %v2958_v26 = vsel %vm2786_vm7, %v5511_v60, 0.0 }
 0x531   : > { %v5571_v10 = vpop.eup %4120  ;;  %v2979_v48 = vadd.f32 %v2978_v30, %v2977_v6  ;;  %v2995_v40 = vsel %vm2786_vm7, %v5565_v32, 0.0  ;;  %4136 = vpow2.f32 %v2913_v41  ;;  %v2956_v30 = vsel %vm2786_vm7, %v5507_v18, 0.0 }
 0x532   : > { %v5577_v47 = vpop.eup %4122  ;;  %v2951_v15 = vadd.f32 %v2950_v44, %v2949_v13  ;;  %v2994_v61 = vadd.f32 %v2993_v36, %v2992_v1  ;;  %v2982_v37 = vsel %vm2786_vm7, %v5571_v10, 0.0  ;;  %4138 = vpow2.f32 %v2921_v46 }
 0x533   : > { %v5581_v50 = vpop.eup %4124  ;;  %v2981_v16 = vadd.f32 %v2980_v56, %v2979_v48  ;;  %v2997_v17 = vsel %vm2786_vm7, %v5577_v47, 0.0  ;;  %v2876_v41 = vsub.f32 %v5409_v42, %v5447_v54 }
 0x534   : > { %v5587_v3 = vpop.eup %4126  ;;  %v2953_v22 = vadd.f32 %v2952_v57, %v2951_v15  ;;  %v2996_v33 = vadd.f32 %v2995_v40, %v2994_v61  ;;  %v2984_v7 = vsel %vm2786_vm7, %v5581_v50, 0.0  ;;  %v2960_v61 = vadd.f32 %v2959_v8, %v2958_v26 }
 0x535   : > { %v4129_v45 = vpop.eup %4128  ;;  %v2983_v21 = vadd.f32 %v2982_v37, %v2981_v16  ;;  %v2999_v44 = vsel %vm2786_vm7, %v5587_v3, 0.0  ;;  %v2929_v40 = vmul.f32 1.442695, %v2872_v23  ;;  %v2937_v46 = vmul.f32 1.442695, %v2876_v41 }
 0x536   : > { %v5599_v43 = vpop.eup %4130  ;;  %v2955_v6 = vadd.f32 %v2954_v55, %v2953_v22  ;;  %v2998_v13 = vadd.f32 %v2997_v17, %v2996_v33  ;;  %v2986_v36 = vsel %vm2786_vm7, %v4129_v45, 0.0 }
 0x537   : > { %v2985_v1 = vadd.f32 %v2984_v7, %v2983_v21  ;;  %v5607_v48 = vpop.eup %4132  ;;  %v3001_v57 = vsel %vm2786_vm7, %v5599_v43, 0.0 }
 0x538   : > { %v2957_v15 = vadd.f32 %v2956_v30, %v2955_v6  ;;  %v3000_v56 = vadd.f32 %v2999_v44, %v2998_v13  ;;  %v2961_v55 = vsel %vm2786_vm7, %v5607_v48, 0.0  ;;  %v5616_v37 = vpop.eup %4134 }
 0x539   : > { %v2987_v16 = vadd.f32 %v2986_v36, %v2985_v1  ;;  %v2962_v33 = vadd.f32 %v2961_v55, %v2960_v61  ;;  %v2963_v21 = vsel %vm2786_vm7, %v5616_v37, 0.0 }
 0x53a   : > { %4140 = vrcp.f32 %v2957_v15  ;;  %v3002_v22 = vadd.f32 %v3001_v57, %v3000_v56 }
 0x53b   : > { %4142 = vrcp.f32 %v2987_v16  ;;  %v4137_v17 = vpop.eup %4136  ;;  %v2964_v26 = vadd.f32 %v2963_v21, %v2962_v33 }
 0x53c   : > { %4144 = vrcp.f32 %v3002_v22  ;;  %v4139_v42 = vpop.eup %4138  ;;  %v2965_v54 = vsel %vm2786_vm7, %v4137_v17, 0.0  ;;  %v4067_v22 = vld [vmem:[%s5891_s9] ss:$8 sps:$4 sm:$0xff]  }
 0x53d   : > { %4146 = vpow2.f32 %v2929_v40  ;;  %v2966_v8 = vadd.f32 %v2965_v54, %v2964_v26  ;;  %v2967_v44 = vsel %vm2786_vm7, %v4139_v42, 0.0 }
 0x53e   : > { %4148 = vpow2.f32 %v2937_v46 }
 0x53f   : > { %v2968_v15 = vadd.f32 %v2967_v44, %v2966_v8  ;;  %v4075_v8 = vld [vmem:[%s5891_s9 + $0x24] ss:$8 sps:$4 sm:$0xff]  }
 0x540   : > { %v3293_v44 = vld [vmem:[%s565_s14 + $0x8] sm:$0xff] }
 0x544   : > { %v5621_v23 = vpop.eup %4140 }
 0x545   : > { %v4143_v6 = vpop.eup %4142  ;;  %v3007_v7 = vmul.f32 %v5621_v23, %v5531_v25  ;;  %v3015_v55 = vmul.f32 %v5621_v23, %v5487_v27  ;;  %v3023_v21 = vmul.f32 %v5621_v23, %v5495_v63  ;;  %v4072_v27 = vld [vmem:[%s5891_s9 + $0x14] ss:$8 sps:$4 sm:$0xff]   ;;  %v3031_v63 = vmul.f32 %v5621_v23, %v5503_v49 }
 0x546   : > { %v5625_v13 = vpop.eup %4144  ;;  %v3009_v30 = vmul.f32 %v4143_v6, %v5535_v51  ;;  %v3013_v56 = vmul.f32 %v4143_v6, %v5517_v19  ;;  %v5633_v61 = vmul.f32 %v4143_v6, %v5557_v9  ;;  %v5636_v25 = vmul.f32 %v4143_v6, %v5571_v10 }
 0x547   : > { %3041 = vperm.xlu0 %4003, %v3007_v7   ;;  %v3010_v1 = vmul.f32 %v5625_v13, %v5541_v34  ;;  %v4147_v36 = vpop.eup %4146  ;;  %v5639_v57 = vmul.f32 %v4143_v6, %v5581_v50  ;;  %v5641_v51 = vmul.f32 %v4143_v6, %v4129_v45  ;;  %v3014_v19 = vmul.f32 %v5625_v13, %v5523_v4  ;;  %v4069_v4 = vld [vmem:[%s5891_s9 + $0x4] ss:$8 sps:$4 sm:$0xff]  }
 0x548   : > { %3051 = vperm.xlu1 %4002, %v3009_v30   ;;  %v2969_v34 = vsel %vm2786_vm7, %v4147_v36, 0.0  ;;  %v4149_v16 = vpop.eup %4148  ;;  %v3017_v9 = vmul.f32 %v4143_v6, %v5521_v5  ;;  %v3018_v50 = vmul.f32 %v5625_v13, %v5527_v53  ;;  %v3021_v45 = vmul.f32 %v4143_v6, %v5545_v52  ;;  %3356 = vmatprep.subr.bf16.mxu1 %v4069_v4 }
 0x549   : > { %v2970_v41 = vadd.f32 %v2969_v34, %v2968_v15  ;;  %v2971_v40 = vsel %vm2786_vm7, %v4149_v16, 0.0  ;;  %v3022_v5 = vmul.f32 %v5625_v13, %v5553_v0  ;;  %3357 = vmatpush1.bf16.msra.mxu1 %v4067_v22  ;;  %v3011_v53 = vmul.f32 %v5621_v23, %v5483_v38 }
 0x54a   : > { %v3026_v52 = vmul.f32 %v5625_v13, %v5565_v32  ;;  %v3030_v33 = vmul.f32 %v5625_v13, %v5577_v47  ;;  %v3019_v0 = vmul.f32 %v5621_v23, %v5491_v29  ;;  %v4070_v32 = vld [vmem:[%s5891_s9 + $0x10] ss:$8 sps:$4 sm:$0xff]   ;;  %3358 = vmatprep.subr.bf16.mxu1 %v4072_v27  ;;  %v3027_v29 = vmul.f32 %v5621_v23, %v5499_v62  ;;  %v4073_v62 = vld [vmem:[%s5891_s9 + $0x20] ss:$8 sps:$4 sm:$0xff]  }
 0x54b   : > { %3056 = vperm.xlu0 %4003, %v3010_v1   ;;  %v2972_v10 = vadd.f32 %v2971_v40, %v2970_v41  ;;  %v3035_v54 = vmul.f32 %v5621_v23, %v5507_v18  ;;  %v3038_v18 = vmul.f32 %v5625_v13, %v5599_v43  ;;  %v3292_v1 = vld [vmem:[%s565_s14] sm:$0xff]  ;;  %v5926_v15 = vmov 0  }
 0x54c   : > { %3071 = vperm.xlu1 %4002, %v3013_v56   ;;  %v3294_v56 = vld [vmem:[%s565_s14 + $0x10] sm:$0xff] }
 0x54d   : > { %4150 = vrcp.f32 %v2972_v10  ;;  %3359 = vmatpush1.bf16.msra.mxu1 %v4070_v32 }
 0x54e   : > { %3360 = vmatprep.subr.bf16.mxu1 %v4075_v8 }
 0x54f   : > { %3076 = vperm.xlu0 %4003, %v3014_v19  }
 0x550   : > { %3091 = vperm.xlu1 %4002, %v3017_v9  }
 0x551   : > { %3361 = vmatpush1.bf16.msra.mxu1 %v4073_v62 }
 0x553   : > { %3096 = vperm.xlu0 %4003, %v3018_v50  }
 0x554   : > { %3111 = vperm.xlu1 %4002, %v3021_v45  }
 0x557   : > { %3116 = vperm.xlu0 %4003, %v3022_v5   ;;  %v4151_v46 = vpop.eup %4150 }
 0x558   : > { %3061 = vperm.xlu1 %4002, %v3011_v53   ;;  %v3024_v38 = vmul.f32 %v4151_v46, %v4137_v17  ;;  %v3028_v47 = vmul.f32 %v4151_v46, %v4139_v42  ;;  %v3032_v17 = vmul.f32 %v4151_v46, %v4147_v36  ;;  %v3036_v26 = vmul.f32 %v4151_v46, %v4149_v16 }
 0x559   : > { %v3034_v42 = vmul.f32 %v5625_v13, %v5587_v3  ;;  %v3008_v49 = vmul.f32 %v4151_v46, %v5511_v60  ;;  %v3012_v23 = vmul.f32 %v4151_v46, %v5515_v20  ;;  %v3016_v3 = vmul.f32 %v4151_v46, %v5607_v48  ;;  %v3307_v60 = vld [vmem:[%s5891_s9 + $0x30] sm:$0x11]  ;;  %v3298_v20 = vld [vmem:[%s5890_s8] sm:$0x77] }
 0x55a   : > { %v3020_v6 = vmul.f32 %v4151_v46, %v5616_v37  ;;  %v3765_v7 = vcombine.high %v3307_v60, %v3307_v60  ;;  %v3764_v30 = vcombine.low %v3307_v60, %v3307_v60  ;;  %v3770_v48 = vcombine.high %v3298_v20, %v3298_v20 }
 0x55b   : > { %3136 = vperm.xlu0 %4003, %v3026_v52   ;;  %v3769_v37 = vcombine.low %v3298_v20, %v3298_v20  ;;  %v3296_v36 = vpack.c.bf16 %v3293_v44, %v3292_v1  ;;  %v5929_v44 = vld [vmem:[#allocation11_spill] sm:$0xff] }
 0x55c   : > { %3081 = vperm.xlu1 %4002, %v3015_v55   ;;  %3766 = vmatprep.subr.msk.bf16.mxu1 %vm3349_vm8, %v3765_v7  ;;  %v3351_v43 = vsel %vm3349_vm8, %v3764_v30, 0 }
 0x55d   : > { %3363 = vmatpush1.bf16.msra.mxu1 %v3351_v43  ;;  %3771 = vmatprep.subr.msk.bf16.mxu0 %vm1157_vm3, %v3770_v48  ;;  %v3422_v13 = vsel %vm1157_vm3, %v3769_v37, 0 }
 0x55e   : > { %3428 = vmatpush1.bf16.msra.mxu0 %v3422_v13  ;;  %v5928_v13 = vld [vmem:[#allocation18_spill] sm:$0xff] }
 0x55f   : > { %3156 = vperm.xlu0 %4003, %v3030_v33  }
 0x560   : > { %3101 = vperm.xlu1 %4002, %v3019_v0  }
 0x561   : > { %3772 = vmatmul.mubr.msk.bf16.vlgmr.msra.gmra.mrb[132].mxu0 %vm3414_vm9, %v3296_v36 }
 0x562   : > { %3469 = vmatprep.mubr.bf16.mxu0 %v5926_v15 }
 0x563   : > { %3126 = vperm.xlu0 %4003, %v3024_v38  }
 0x564   : > { %3121 = vperm.xlu1 %4002, %v3023_v21  }
 0x567   : > { %3146 = vperm.xlu0 %4003, %v3028_v47  }
 0x568   : > { %3141 = vperm.xlu1 %4002, %v3027_v29  }
 0x56b   : > { %3166 = vperm.xlu0 %4003, %v3032_v17  }
 0x56c   : > { %3161 = vperm.xlu1 %4002, %v3031_v63  }
 0x56f   : > { %3186 = vperm.xlu0 %4003, %v3036_v26  }
 0x570   : > { %3181 = vperm.xlu1 %4002, %v3035_v54  }
 0x573   : > { %3176 = vperm.xlu0 %4003, %v3034_v42  }
 0x574   : > { %3046 = vperm.xlu1 %4002, %v3008_v49  }
 0x577   : > { %3196 = vperm.xlu0 %4003, %v3038_v18  }
 0x578   : > { %3066 = vperm.xlu1 %4002, %v3012_v23  }
 0x57c   : > { %3086 = vperm.xlu1 %4002, %v3016_v3   ;;  %v5927_v3 = vld [vmem:[#allocation9_spill] sm:$0xff] }
 0x580   : > { %3106 = vperm.xlu1 %4002, %v3020_v6  }
 0x584   : > { %3131 = vperm.xlu1 %4002, %v5633_v61   ;;  %v3295_v61 = vld [vmem:[%s565_s14 + $0x18] sm:$0xff] }
 0x588   : > { %3151 = vperm.xlu1 %4002, %v5636_v25   ;;  %v3297_v25 = vpack.c.bf16 %v3295_v61, %v3294_v56 }
 0x58a   : > { %3773 = vmatmul.mubr.msk.bf16.gmra.mrb[136].mxu0 %vm3414_vm9, %v3297_v25 }
 0x58c   : > { %3171 = vperm.xlu1 %4002, %v5639_v57   ;;  %v5717_v57 = vld [vmem:[%s5892_s10 + $0x3] ss:$0 sm:$0xff] }
 0x58d   : > { %v1923_v16 = vadd.f32 %v5095_v59, %v5717_v57  ;;  %v1939_v41 = vadd.f32 %v5103_v11, %v5717_v57  ;;  %v1926_v40 = vadd.f32 %v5099_v12, %v5717_v57  ;;  %v1942_v45 = vadd.f32 %v5107_v14, %v5717_v57 }
 0x58e   : > { %v1955_v4 = vadd.f32 %v5111_v28, %v5717_v57  ;;  %v1958_v12 = vadd.f32 %v5115_v31, %v5717_v57  ;;  %v1971_v0 = vadd.f32 %v5119_v35, %v5717_v57  ;;  %v1915_v29 = vadd.f32 %v5097_v2, %v5717_v57 }
 0x58f   : > { %v1974_v31 = vadd.f32 %v5123_v39, %v5717_v57  ;;  %v1931_v26 = vadd.f32 %v5105_v24, %v5717_v57  ;;  %v1990_v2 = vadd.f32 %v5131_v58, %v5717_v57  ;;  %v1947_v6 = vadd.f32 %v5927_v3, %v5717_v57  ;;  %v5936_v3 = vld [vmem:[#allocation26_spill] sm:$0xff] }
 0x590   : > { %3191 = vperm.xlu1 %4002, %v5641_v51   ;;  %v2006_v1 = vadd.f32 %v5928_v13, %v5717_v57  ;;  %v1963_v36 = vadd.f32 %v5929_v44, %v5717_v57 }
 0x5c6   : > { %v3042_v51 = vpop.permute.xlu0 %3041 }
 0x5c7   : > { %v3052_v34 = vpop.permute.xlu1 %3051  ;;  %v3199_v35 = vmul.f32 %v3042_v51, %v1915_v29 }
 0x5c8   : > { %v3201_v19 = vmul.f32 %v3052_v34, %v1923_v16 }
 0x5c9   : > { %v3232_v24 = vsel %vm3231_vm10, %v3199_v35, 0.0  ;;  %v5934_v35 = vld [vmem:[#allocation22_spill] sm:$0xff] }
 0x5ca   : > { %v3057_v9 = vpop.permute.xlu0 %3056  ;;  %v3262_v59 = vsel %vm3231_vm10, %v3201_v19, 0.0 }
 0x5cb   : > { %v3072_v10 = vpop.permute.xlu1 %3071  ;;  %v3202_v22 = vmul.f32 %v3057_v9, %v1926_v40  ;;  %v5930_v9 = vld [vmem:[#allocation14_spill] sm:$0xff] }
 0x5cc   : > { %v3205_v50 = vmul.f32 %v3072_v10, %v1939_v41  ;;  %v1979_v40 = vadd.f32 %v5930_v9, %v5717_v57 }
 0x5cd   : > { %v3277_v46 = vsel %vm3231_vm10, %v3202_v22, 0.0 }
 0x5ce   : > { %v3263_v5 = vsel %vm3231_vm10, %v3205_v50, 0.0  ;;  %v3077_v11 = vpop.permute.xlu0 %3076 }
 0x5cf   : > { %v3264_v53 = vadd.f32 %v3263_v5, %v3262_v59  ;;  %v3206_v52 = vmul.f32 %v3077_v11, %v1942_v45  ;;  %v3092_v55 = vpop.permute.xlu1 %3091  ;;  %v5931_v5 = vld [vmem:[#allocation17_spill] sm:$0xff] }
 0x5d0   : > { %v3209_v33 = vmul.f32 %v3092_v55, %v1955_v4  ;;  %v1995_v11 = vadd.f32 %v5931_v5, %v5717_v57 }
 0x5d1   : > { %v3278_v14 = vsel %vm3231_vm10, %v3206_v52, 0.0 }
 0x5d2   : > { %v3279_v28 = vadd.f32 %v3278_v14, %v3277_v46  ;;  %v3265_v38 = vsel %vm3231_vm10, %v3209_v33, 0.0  ;;  %v3097_v21 = vpop.permute.xlu0 %3096  ;;  %v5932_v46 = vld [vmem:[#allocation21_spill] sm:$0xff] }
 0x5d3   : > { %v3266_v32 = vadd.f32 %v3265_v38, %v3264_v53  ;;  %v3210_v27 = vmul.f32 %v3097_v21, %v1958_v12  ;;  %v3112_v47 = vpop.permute.xlu1 %3111  ;;  %v2011_v14 = vadd.f32 %v5932_v46, %v5717_v57 }
 0x5d4   : > { %v3213_v17 = vmul.f32 %v3112_v47, %v1971_v0 }
 0x5d5   : > { %v3280_v63 = vsel %vm3231_vm10, %v3210_v27, 0.0  ;;  %v5933_v27 = vld [vmem:[#allocation25_spill] sm:$0xff] }
 0x5d6   : > { %v3281_v54 = vadd.f32 %v3280_v63, %v3279_v28  ;;  %v3267_v42 = vsel %vm3231_vm10, %v3213_v17, 0.0  ;;  %v3117_v62 = vpop.permute.xlu0 %3116  ;;  %v2027_v47 = vadd.f32 %v5933_v27, %v5717_v57 }
 0x5d7   : > { %v5746_v8 = vadd.f32 %v3267_v42, %v3266_v32  ;;  %v3214_v49 = vmul.f32 %v3117_v62, %v1974_v31  ;;  %v3062_v18 = vpop.permute.xlu1 %3061 }
 0x5d8   : > { %v3203_v23 = vmul.f32 %v3062_v18, %v1931_v26 }
 0x5d9   : > { %v3282_v39 = vsel %vm3231_vm10, %v3214_v49, 0.0 }
 0x5da   : > { %v3283_v60 = vadd.f32 %v3282_v39, %v3281_v54  ;;  %v3233_v7 = vsel %vm3231_vm10, %v3203_v23, 0.0  ;;  %v3137_v30 = vpop.permute.xlu0 %3136  ;;  %v2022_v54 = vadd.f32 %v5934_v35, %v5717_v57 }
 0x5db   : > { %v3234_v43 = vadd.f32 %v3233_v7, %v3232_v24  ;;  %v3218_v20 = vmul.f32 %v3137_v30, %v1990_v2  ;;  %v3082_v48 = vpop.permute.xlu1 %3081  ;;  %v5935_v2 = vld [vmem:[#allocation7_spill] sm:$0xff] }
 0x5dc   : > { %v3207_v37 = vmul.f32 %v3082_v48, %v1947_v6  ;;  %v1918_v39 = vadd.f32 %v5935_v2, %v5717_v57  ;;  %v2038_v6 = vadd.f32 %v5936_v3, %v5717_v57 }
 0x5dd   : > { %v3284_v58 = vsel %vm3231_vm10, %v3218_v20, 0.0 }
 0x5de   : > { %v3285_v56 = vadd.f32 %v3284_v58, %v3283_v60  ;;  %v3235_v61 = vsel %vm3231_vm10, %v3207_v37, 0.0  ;;  %v3157_v25 = vpop.permute.xlu0 %3156  ;;  %v5937_v60 = vld [vmem:[#allocation8_spill] sm:$0xff]  ;;  %v5938_v58 = vld [vmem:[#allocation10_spill] sm:$0xff] }
 0x5df   : > { %v3236_v51 = vadd.f32 %v3235_v61, %v3234_v43  ;;  %v3222_v34 = vmul.f32 %v3157_v25, %v2006_v1  ;;  %v3102_v16 = vpop.permute.xlu1 %3101  ;;  %v1934_v7 = vadd.f32 %v5937_v60, %v5717_v57  ;;  %v1950_v44 = vadd.f32 %v5938_v58, %v5717_v57 }
 0x5e0   : > { %v3211_v41 = vmul.f32 %v3102_v16, %v1963_v36  ;;  %v5939_v16 = vld [vmem:[#allocation12_spill] sm:$0xff] }
 0x5e1   : > { %v3286_v19 = vsel %vm3231_vm10, %v3222_v34, 0.0 }
 0x5e2   : > { %v3287_v10 = vadd.f32 %v3286_v19, %v3285_v56  ;;  %v3237_v50 = vsel %vm3231_vm10, %v3211_v41, 0.0  ;;  %v3127_v45 = vpop.permute.xlu0 %3126  ;;  %v1966_v41 = vadd.f32 %v5939_v16, %v5717_v57  ;;  %v5940_v19 = vld [vmem:[#allocation15_spill] sm:$0xff] }
 0x5e3   : > { %v3238_v22 = vadd.f32 %v3237_v50, %v3236_v51  ;;  %v3122_v4 = vpop.permute.xlu1 %3121  ;;  %v1982_v9 = vadd.f32 %v5940_v19, %v5717_v57  ;;  %v3621_v16 = vld [vmem:[%s5892_s10 + $0x7] ss:$8 sm:$0x3] }
 0x5e4   : > { %v3215_v59 = vmul.f32 %v3122_v4, %v1979_v40 }
 0x5e6   : > { %v3239_v53 = vsel %vm3231_vm10, %v3215_v59, 0.0  ;;  %v3147_v52 = vpop.permute.xlu0 %3146  ;;  %v3216_v59 = vmul.f32 %v3127_v45, %v1982_v9 }
 0x5e7   : > { %v3240_v55 = vadd.f32 %v3239_v53, %v3238_v22  ;;  %v3142_v33 = vpop.permute.xlu1 %3141  ;;  %v5941_v22 = vld [vmem:[#allocation19_spill] sm:$0xff] }
 0x5e8   : > { %v3219_v12 = vmul.f32 %v3142_v33, %v1995_v11  ;;  %v1998_v4 = vadd.f32 %v5941_v22, %v5717_v57  ;;  %v5942_v11 = vld [vmem:[#allocation13_spill] sm:$0xff] }
 0x5e9   : > { %v1987_v53 = vadd.f32 %v5942_v11, %v5717_v57 }
 0x5ea   : > { %v3241_v0 = vsel %vm3231_vm10, %v3219_v12, 0.0  ;;  %v3167_v28 = vpop.permute.xlu0 %3166  ;;  %v3220_v12 = vmul.f32 %v3147_v52, %v1998_v4 }
 0x5eb   : > { %v3242_v38 = vadd.f32 %v3241_v0, %v3240_v55  ;;  %v3162_v21 = vpop.permute.xlu1 %3161  ;;  %v5943_v55 = vld [vmem:[#allocation23_spill] sm:$0xff] }
 0x5ec   : > { %v3223_v32 = vmul.f32 %v3162_v21, %v2011_v14  ;;  %v2014_v33 = vadd.f32 %v5943_v55, %v5717_v57 }
 0x5ee   : > { %v3243_v29 = vsel %vm3231_vm10, %v3223_v32, 0.0  ;;  %v3187_v17 = vpop.permute.xlu0 %3186  ;;  %v3254_v32 = vsel %vm3231_vm10, %v3216_v59, 0.0  ;;  %v3224_v27 = vmul.f32 %v3167_v28, %v2014_v33  ;;  %v5946_v28 = vld [vmem:[#allocation20_spill] sm:$0xff] }
 0x5ef   : > { %v3244_v31 = vadd.f32 %v3243_v29, %v3242_v38  ;;  %v3182_v63 = vpop.permute.xlu1 %3181  ;;  %v5944_v38 = vld [vmem:[#allocation27_spill] sm:$0xff]  ;;  %v5945_v29 = vld [vmem:[#allocation16_spill] sm:$0xff]  ;;  %v2019_v2 = vadd.f32 %v5946_v28, %v5717_v57 }
 0x5f0   : > { %v3227_v26 = vmul.f32 %v3182_v63, %v2027_v47  ;;  %v2030_v21 = vadd.f32 %v5944_v38, %v5717_v57  ;;  %v3256_v63 = vsel %vm3231_vm10, %v3220_v12, 0.0 }
 0x5f2   : > { %v3245_v42 = vsel %vm3231_vm10, %v3227_v26, 0.0  ;;  %v3177_v62 = vpop.permute.xlu0 %3176  ;;  %v3228_v26 = vmul.f32 %v3187_v17, %v2030_v21 }
 0x5f3   : > { %v5777_v49 = vadd.f32 %v3245_v42, %v3244_v31  ;;  %v3226_v18 = vmul.f32 %v3177_v62, %v2022_v54  ;;  %v3047_v23 = vpop.permute.xlu1 %3046  ;;  %v2003_v31 = vadd.f32 %v5945_v29, %v5717_v57  ;;  %v3258_v62 = vsel %vm3231_vm10, %v3224_v27, 0.0 }
 0x5f4   : > { %v3200_v43 = vmul.f32 %v3047_v23, %v1918_v39  ;;  %v3260_v39 = vsel %vm3231_vm10, %v3228_v26, 0.0 }
 0x5f5   : > { %v3288_v24 = vsel %vm3231_vm10, %v3226_v18, 0.0 }
 0x5f6   : > { %v3289_v30 = vadd.f32 %v3288_v24, %v3287_v10  ;;  %v3197_v20 = vpop.permute.xlu0 %3196  ;;  %v3247_v36 = vsel %vm3231_vm10, %v3200_v43, 0.0 }
 0x5f7   : > { %v3230_v48 = vmul.f32 %v3197_v20, %v2038_v6  ;;  %v3067_v37 = vpop.permute.xlu1 %3066 }
 0x5f8   : > { %v3204_v13 = vmul.f32 %v3067_v37, %v1934_v7 }
 0x5f9   : > { %v3290_v1 = vsel %vm3231_vm10, %v3230_v48, 0.0 }
 0x5fa   : > { %v3291_v56 = vadd.f32 %v3290_v1, %v3289_v30  ;;  %v3248_v61 = vsel %vm3231_vm10, %v3204_v13, 0.0 }
 0x5fb   : > { %v3249_v25 = vadd.f32 %v3248_v61, %v3247_v36  ;;  %v3087_v51 = vpop.permute.xlu1 %3086 }
 0x5fc   : > { %v3208_v34 = vmul.f32 %v3087_v51, %v1950_v44 }
 0x5fe   : > { %v3250_v40 = vsel %vm3231_vm10, %v3208_v34, 0.0 }
 0x5ff   : > { %v3251_v10 = vadd.f32 %v3250_v40, %v3249_v25  ;;  %v3107_v50 = vpop.permute.xlu1 %3106 }
 0x600   : > { %v3212_v5 = vmul.f32 %v3107_v50, %v1966_v41 }
 0x602   : > { %v3252_v46 = vsel %vm3231_vm10, %v3212_v5, 0.0 }
 0x603   : > { %v3253_v14 = vadd.f32 %v3252_v46, %v3251_v10  ;;  %v3132_v0 = vpop.permute.xlu1 %3131 }
 0x604   : > { %v3217_v47 = vmul.f32 %v3132_v0, %v1987_v53 }
 0x605   : > { %v3255_v45 = vadd.f32 %v3254_v32, %v3253_v14 }
 0x606   : > { %v3269_v52 = vsel %vm3231_vm10, %v3217_v47, 0.0 }
 0x607   : > { %v3257_v35 = vadd.f32 %v3256_v63, %v3255_v45  ;;  %v3270_v54 = vadd.f32 %v3269_v52, %v5746_v8  ;;  %v3152_v42 = vpop.permute.xlu1 %3151  ;;  %v5947_v8 = vld [vmem:[#allocation24_spill] sm:$0xff] }
 0x608   : > { %v3221_v18 = vmul.f32 %v3152_v42, %v2003_v31  ;;  %v2035_v30 = vadd.f32 %v5947_v8, %v5717_v57 }
 0x609   : > { %v3259_v23 = vadd.f32 %v3258_v62, %v3257_v35 }
 0x60a   : > { %v3271_v3 = vsel %vm3231_vm10, %v3221_v18, 0.0 }
 0x60b   : > { %v3261_v6 = vadd.f32 %v3260_v39, %v3259_v23  ;;  %v3272_v24 = vadd.f32 %v3271_v3, %v3270_v54  ;;  %v3172_v17 = vpop.permute.xlu1 %3171 }
 0x60c   : > { %v3225_v60 = vmul.f32 %v3172_v17, %v2019_v2 }
 0x60d   : > { %v3299_v7 = vpack.c.bf16 %v3261_v6, %v5777_v49 }
 0x60e   : > { %v3273_v43 = vsel %vm3231_vm10, %v3225_v60, 0.0 }
 0x60f   : > { %v3274_v20 = vadd.f32 %v3273_v43, %v3272_v24  ;;  %v3192_v48 = vpop.permute.xlu1 %3191  ;;  %3767 = vmatmul.mubr.msk.bf16.vlgmr.msra.gmra.mrb[128].mxu1 %vm3231_vm10, %v3299_v7 }
 0x610   : > { %v3229_v37 = vmul.f32 %v3192_v48, %v2035_v30  ;;  %3398 = vmatprep.mubr.bf16.mxu1 %v5926_v15  ;;  %v5948_v15 = vld [vmem:[#allocation6_spill] sm:$0xff] }
 0x611   : > { %v5949_v41 = vsub.s32 0, %v5948_v15 }
 0x612   : > { %v3275_v13 = vsel %vm3231_vm10, %v3229_v37, 0.0 }
 0x613   : > { %v3276_v1 = vadd.f32 %v3275_v13, %v3274_v20  ;;  %v3484_v19 = vrot.slane %v3621_v16, %v5949_v41 }
 0x615   : > { %v3300_v58 = vpack.c.bf16 %v3291_v56, %v3276_v1  ;;  %v5950_v56 = vsub.s32 1, %v5948_v15 }
 0x617   : > { %3768 = vmatmul.mubr.msk.bf16.gmra.mrb[132].mxu1 %vm3231_vm10, %v3300_v58  ;;  %v3488_v40 = vrot.slane %v3621_v16, %v5950_v56 }
 0x634   : > { %v3461_v49 = vpop.f32.mrb[132].mxu0 }
 0x635   : > { %v3463_v44 = vpop.f32.mrb[133].mxu0 }
 0x636   : > { %v3465_v36 = vpop.f32.mrb[134].mxu0 }
 0x637   : > { %v3467_v57 = vpop.f32.mrb[135].mxu0 }
 0x65d   : > { %v3471_v61 = vpop.f32.mrb[136].mxu0 }
 0x65e   : > { %v3473_v25 = vpop.f32.mrb[137].mxu0 }
 0x65f   : > { %v3475_v51 = vpop.f32.mrb[138].mxu0 }
 0x660   : > { %v3477_v34 = vpop.f32.mrb[139].mxu0 }
 0x6e2   : > { %v3390_v9 = vpop.f32.mrb[128].mxu1 }
 0x6e3   : > { %v3462_v10 = vadd.f32 %v3461_v49, %v3390_v9  ;;  %v3392_v50 = vpop.f32.mrb[129].mxu1 }
 0x6e4   : > { %v3464_v22 = vadd.f32 %v3463_v44, %v3392_v50  ;;  %v3394_v4 = vpop.f32.mrb[130].mxu1 }
 0x6e5   : > { %v3491_v59 = vadd.f32 %v3484_v19, %v3462_v10  ;;  %v3466_v5 = vadd.f32 %v3465_v36, %v3394_v4  ;;  %v3396_v11 = vpop.f32.mrb[131].mxu1 }
 0x6e6   : > { %v3492_v53 = vadd.f32 %v3488_v40, %v3464_v22  ;;  %v3468_v55 = vadd.f32 %v3467_v57, %v3396_v11 }
 0x6e7   : > { %v3499_v33 = vmax.f32 %v3491_v59, 0.0  ;;  %v3493_v12 = vadd.f32 %v3484_v19, %v3466_v5 }
 0x6e8   : > { %v3500_v46 = vmax.f32 %v3492_v53, 0.0  ;;  %v3494_v14 = vadd.f32 %v3488_v40, %v3468_v55 }
 0x6e9   : > { %3507 = vst [vmem:[%s559_s29] sm:$0xff] %v3499_v33  ;;  %v3501_v0 = vmax.f32 %v3493_v12, 0.0 }
 0x6ea   : > { %3508 = vst [vmem:[%s559_s29 + $0x8] sm:$0xff] %v3500_v46  ;;  %v3502_v38 = vmax.f32 %v3494_v14, 0.0  ;;  %v3400_v21 = vpop.f32.mrb[132].mxu1 }
 0x6eb   : > { %3509 = vst [vmem:[%s559_s29 + $0x10] sm:$0xff] %v3501_v0  ;;  %v3472_v32 = vadd.f32 %v3471_v61, %v3400_v21  ;;  %v3402_v27 = vpop.f32.mrb[133].mxu1 }
 0x6ec   : > { %3510 = vst [vmem:[%s559_s29 + $0x18] sm:$0xff] %v3502_v38  ;;  %v3474_v47 = vadd.f32 %v3473_v25, %v3402_v27  ;;  %v3404_v45 = vpop.f32.mrb[134].mxu1 }
 0x6ed   : > { %v3495_v29 = vadd.f32 %v3484_v19, %v3472_v32  ;;  %v3476_v31 = vadd.f32 %v3475_v51, %v3404_v45  ;;  %v3406_v63 = vpop.f32.mrb[135].mxu1 }
 0x6ee   : > { %v3496_v26 = vadd.f32 %v3488_v40, %v3474_v47  ;;  %v3478_v52 = vadd.f32 %v3477_v34, %v3406_v63 }
 0x6ef   : > { %v3503_v35 = vmax.f32 %v3495_v29, 0.0  ;;  %v3497_v54 = vadd.f32 %v3484_v19, %v3476_v31 }
 0x6f0   : > { %v3504_v42 = vmax.f32 %v3496_v26, 0.0  ;;  %v3498_v62 = vadd.f32 %v3488_v40, %v3478_v52 }
 0x6f1   : > { %3511 = vst [vmem:[%s559_s29 + $0x20] sm:$0xff] %v3503_v35  ;;  %v3505_v18 = vmax.f32 %v3497_v54, 0.0 }
 0x6f2   : > { %3512 = vst [vmem:[%s559_s29 + $0x28] sm:$0xff] %v3504_v42  ;;  %v3506_v23 = vmax.f32 %v3498_v62, 0.0 }
 0x6f3   : > { %3513 = vst [vmem:[%s559_s29 + $0x30] sm:$0xff] %v3505_v18 }
 0x6f4   : > { %3514 = vst [vmem:[%s559_s29 + $0x38] sm:$0xff] %v3506_v23 }
 0x6f5   : > { %4165 = shalt.err (!%p4162_p7)
}
 0x6f6   : > { %s4166_s29 = scalar_lea.hbm %s5836_s16, 1024  ;;  %s4170_s24 = scalar_lea.hbm %s5893_s11, 2048 }
 0x6f7   : > { %p4167_p10 = scmp.ne.s32.totalorder %s5836_s16, %s4166_s29  ;;  %p4171_p13 = scmp.lt.u32.totalorder %s5836_s16, %s5893_s11 }
 0x6f8   : > { %p4172_p0 = scmp.lt.u32.totalorder %s4170_s24, %s4166_s29  ;;  %p4174_p2 = scmp.lt.u32.totalorder %s4166_s29, %s5836_s16 }
 0x6f9   : > { %p4168_p11 = pnand %p4167_p10, %p4320_p6 }
 0x6fa   : > { %p4173_p1 = por %p4172_p0, %p4171_p13 }
 0x6fb   : > { %p4169_p12 = pneg %p4168_p11 }
 0x6fc   : > { %p4175_p3 = por %p4174_p2, %p4173_p1 }
 0x6fe   : > { %p4176_p4 = pnand %p4175_p3, %p4169_p12 }
 0x700   : > { %4179 = shalt.err (!%p4176_p4)
}
 0x701   : > { %s4219_s22 = smov 256   ;;  %s4220_s30 = smov 16  }
 0x702   : > { %s5951_s0 = scalar_lea.sflag [#allocation4], %s4434_s13 }
 0x703   : > { %3959 = dma.vmem_to_hbm [thread:$0]  (%p4320_p6), %s5838_s12, 1024, %s5836_s16, %s5951_s0, %s4219_s22, %s4219_s22, %s4220_s30  }
 0x704 PF: > { %s3545_s21 = sand.u32 1, %s4202_s17   ;;  %p3962_p5 = pnand %p3612_p9, %p4324_p8 }
 0x705   : > { %s3546_s29 = scalar_lea.sflag [#allocation4], %s3545_s21 }
 0x706   : > { %4197 = dma.done.wait (!%p3962_p5), %s3546_s29, 1024  }
 0x707   : > { %4199 = vsyncadd (!%p3962_p5), %s3546_s29, 4294966272  ;;  %p21_p7 = scmp.ge.s32.totalorder %s4306_s23, 4   ;;  %s5952_s17 = smov %s4206_s18 }
 0x708   : > { %s5953_s18 = smov %s4210_s19  ;;  %s5954_s19 = smov %s4318_s26 }
 0x709   : > { %s5955_s20 = smov %s4306_s23  ;;  %23 = sbr.rel (!%p21_p7) target bundleno = 5 (0x5), region = 146 }
 0x710   :  { %3551 = vsyncpa [#allocation4], 1 }
 0x711   :  { %3553 = vsyncpa [#allocation4 + $0x1], 1 }

</bundles_post_ra>
